<compile_context>
chip_gen: v5e
topology: v5e:2x2
jax: 0.10.0
libtpu: 0.0.40
codegen_flags: <defaults>
</compile_context>

<pallas_src>
import functools
import math

import jax
import jax.numpy as jnp
from jax.experimental import pallas as pl
from jax.experimental.pallas import tpu as pltpu


_VMEM_LIMIT = 48 * 1024 * 1024          # safe on v5e/v6e (128 MiB) and v7x (64 MiB)
_KEY_BLOCK = 128                        # in-kernel key tile for the tanh energy
_TQ_CAP = 128                           # query tile cap (attention grid axis)
_TM_CAP, _TN_CAP, _TK_CAP = 256, 256, 512   # GEMM tile caps (v7x 64 MiB budget)


def _pick_tile(dim, cap, align):
    """Largest tile <= cap that divides `dim` and is `align`-aligned, else the full dim."""
    if dim <= cap:
        return dim
    t = (cap // align) * align
    while t >= align:
        if dim % t == 0:
            return t
        t -= align
    return dim


# ---------------------------------------------------------------------------
# Tiled dense kernel: out = epilogue(x @ w + b)
#   epilogue: optional ReLU, optional fused (residual add + LayerNorm).
# ---------------------------------------------------------------------------

def _dense_kernel(x_ref, w_ref, b_ref, *rest, activation, fuse_ln):
    if fuse_ln:
        res_ref, g_ref, beta_ref, o_ref, acc_ref = rest
    else:
        o_ref, acc_ref = rest

    @pl.when(pl.program_id(2) == 0)
    def _():
        acc_ref[...] = jnp.zeros_like(acc_ref)

    acc_ref[...] += jnp.dot(x_ref[...], w_ref[...],
                            preferred_element_type=jnp.float32)

    @pl.when(pl.program_id(2) == pl.num_programs(2) - 1)
    def _():
        r = acc_ref[...] + b_ref[...]
        if activation == "relu":
            r = jnp.maximum(r, 0.0)
        if fuse_ln:
            r = r + res_ref[...]
            mean = jnp.mean(r, axis=-1, keepdims=True)
            var = jnp.mean((r - mean) ** 2, axis=-1, keepdims=True)
            r = (r - mean) * jax.lax.rsqrt(var + 1e-5) * g_ref[...] + beta_ref[...]
        o_ref[...] = r.astype(o_ref.dtype)


def dense(x, w, b, *, activation=None, residual=None, ln_scale=None, ln_bias=None):
    """x:[M,K] @ w:[K,N] + b:[1,N]; optional ReLU; optional LayerNorm(residual + out)."""
    M, K = x.shape
    N = w.shape[1]
    fuse_ln = residual is not None

    tm = _pick_tile(M, _TM_CAP, 8)
    tk = _pick_tile(K, _TK_CAP, 128)
    # LayerNorm reduces over the whole feature dim -> keep N un-tiled when fused.
    tn = N if fuse_ln else _pick_tile(N, _TN_CAP, 128)

    in_specs = [
        pl.BlockSpec((tm, tk), lambda i, j, k: (i, k)),
        pl.BlockSpec((tk, tn), lambda i, j, k: (k, j)),
        pl.BlockSpec((1, tn), lambda i, j, k: (0, j)),
    ]
    args = [x, w, b]
    if fuse_ln:
        in_specs += [
            pl.BlockSpec((tm, tn), lambda i, j, k: (i, j)),
            pl.BlockSpec((1, tn), lambda i, j, k: (0, j)),
            pl.BlockSpec((1, tn), lambda i, j, k: (0, j)),
        ]
        args += [residual, ln_scale, ln_bias]

    kern = functools.partial(_dense_kernel, activation=activation, fuse_ln=fuse_ln)
    return pl.pallas_call(
        kern,
        grid=(M // tm, N // tn, K // tk),
        in_specs=in_specs,
        out_specs=pl.BlockSpec((tm, tn), lambda i, j, k: (i, j)),
        out_shape=jax.ShapeDtypeStruct((M, N), jnp.float32),
        scratch_shapes=[pltpu.VMEM((tm, tn), jnp.float32)],
        compiler_params=pltpu.CompilerParams(
            dimension_semantics=("parallel", "parallel", "arbitrary"),
            vmem_limit_bytes=_VMEM_LIMIT),
    )(*args)


# ---------------------------------------------------------------------------
# Additive-attention kernel: one batch element (all heads) per grid step.
# Inputs are already W1/W2-transformed (folded into the projection GEMM).
# ---------------------------------------------------------------------------

def _attn_kernel(tq_ref, tk_ref, v_ref, mask_ref, vw_ref, vb_ref, *out_refs,
                 n_heads, key_block):
    ctx_ref = out_refs[0]
    attn_out_ref = out_refs[1] if len(out_refs) > 1 else None

    TQ = tq_ref.shape[1]
    Lk = tk_ref.shape[1]
    H = tq_ref.shape[2]
    hd = H // n_heads

    mask = mask_ref[0, 0]                       # [TQ, Lk]
    vw = vw_ref[0]                              # [hd]
    vb = vb_ref[...]                            # [1, 1]

    for h in range(n_heads):
        lo, hi = h * hd, (h + 1) * hd
        tq_h = tq_ref[0, :, lo:hi]              # [TQ, hd]
        v_h = v_ref[0, :, lo:hi]                # [Lk, hd]

        # energy[i, j] = v . tanh(tq[i] + tk[j]) + v_bias, computed per key block
        # so the [TQ, kb, hd] tanh intermediate stays bounded for long sequences.
        e_blocks = []
        for s in range(0, Lk, key_block):
            stop = min(s + key_block, Lk)
            tk_hb = tk_ref[0, s:stop, lo:hi]                      # [kb, hd]
            t = jnp.tanh(tq_h[:, None, :] + tk_hb[None, :, :])    # [TQ, kb, hd]
            e_blocks.append(jnp.sum(t * vw[None, None, :], axis=-1))
        energy = e_blocks[0] if len(e_blocks) == 1 else jnp.concatenate(e_blocks, axis=-1)
        energy = energy + vb                                      # [TQ, Lk]
        energy = jnp.where(mask == 0.0, jnp.float32(-1e10), energy)

        # softmax over the key axis
        energy = energy - jnp.max(energy, axis=-1, keepdims=True)
        p = jnp.exp(energy)
        attn = p * pl.reciprocal(jnp.sum(p, axis=-1, keepdims=True), approx=True)

        # ctx heads concatenated on the lane axis -> output already [B, Lq, H]
        ctx_ref[0, :, lo:hi] = jnp.dot(attn, v_h,
                                       preferred_element_type=jnp.float32
                                       ).astype(ctx_ref.dtype)
        if attn_out_ref is not None:
            attn_out_ref[0, h] = attn.astype(attn_out_ref.dtype)


def additive_attention(tq, tk, v, mask, vw, vb, n_heads, return_attn):
    """tq:[B,Lq,H] (W1-transformed), tk:[B,Lk,H] (W2-transformed), v:[B,Lk,H],
    mask broadcastable to [B,1,Lq,Lk].  Returns (ctx:[B,Lq,H], attn or None)."""
    B, Lq, H = tq.shape
    Lk = tk.shape[1]
    hd = H // n_heads
    TQ = _pick_tile(Lq, _TQ_CAP, 8)

    # Mask is shared across heads: keep it [B,1,Lq,Lk] in HBM (no nH broadcast).
    mask_b = jnp.broadcast_to(mask.astype(jnp.float32), (B, 1, Lq, Lk))

    in_specs = [
        pl.BlockSpec((1, TQ, H), lambda b, q: (b, q, 0)),
        pl.BlockSpec((1, Lk, H), lambda b, q: (b, 0, 0)),
        pl.BlockSpec((1, Lk, H), lambda b, q: (b, 0, 0)),
        pl.BlockSpec((1, 1, TQ, Lk), lambda b, q: (b, 0, q, 0)),
        pl.BlockSpec((1, hd), lambda b, q: (0, 0)),
        pl.BlockSpec((1, 1), lambda b, q: (0, 0)),
    ]
    ctx_spec = pl.BlockSpec((1, TQ, H), lambda b, q: (b, q, 0))
    ctx_shape = jax.ShapeDtypeStruct((B, Lq, H), jnp.float32)

    if return_attn:
        out_specs = (ctx_spec,
                     pl.BlockSpec((1, n_heads, TQ, Lk), lambda b, q: (b, 0, q, 0)))
        out_shape = (ctx_shape,
                     jax.ShapeDtypeStruct((B, n_heads, Lq, Lk), jnp.float32))
    else:
        out_specs = ctx_spec
        out_shape = ctx_shape

    kern = functools.partial(_attn_kernel, n_heads=n_heads, key_block=_KEY_BLOCK)
    out = pl.pallas_call(
        kern,
        grid=(B, Lq // TQ),
        in_specs=in_specs,
        out_specs=out_specs,
        out_shape=out_shape,
        compiler_params=pltpu.CompilerParams(
            dimension_semantics=("parallel", "parallel"),
            vmem_limit_bytes=_VMEM_LIMIT),
    )(tq, tk, v, mask_b, vw, vb)

    if return_attn:
        return out
    return out, None


# ---------------------------------------------------------------------------
# Model forward (mirrors the PyTorch Decoder semantics, eval mode)
# ---------------------------------------------------------------------------

def decoder_layer(p, trg, enc_src, trg_mask, src_mask, n_heads, want_attn):
    B, T, H = trg.shape
    S = enc_src.shape[1]
    trg_flat = trg.reshape(B * T, H)

    # ---- self attention: fused Q|K|V projection, W1/W2 folded in ----
    sa = p['self_attn']
    qkv = dense(trg_flat, sa['w_qkv'], sa['b_qkv'])              # [B*T, 3H]
    tq = qkv[:, :H].reshape(B, T, H)
    tk = qkv[:, H:2 * H].reshape(B, T, H)
    v = qkv[:, 2 * H:].reshape(B, T, H)
    ctx, _ = additive_attention(tq, tk, v, trg_mask, sa['vw'], sa['vb'],
                                n_heads, return_attn=False)
    # fc_o + residual + LayerNorm fused into one GEMM epilogue
    trg_flat = dense(ctx.reshape(B * T, H), sa['wo'], sa['bo'],
                     residual=trg_flat, ln_scale=p['ln1_g'], ln_bias=p['ln1_b'])

    # ---- encoder attention: Q on trg, fused K|V on enc_src ----
    ea = p['enc_attn']
    tq = dense(trg_flat, ea['wq'], ea['bq']).reshape(B, T, H)
    kv = dense(enc_src.reshape(B * S, H), ea['w_kv'], ea['b_kv'])   # [B*S, 2H]
    tk = kv[:, :H].reshape(B, S, H)
    v = kv[:, H:].reshape(B, S, H)
    ctx, attention = additive_attention(tq, tk, v, src_mask, ea['vw'], ea['vb'],
                                        n_heads, return_attn=want_attn)
    trg_flat = dense(ctx.reshape(B * T, H), ea['wo'], ea['bo'],
                     residual=trg_flat, ln_scale=p['ln2_g'], ln_bias=p['ln2_b'])

    # ---- position-wise feed-forward: fc1+ReLU, then fc2+residual+LN fused ----
    h = dense(trg_flat, p['ff']['fw1'], p['ff']['fb1'], activation="relu")
    trg_flat = dense(h, p['ff']['fw2'], p['ff']['fb2'],
                     residual=trg_flat, ln_scale=p['ln3_g'], ln_bias=p['ln3_b'])

    return trg_flat.reshape(B, T, H), attention


def decoder_forward(params, trg_ids, enc_src, trg_mask, src_mask, n_heads):
    B, T = trg_ids.shape
    H = params['tok_emb'].shape[1]
    scale = jnp.sqrt(jnp.float32(H))

    # TODO(synk): embedding gather + positional add left in plain JAX (glue, not hot path).
    pos = jnp.arange(T)
    x = params['tok_emb'][trg_ids] * scale + params['pos_emb'][pos][None, :, :]
    # dropout: eval-mode identity

    n_layers = len(params['layers'])
    attention = None
    for li, lp in enumerate(params['layers']):
        # Only the last layer's enc-attention probabilities are returned by the
        # module, so only that kernel computes/stores them.
        x, attn = decoder_layer(lp, x, enc_src, trg_mask, src_mask, n_heads,
                                want_attn=(li == n_layers - 1))
        if attn is not None:
            attention = attn

    V = params['fc_out_w'].shape[1]
    out = dense(x.reshape(B * T, H), params['fc_out_w'], params['fc_out_b'])
    return out.reshape(B, T, V), attention


# ---------------------------------------------------------------------------
# Deterministic parameter init (+ one-time weight fusion)
# ---------------------------------------------------------------------------

def init_linear_params(key, din, dout):
    kw, kb = jax.random.split(key)
    w = jax.random.normal(kw, (din, dout), jnp.float32) * (1.0 / math.sqrt(din))
    b = jax.random.normal(kb, (1, dout), jnp.float32) * 0.02
    return w, b


def init_attention_params(key, H, n_heads):
    hd = H // n_heads
    ks = jax.random.split(key, 7)
    p = {}
    p['wq'], p['bq'] = init_linear_params(ks[0], H, H)
    p['wk'], p['bk'] = init_linear_params(ks[1], H, H)
    p['wv'], p['bv'] = init_linear_params(ks[2], H, H)
    p['wo'], p['bo'] = init_linear_params(ks[3], H, H)
    p['w1'], p['b1'] = init_linear_params(ks[4], hd, hd)
    p['w2'], p['b2'] = init_linear_params(ks[5], hd, hd)
    vw, vb = init_linear_params(ks[6], hd, 1)
    p['vw'] = vw.T                # [1, hd]
    p['vb'] = vb                  # [1, 1]
    return p


def fuse_attention_params(p, n_heads):
    """Fold per-head W1/W2 into the Q/K projections and fuse Q|K|V (and K|V) GEMMs."""
    eye = jnp.eye(n_heads, dtype=jnp.float32)
    bd1 = jnp.kron(eye, p['w1'])          # block-diagonal [H, H]
    bd2 = jnp.kron(eye, p['w2'])
    wq_f = p['wq'] @ bd1
    bq_f = p['bq'] @ bd1 + jnp.tile(p['b1'], (1, n_heads))
    wk_f = p['wk'] @ bd2
    bk_f = p['bk'] @ bd2 + jnp.tile(p['b2'], (1, n_heads))
    return {
        'w_qkv': jnp.concatenate([wq_f, wk_f, p['wv']], axis=1),   # [H, 3H]
        'b_qkv': jnp.concatenate([bq_f, bk_f, p['bv']], axis=1),   # [1, 3H]
        'wq': wq_f, 'bq': bq_f,
        'w_kv': jnp.concatenate([wk_f, p['wv']], axis=1),          # [H, 2H]
        'b_kv': jnp.concatenate([bk_f, p['bv']], axis=1),          # [1, 2H]
        'wo': p['wo'], 'bo': p['bo'],
        'vw': p['vw'], 'vb': p['vb'],
    }


def init_decoder_params(key, output_dim, H, n_layers, n_heads, pf_dim, max_length=500):
    keys = jax.random.split(key, 3 + n_layers)
    params = {
        'tok_emb': jax.random.normal(keys[0], (output_dim, H), jnp.float32) * 0.1,
        'pos_emb': jax.random.normal(keys[1], (max_length, H), jnp.float32) * 0.1,
    }
    params['fc_out_w'], params['fc_out_b'] = init_linear_params(keys[2], H, output_dim)

    layers = []
    for i in range(n_layers):
        lk = jax.random.split(keys[3 + i], 4)
        lp = {
            'self_attn': fuse_attention_params(
                init_attention_params(lk[0], H, n_heads), n_heads),
            'enc_attn': fuse_attention_params(
                init_attention_params(lk[1], H, n_heads), n_heads),
            'ln1_g': jnp.ones((1, H), jnp.float32), 'ln1_b': jnp.zeros((1, H), jnp.float32),
            'ln2_g': jnp.ones((1, H), jnp.float32), 'ln2_b': jnp.zeros((1, H), jnp.float32),
            'ln3_g': jnp.ones((1, H), jnp.float32), 'ln3_b': jnp.zeros((1, H), jnp.float32),
            'ff': {},
        }
        lp['ff']['fw1'], lp['ff']['fb1'] = init_linear_params(lk[2], H, pf_dim)
        lp['ff']['fw2'], lp['ff']['fb2'] = init_linear_params(lk[3], pf_dim, H)
        layers.append(lp)
    params['layers'] = layers
    return params


# ---------------------------------------------------------------------------
# Demo
# ---------------------------------------------------------------------------

if __name__ == "__main__":
    B, T, S = 2, 8, 10            # batch, target len, source len
    H, N_HEADS, PF_DIM = 32, 4, 64
    OUTPUT_DIM, N_LAYERS = 50, 2

    root = jax.random.PRNGKey(0)
    kp, kt, ke = jax.random.split(root, 3)

    params = init_decoder_params(kp, OUTPUT_DIM, H, N_LAYERS, N_HEADS, PF_DIM)

    trg = jax.random.randint(kt, (B, T), 0, OUTPUT_DIM, dtype=jnp.int32)
    enc_src = jax.random.normal(ke, (B, S, H), jnp.float32)

    # causal target mask [B,1,T,T] and all-ones source mask [B,1,1,S]
    trg_mask = jnp.broadcast_to(jnp.tril(jnp.ones((T, T), jnp.float32))[None, None],
                                (B, 1, T, T))
    src_mask = jnp.ones((B, 1, 1, S), jnp.float32)

    fwd = jax.jit(functools.partial(decoder_forward, n_heads=N_HEADS))
    out, attn = fwd(params, trg, enc_src, trg_mask, src_mask)
    jax.block_until_ready((out, attn))

    assert out.shape == (B, T, OUTPUT_DIM)
    assert attn.shape == (B, N_HEADS, T, S)
    assert bool(jnp.all(jnp.isfinite(out)))
    assert bool(jnp.all(jnp.isfinite(attn)))
    print("KERNEL_OK")
</pallas_src>

<mosaic_0001>
module attributes {stable_mosaic.version = 11 : i64} {
  func.func @_attn_kernel(%arg0: i32, %arg1: i32, %arg2: memref<1x8x32xf32, #tpu.memory_space<vmem>>, %arg3: memref<1x8x32xf32, #tpu.memory_space<vmem>>, %arg4: memref<1x8x32xf32, #tpu.memory_space<vmem>>, %arg5: memref<1x1x8x8xf32, #tpu.memory_space<vmem>>, %arg6: memref<1x8xf32, #tpu.memory_space<vmem>>, %arg7: memref<1x1xf32, #tpu.memory_space<vmem>>, %arg8: memref<1x8x32xf32, #tpu.memory_space<vmem>>) attributes {dimension_semantics = [#tpu.dimension_semantics<parallel>, #tpu.dimension_semantics<parallel>], iteration_bounds = array<i64: 2, 1>, scalar_prefetch = 0 : i64, scratch_operands = 0 : i64, tpu.core_type = #tpu.core_type<tc>, window_params = [{transform_indices = @transform_0, window_bounds = array<i64: 1, 8, 32>}, {transform_indices = @transform_1, window_bounds = array<i64: 1, 8, 32>}, {transform_indices = @transform_2, window_bounds = array<i64: 1, 8, 32>}, {transform_indices = @transform_3, window_bounds = array<i64: 1, 1, 8, 8>}, {pipeline_mode = #tpu.pipeline_mode<synchronous>, transform_indices = @transform_4, window_bounds = array<i64: 1, 8>}, {pipeline_mode = #tpu.pipeline_mode<synchronous>, transform_indices = @transform_5, window_bounds = array<i64: 1, 1>}, {transform_indices = @transform_6, window_bounds = array<i64: 1, 8, 32>}]} {
    %c0 = arith.constant 0 : index
    %c0_0 = arith.constant 0 : index
    %c0_1 = arith.constant 0 : index
    %c0_2 = arith.constant 0 : index
    %0 = vector.load %arg5[%c0, %c0_0, %c0_1, %c0_2] : memref<1x1x8x8xf32, #tpu.memory_space<vmem>>, vector<1x1x8x8xf32>
    %1 = vector.shape_cast %0 : vector<1x1x8x8xf32> to vector<8x8xf32>
    %c0_3 = arith.constant 0 : index
    %c0_4 = arith.constant 0 : index
    %2 = vector.load %arg6[%c0_3, %c0_4] : memref<1x8xf32, #tpu.memory_space<vmem>>, vector<1x8xf32>
    %3 = vector.shape_cast %2 : vector<1x8xf32> to vector<8xf32>
    %c0_5 = arith.constant 0 : index
    %c0_6 = arith.constant 0 : index
    %4 = vector.load %arg7[%c0_5, %c0_6] : memref<1x1xf32, #tpu.memory_space<vmem>>, vector<1x1xf32>
    %c0_7 = arith.constant 0 : index
    %c0_8 = arith.constant 0 : index
    %c0_9 = arith.constant 0 : index
    %5 = vector.load %arg2[%c0_7, %c0_8, %c0_9] : memref<1x8x32xf32, #tpu.memory_space<vmem>>, vector<1x8x8xf32>
    %6 = vector.shape_cast %5 : vector<1x8x8xf32> to vector<8x8xf32>
    %c0_10 = arith.constant 0 : index
    %c0_11 = arith.constant 0 : index
    %c0_12 = arith.constant 0 : index
    %7 = vector.load %arg4[%c0_10, %c0_11, %c0_12] : memref<1x8x32xf32, #tpu.memory_space<vmem>>, vector<1x8x8xf32>
    %8 = vector.shape_cast %7 : vector<1x8x8xf32> to vector<8x8xf32>
    %c0_13 = arith.constant 0 : index
    %c0_14 = arith.constant 0 : index
    %c0_15 = arith.constant 0 : index
    %9 = vector.load %arg3[%c0_13, %c0_14, %c0_15] : memref<1x8x32xf32, #tpu.memory_space<vmem>>, vector<1x8x8xf32>
    %10 = vector.shape_cast %9 : vector<1x8x8xf32> to vector<8x8xf32>
    %11 = vector.shape_cast %6 : vector<8x8xf32> to vector<8x1x8xf32>
    %12 = vector.shape_cast %10 : vector<8x8xf32> to vector<1x8x8xf32>
    %13 = vector.broadcast %11 : vector<8x1x8xf32> to vector<8x8x8xf32>
    %14 = vector.broadcast %12 : vector<1x8x8xf32> to vector<8x8x8xf32>
    %15 = arith.addf %13, %14 : vector<8x8x8xf32>
    %16 = math.tanh %15 : vector<8x8x8xf32>
    %17 = vector.shape_cast %3 : vector<8xf32> to vector<1x1x8xf32>
    %18 = vector.broadcast %17 : vector<1x1x8xf32> to vector<8x8x8xf32>
    %19 = arith.mulf %16, %18 : vector<8x8x8xf32>
    %cst = arith.constant dense<0.000000e+00> : vector<8x8xf32>
    %20 = vector.multi_reduction <add>, %19, %cst [2] : vector<8x8x8xf32> to vector<8x8xf32>
    %21 = vector.broadcast %4 : vector<1x1xf32> to vector<8x8xf32>
    %22 = arith.addf %20, %21 : vector<8x8xf32>
    %cst_16 = arith.constant 0.000000e+00 : f32
    %23 = vector.broadcast %cst_16 : f32 to vector<8x8xf32>
    %24 = arith.cmpf oeq, %1, %23 : vector<8x8xf32>
    %cst_17 = arith.constant -1.000000e+10 : f32
    %25 = vector.broadcast %cst_17 : f32 to vector<8x8xf32>
    %26 = arith.select %24, %25, %22 : vector<8x8xi1>, vector<8x8xf32>
    %cst_18 = arith.constant dense<0xFF800000> : vector<8xf32>
    %27 = vector.multi_reduction <maximumf>, %26, %cst_18 [1] : vector<8x8xf32> to vector<8xf32>
    %28 = vector.shape_cast %27 : vector<8xf32> to vector<8x1xf32>
    %29 = vector.broadcast %28 : vector<8x1xf32> to vector<8x8xf32>
    %30 = arith.subf %26, %29 : vector<8x8xf32>
    %31 = math.exp %30 : vector<8x8xf32>
    %cst_19 = arith.constant dense<0.000000e+00> : vector<8xf32>
    %32 = vector.multi_reduction <add>, %31, %cst_19 [1] : vector<8x8xf32> to vector<8xf32>
    %33 = vector.shape_cast %32 : vector<8xf32> to vector<8x1xf32>
    %34 = tpu.reciprocal %33 {approx = true} : vector<8x1xf32> -> vector<8x1xf32>
    %35 = vector.broadcast %34 : vector<8x1xf32> to vector<8x8xf32>
    %36 = arith.mulf %31, %35 : vector<8x8xf32>
    %cst_20 = arith.constant dense<0.000000e+00> : vector<8x8xf32>
    %37 = tpu.matmul %36, %8, %cst_20 {dimension_numbers = #tpu.dot_dimension_numbers<[1], [0], [0], [1], [0, 0, 1, 1], [], []>} : vector<8x8xf32>, vector<8x8xf32>, vector<8x8xf32> -> vector<8x8xf32>
    %c0_21 = arith.constant 0 : index
    %c0_22 = arith.constant 0 : index
    %c0_23 = arith.constant 0 : index
    %38 = vector.load %arg8[%c0_21, %c0_22, %c0_23] : memref<1x8x32xf32, #tpu.memory_space<vmem>>, vector<1x8x8xf32>
    %39 = vector.shape_cast %38 : vector<1x8x8xf32> to vector<8x8xf32>
    %40 = vector.shape_cast %37 : vector<8x8xf32> to vector<1x8x8xf32>
    tpu.vector_store %arg8[%c0_21, %c0_22, %c0_23], %40 {strides = array<i32>} : memref<1x8x32xf32, #tpu.memory_space<vmem>>, vector<1x8x8xf32>,
    %c0_24 = arith.constant 0 : index
    %c0_25 = arith.constant 0 : index
    %c8 = arith.constant 8 : index
    %41 = vector.load %arg2[%c0_24, %c0_25, %c8] : memref<1x8x32xf32, #tpu.memory_space<vmem>>, vector<1x8x8xf32>
    %42 = vector.shape_cast %41 : vector<1x8x8xf32> to vector<8x8xf32>
    %c0_26 = arith.constant 0 : index
    %c0_27 = arith.constant 0 : index
    %c8_28 = arith.constant 8 : index
    %43 = vector.load %arg4[%c0_26, %c0_27, %c8_28] : memref<1x8x32xf32, #tpu.memory_space<vmem>>, vector<1x8x8xf32>
    %44 = vector.shape_cast %43 : vector<1x8x8xf32> to vector<8x8xf32>
    %c0_29 = arith.constant 0 : index
    %c0_30 = arith.constant 0 : index
    %c8_31 = arith.constant 8 : index
    %45 = vector.load %arg3[%c0_29, %c0_30, %c8_31] : memref<1x8x32xf32, #tpu.memory_space<vmem>>, vector<1x8x8xf32>
    %46 = vector.shape_cast %45 : vector<1x8x8xf32> to vector<8x8xf32>
    %47 = vector.shape_cast %42 : vector<8x8xf32> to vector<8x1x8xf32>
    %48 = vector.shape_cast %46 : vector<8x8xf32> to vector<1x8x8xf32>
    %49 = vector.broadcast %47 : vector<8x1x8xf32> to vector<8x8x8xf32>
    %50 = vector.broadcast %48 : vector<1x8x8xf32> to vector<8x8x8xf32>
    %51 = arith.addf %49, %50 : vector<8x8x8xf32>
    %52 = math.tanh %51 : vector<8x8x8xf32>
    %53 = vector.shape_cast %3 : vector<8xf32> to vector<1x1x8xf32>
    %54 = vector.broadcast %53 : vector<1x1x8xf32> to vector<8x8x8xf32>
    %55 = arith.mulf %52, %54 : vector<8x8x8xf32>
    %cst_32 = arith.constant dense<0.000000e+00> : vector<8x8xf32>
    %56 = vector.multi_reduction <add>, %55, %cst_32 [2] : vector<8x8x8xf32> to vector<8x8xf32>
    %57 = vector.broadcast %4 : vector<1x1xf32> to vector<8x8xf32>
    %58 = arith.addf %56, %57 : vector<8x8xf32>
    %cst_33 = arith.constant 0.000000e+00 : f32
    %59 = vector.broadcast %cst_33 : f32 to vector<8x8xf32>
    %60 = arith.cmpf oeq, %1, %59 : vector<8x8xf32>
    %cst_34 = arith.constant -1.000000e+10 : f32
    %61 = vector.broadcast %cst_34 : f32 to vector<8x8xf32>
    %62 = arith.select %60, %61, %58 : vector<8x8xi1>, vector<8x8xf32>
    %cst_35 = arith.constant dense<0xFF800000> : vector<8xf32>
    %63 = vector.multi_reduction <maximumf>, %62, %cst_35 [1] : vector<8x8xf32> to vector<8xf32>
    %64 = vector.shape_cast %63 : vector<8xf32> to vector<8x1xf32>
    %65 = vector.broadcast %64 : vector<8x1xf32> to vector<8x8xf32>
    %66 = arith.subf %62, %65 : vector<8x8xf32>
    %67 = math.exp %66 : vector<8x8xf32>
    %cst_36 = arith.constant dense<0.000000e+00> : vector<8xf32>
    %68 = vector.multi_reduction <add>, %67, %cst_36 [1] : vector<8x8xf32> to vector<8xf32>
    %69 = vector.shape_cast %68 : vector<8xf32> to vector<8x1xf32>
    %70 = tpu.reciprocal %69 {approx = true} : vector<8x1xf32> -> vector<8x1xf32>
    %71 = vector.broadcast %70 : vector<8x1xf32> to vector<8x8xf32>
    %72 = arith.mulf %67, %71 : vector<8x8xf32>
    %cst_37 = arith.constant dense<0.000000e+00> : vector<8x8xf32>
    %73 = tpu.matmul %72, %44, %cst_37 {dimension_numbers = #tpu.dot_dimension_numbers<[1], [0], [0], [1], [0, 0, 1, 1], [], []>} : vector<8x8xf32>, vector<8x8xf32>, vector<8x8xf32> -> vector<8x8xf32>
    %c0_38 = arith.constant 0 : index
    %c0_39 = arith.constant 0 : index
    %c8_40 = arith.constant 8 : index
    %74 = vector.load %arg8[%c0_38, %c0_39, %c8_40] : memref<1x8x32xf32, #tpu.memory_space<vmem>>, vector<1x8x8xf32>
    %75 = vector.shape_cast %74 : vector<1x8x8xf32> to vector<8x8xf32>
    %76 = vector.shape_cast %73 : vector<8x8xf32> to vector<1x8x8xf32>
    tpu.vector_store %arg8[%c0_38, %c0_39, %c8_40], %76 {strides = array<i32>} : memref<1x8x32xf32, #tpu.memory_space<vmem>>, vector<1x8x8xf32>,
    %c0_41 = arith.constant 0 : index
    %c0_42 = arith.constant 0 : index
    %c16 = arith.constant 16 : index
    %77 = vector.load %arg2[%c0_41, %c0_42, %c16] : memref<1x8x32xf32, #tpu.memory_space<vmem>>, vector<1x8x8xf32>
    %78 = vector.shape_cast %77 : vector<1x8x8xf32> to vector<8x8xf32>
    %c0_43 = arith.constant 0 : index
    %c0_44 = arith.constant 0 : index
    %c16_45 = arith.constant 16 : index
    %79 = vector.load %arg4[%c0_43, %c0_44, %c16_45] : memref<1x8x32xf32, #tpu.memory_space<vmem>>, vector<1x8x8xf32>
    %80 = vector.shape_cast %79 : vector<1x8x8xf32> to vector<8x8xf32>
    %c0_46 = arith.constant 0 : index
    %c0_47 = arith.constant 0 : index
    %c16_48 = arith.constant 16 : index
    %81 = vector.load %arg3[%c0_46, %c0_47, %c16_48] : memref<1x8x32xf32, #tpu.memory_space<vmem>>, vector<1x8x8xf32>
    %82 = vector.shape_cast %81 : vector<1x8x8xf32> to vector<8x8xf32>
    %83 = vector.shape_cast %78 : vector<8x8xf32> to vector<8x1x8xf32>
    %84 = vector.shape_cast %82 : vector<8x8xf32> to vector<1x8x8xf32>
    %85 = vector.broadcast %83 : vector<8x1x8xf32> to vector<8x8x8xf32>
    %86 = vector.broadcast %84 : vector<1x8x8xf32> to vector<8x8x8xf32>
    %87 = arith.addf %85, %86 : vector<8x8x8xf32>
    %88 = math.tanh %87 : vector<8x8x8xf32>
    %89 = vector.shape_cast %3 : vector<8xf32> to vector<1x1x8xf32>
    %90 = vector.broadcast %89 : vector<1x1x8xf32> to vector<8x8x8xf32>
    %91 = arith.mulf %88, %90 : vector<8x8x8xf32>
    %cst_49 = arith.constant dense<0.000000e+00> : vector<8x8xf32>
    %92 = vector.multi_reduction <add>, %91, %cst_49 [2] : vector<8x8x8xf32> to vector<8x8xf32>
    %93 = vector.broadcast %4 : vector<1x1xf32> to vector<8x8xf32>
    %94 = arith.addf %92, %93 : vector<8x8xf32>
    %cst_50 = arith.constant 0.000000e+00 : f32
    %95 = vector.broadcast %cst_50 : f32 to vector<8x8xf32>
    %96 = arith.cmpf oeq, %1, %95 : vector<8x8xf32>
    %cst_51 = arith.constant -1.000000e+10 : f32
    %97 = vector.broadcast %cst_51 : f32 to vector<8x8xf32>
    %98 = arith.select %96, %97, %94 : vector<8x8xi1>, vector<8x8xf32>
    %cst_52 = arith.constant dense<0xFF800000> : vector<8xf32>
    %99 = vector.multi_reduction <maximumf>, %98, %cst_52 [1] : vector<8x8xf32> to vector<8xf32>
    %100 = vector.shape_cast %99 : vector<8xf32> to vector<8x1xf32>
    %101 = vector.broadcast %100 : vector<8x1xf32> to vector<8x8xf32>
    %102 = arith.subf %98, %101 : vector<8x8xf32>
    %103 = math.exp %102 : vector<8x8xf32>
    %cst_53 = arith.constant dense<0.000000e+00> : vector<8xf32>
    %104 = vector.multi_reduction <add>, %103, %cst_53 [1] : vector<8x8xf32> to vector<8xf32>
    %105 = vector.shape_cast %104 : vector<8xf32> to vector<8x1xf32>
    %106 = tpu.reciprocal %105 {approx = true} : vector<8x1xf32> -> vector<8x1xf32>
    %107 = vector.broadcast %106 : vector<8x1xf32> to vector<8x8xf32>
    %108 = arith.mulf %103, %107 : vector<8x8xf32>
    %cst_54 = arith.constant dense<0.000000e+00> : vector<8x8xf32>
    %109 = tpu.matmul %108, %80, %cst_54 {dimension_numbers = #tpu.dot_dimension_numbers<[1], [0], [0], [1], [0, 0, 1, 1], [], []>} : vector<8x8xf32>, vector<8x8xf32>, vector<8x8xf32> -> vector<8x8xf32>
    %c0_55 = arith.constant 0 : index
    %c0_56 = arith.constant 0 : index
    %c16_57 = arith.constant 16 : index
    %110 = vector.load %arg8[%c0_55, %c0_56, %c16_57] : memref<1x8x32xf32, #tpu.memory_space<vmem>>, vector<1x8x8xf32>
    %111 = vector.shape_cast %110 : vector<1x8x8xf32> to vector<8x8xf32>
    %112 = vector.shape_cast %109 : vector<8x8xf32> to vector<1x8x8xf32>
    tpu.vector_store %arg8[%c0_55, %c0_56, %c16_57], %112 {strides = array<i32>} : memref<1x8x32xf32, #tpu.memory_space<vmem>>, vector<1x8x8xf32>,
    %c0_58 = arith.constant 0 : index
    %c0_59 = arith.constant 0 : index
    %c24 = arith.constant 24 : index
    %113 = vector.load %arg2[%c0_58, %c0_59, %c24] : memref<1x8x32xf32, #tpu.memory_space<vmem>>, vector<1x8x8xf32>
    %114 = vector.shape_cast %113 : vector<1x8x8xf32> to vector<8x8xf32>
    %c0_60 = arith.constant 0 : index
    %c0_61 = arith.constant 0 : index
    %c24_62 = arith.constant 24 : index
    %115 = vector.load %arg4[%c0_60, %c0_61, %c24_62] : memref<1x8x32xf32, #tpu.memory_space<vmem>>, vector<1x8x8xf32>
    %116 = vector.shape_cast %115 : vector<1x8x8xf32> to vector<8x8xf32>
    %c0_63 = arith.constant 0 : index
    %c0_64 = arith.constant 0 : index
    %c24_65 = arith.constant 24 : index
    %117 = vector.load %arg3[%c0_63, %c0_64, %c24_65] : memref<1x8x32xf32, #tpu.memory_space<vmem>>, vector<1x8x8xf32>
    %118 = vector.shape_cast %117 : vector<1x8x8xf32> to vector<8x8xf32>
    %119 = vector.shape_cast %114 : vector<8x8xf32> to vector<8x1x8xf32>
    %120 = vector.shape_cast %118 : vector<8x8xf32> to vector<1x8x8xf32>
    %121 = vector.broadcast %119 : vector<8x1x8xf32> to vector<8x8x8xf32>
    %122 = vector.broadcast %120 : vector<1x8x8xf32> to vector<8x8x8xf32>
    %123 = arith.addf %121, %122 : vector<8x8x8xf32>
    %124 = math.tanh %123 : vector<8x8x8xf32>
    %125 = vector.shape_cast %3 : vector<8xf32> to vector<1x1x8xf32>
    %126 = vector.broadcast %125 : vector<1x1x8xf32> to vector<8x8x8xf32>
    %127 = arith.mulf %124, %126 : vector<8x8x8xf32>
    %cst_66 = arith.constant dense<0.000000e+00> : vector<8x8xf32>
    %128 = vector.multi_reduction <add>, %127, %cst_66 [2] : vector<8x8x8xf32> to vector<8x8xf32>
    %129 = vector.broadcast %4 : vector<1x1xf32> to vector<8x8xf32>
    %130 = arith.addf %128, %129 : vector<8x8xf32>
    %cst_67 = arith.constant 0.000000e+00 : f32
    %131 = vector.broadcast %cst_67 : f32 to vector<8x8xf32>
    %132 = arith.cmpf oeq, %1, %131 : vector<8x8xf32>
    %cst_68 = arith.constant -1.000000e+10 : f32
    %133 = vector.broadcast %cst_68 : f32 to vector<8x8xf32>
    %134 = arith.select %132, %133, %130 : vector<8x8xi1>, vector<8x8xf32>
    %cst_69 = arith.constant dense<0xFF800000> : vector<8xf32>
    %135 = vector.multi_reduction <maximumf>, %134, %cst_69 [1] : vector<8x8xf32> to vector<8xf32>
    %136 = vector.shape_cast %135 : vector<8xf32> to vector<8x1xf32>
    %137 = vector.broadcast %136 : vector<8x1xf32> to vector<8x8xf32>
    %138 = arith.subf %134, %137 : vector<8x8xf32>
    %139 = math.exp %138 : vector<8x8xf32>
    %cst_70 = arith.constant dense<0.000000e+00> : vector<8xf32>
    %140 = vector.multi_reduction <add>, %139, %cst_70 [1] : vector<8x8xf32> to vector<8xf32>
    %141 = vector.shape_cast %140 : vector<8xf32> to vector<8x1xf32>
    %142 = tpu.reciprocal %141 {approx = true} : vector<8x1xf32> -> vector<8x1xf32>
    %143 = vector.broadcast %142 : vector<8x1xf32> to vector<8x8xf32>
    %144 = arith.mulf %139, %143 : vector<8x8xf32>
    %cst_71 = arith.constant dense<0.000000e+00> : vector<8x8xf32>
    %145 = tpu.matmul %144, %116, %cst_71 {dimension_numbers = #tpu.dot_dimension_numbers<[1], [0], [0], [1], [0, 0, 1, 1], [], []>} : vector<8x8xf32>, vector<8x8xf32>, vector<8x8xf32> -> vector<8x8xf32>
    %c0_72 = arith.constant 0 : index
    %c0_73 = arith.constant 0 : index
    %c24_74 = arith.constant 24 : index
    %146 = vector.load %arg8[%c0_72, %c0_73, %c24_74] : memref<1x8x32xf32, #tpu.memory_space<vmem>>, vector<1x8x8xf32>
    %147 = vector.shape_cast %146 : vector<1x8x8xf32> to vector<8x8xf32>
    %148 = vector.shape_cast %145 : vector<8x8xf32> to vector<1x8x8xf32>
    tpu.vector_store %arg8[%c0_72, %c0_73, %c24_74], %148 {strides = array<i32>} : memref<1x8x32xf32, #tpu.memory_space<vmem>>, vector<1x8x8xf32>,
    return
  }
  func.func @transform_0(%arg0: i32, %arg1: i32) -> (i32, i32, i32) {
    %c0_i32 = arith.constant 0 : i32
    %c0_i32_0 = arith.constant 0 : i32
    return %arg0, %arg1, %c0_i32 : i32, i32, i32
  }
  func.func @transform_1(%arg0: i32, %arg1: i32) -> (i32, i32, i32) {
    %c0_i32 = arith.constant 0 : i32
    %c0_i32_0 = arith.constant 0 : i32
    %c0_i32_1 = arith.constant 0 : i32
    return %arg0, %c0_i32, %c0_i32_0 : i32, i32, i32
  }
  func.func @transform_2(%arg0: i32, %arg1: i32) -> (i32, i32, i32) {
    %c0_i32 = arith.constant 0 : i32
    %c0_i32_0 = arith.constant 0 : i32
    %c0_i32_1 = arith.constant 0 : i32
    return %arg0, %c0_i32, %c0_i32_0 : i32, i32, i32
  }
  func.func @transform_3(%arg0: i32, %arg1: i32) -> (i32, i32, i32, i32) {
    %c0_i32 = arith.constant 0 : i32
    %c0_i32_0 = arith.constant 0 : i32
    %c0_i32_1 = arith.constant 0 : i32
    return %arg0, %c0_i32, %arg1, %c0_i32_0 : i32, i32, i32, i32
  }
  func.func @transform_4(%arg0: i32, %arg1: i32) -> (i32, i32) {
    %c0_i32 = arith.constant 0 : i32
    %c0_i32_0 = arith.constant 0 : i32
    %c0_i32_1 = arith.constant 0 : i32
    return %c0_i32, %c0_i32_0 : i32, i32
  }
  func.func @transform_5(%arg0: i32, %arg1: i32) -> (i32, i32) {
    %c0_i32 = arith.constant 0 : i32
    %c0_i32_0 = arith.constant 0 : i32
    %c0_i32_1 = arith.constant 0 : i32
    return %c0_i32, %c0_i32_0 : i32, i32
  }
  func.func @transform_6(%arg0: i32, %arg1: i32) -> (i32, i32, i32) {
    %c0_i32 = arith.constant 0 : i32
    %c0_i32_0 = arith.constant 0 : i32
    return %arg0, %arg1, %c0_i32 : i32, i32, i32
  }
}

module attributes {stable_mosaic.version = 11 : i64} {
  func.func @_dense_kernel(%arg0: i32, %arg1: i32, %arg2: i32, %arg3: memref<16x32xf32, #tpu.memory_space<vmem>>, %arg4: memref<32x96xf32, #tpu.memory_space<vmem>>, %arg5: memref<1x96xf32, #tpu.memory_space<vmem>>, %arg6: memref<16x96xf32, #tpu.memory_space<vmem>>, %arg7: memref<16x96xf32, #tpu.memory_space<vmem>>) attributes {dimension_semantics = [#tpu.dimension_semantics<parallel>, #tpu.dimension_semantics<parallel>, #tpu.dimension_semantics<arbitrary>], iteration_bounds = array<i64: 1, 1, 1>, scalar_prefetch = 0 : i64, scratch_operands = 1 : i64, tpu.core_type = #tpu.core_type<tc>, window_params = [{transform_indices = @transform_0, window_bounds = array<i64: 16, 32>}, {transform_indices = @transform_1, window_bounds = array<i64: 32, 96>}, {transform_indices = @transform_2, window_bounds = array<i64: 1, 96>}, {transform_indices = @transform_3, window_bounds = array<i64: 16, 96>}]} {
    %c0_i32 = arith.constant 0 : i32
    %0 = arith.cmpi eq, %arg2, %c0_i32 : i32
    %1 = arith.extui %0 : i1 to i32
    %c0_i32_0 = arith.constant 0 : i32
    %2 = arith.cmpi ne, %1, %c0_i32_0 : i32
    scf.if %2 {
      %cst_10 = arith.constant 0.000000e+00 : f32
      %12 = vector.broadcast %cst_10 : f32 to vector<16x96xf32>
      %c0_11 = arith.constant 0 : index
      %c0_12 = arith.constant 0 : index
      %13 = vector.load %arg7[%c0_11, %c0_12] : memref<16x96xf32, #tpu.memory_space<vmem>>, vector<16x96xf32>
      tpu.vector_store %arg7[%c0_11, %c0_12], %12 {strides = array<i32>} : memref<16x96xf32, #tpu.memory_space<vmem>>, vector<16x96xf32>,
    } else {
    }
    %c0 = arith.constant 0 : index
    %c0_1 = arith.constant 0 : index
    %3 = vector.load %arg7[%c0, %c0_1] : memref<16x96xf32, #tpu.memory_space<vmem>>, vector<16x96xf32>
    %c0_2 = arith.constant 0 : index
    %c0_3 = arith.constant 0 : index
    %4 = vector.load %arg3[%c0_2, %c0_3] : memref<16x32xf32, #tpu.memory_space<vmem>>, vector<16x32xf32>
    %c0_4 = arith.constant 0 : index
    %c0_5 = arith.constant 0 : index
    %5 = vector.load %arg4[%c0_4, %c0_5] : memref<32x96xf32, #tpu.memory_space<vmem>>, vector<32x96xf32>
    %cst = arith.constant dense<0.000000e+00> : vector<16x96xf32>
    %6 = tpu.matmul %4, %5, %cst {dimension_numbers = #tpu.dot_dimension_numbers<[1], [0], [0], [1], [0, 0, 1, 1], [], []>} : vector<16x32xf32>, vector<32x96xf32>, vector<16x96xf32> -> vector<16x96xf32>
    %7 = arith.addf %3, %6 : vector<16x96xf32>
    %c0_6 = arith.constant 0 : index
    %c0_7 = arith.constant 0 : index
    %8 = vector.load %arg7[%c0_6, %c0_7] : memref<16x96xf32, #tpu.memory_space<vmem>>, vector<16x96xf32>
    tpu.vector_store %arg7[%c0_6, %c0_7], %7 {strides = array<i32>} : memref<16x96xf32, #tpu.memory_space<vmem>>, vector<16x96xf32>,
    %c0_i32_8 = arith.constant 0 : i32
    %9 = arith.cmpi eq, %arg2, %c0_i32_8 : i32
    %10 = arith.extui %9 : i1 to i32
    %c0_i32_9 = arith.constant 0 : i32
    %11 = arith.cmpi ne, %10, %c0_i32_9 : i32
    scf.if %11 {
      %c0_10 = arith.constant 0 : index
      %c0_11 = arith.constant 0 : index
      %12 = vector.load %arg7[%c0_10, %c0_11] : memref<16x96xf32, #tpu.memory_space<vmem>>, vector<16x96xf32>
      %c0_12 = arith.constant 0 : index
      %c0_13 = arith.constant 0 : index
      %13 = vector.load %arg5[%c0_12, %c0_13] : memref<1x96xf32, #tpu.memory_space<vmem>>, vector<1x96xf32>
      %14 = vector.broadcast %13 : vector<1x96xf32> to vector<16x96xf32>
      %15 = arith.addf %12, %14 : vector<16x96xf32>
      %c0_14 = arith.constant 0 : index
      %c0_15 = arith.constant 0 : index
      %16 = vector.load %arg6[%c0_14, %c0_15] : memref<16x96xf32, #tpu.memory_space<vmem>>, vector<16x96xf32>
      tpu.vector_store %arg6[%c0_14, %c0_15], %15 {strides = array<i32>} : memref<16x96xf32, #tpu.memory_space<vmem>>, vector<16x96xf32>,
    } else {
    }
    return
  }
  func.func @transform_0(%arg0: i32, %arg1: i32, %arg2: i32) -> (i32, i32) {
    %c0_i32 = arith.constant 0 : i32
    return %arg0, %arg2 : i32, i32
  }
  func.func @transform_1(%arg0: i32, %arg1: i32, %arg2: i32) -> (i32, i32) {
    %c0_i32 = arith.constant 0 : i32
    return %arg2, %arg1 : i32, i32
  }
  func.func @transform_2(%arg0: i32, %arg1: i32, %arg2: i32) -> (i32, i32) {
    %c0_i32 = arith.constant 0 : i32
    %c0_i32_0 = arith.constant 0 : i32
    return %c0_i32, %arg1 : i32, i32
  }
  func.func @transform_3(%arg0: i32, %arg1: i32, %arg2: i32) -> (i32, i32) {
    %c0_i32 = arith.constant 0 : i32
    return %arg0, %arg1 : i32, i32
  }
}

module attributes {stable_mosaic.version = 11 : i64} {
  func.func @_dense_kernel(%arg0: i32, %arg1: i32, %arg2: i32, %arg3: memref<16x32xf32, #tpu.memory_space<vmem>>, %arg4: memref<32x32xf32, #tpu.memory_space<vmem>>, %arg5: memref<1x32xf32, #tpu.memory_space<vmem>>, %arg6: memref<16x32xf32, #tpu.memory_space<vmem>>, %arg7: memref<16x32xf32, #tpu.memory_space<vmem>>) attributes {dimension_semantics = [#tpu.dimension_semantics<parallel>, #tpu.dimension_semantics<parallel>, #tpu.dimension_semantics<arbitrary>], iteration_bounds = array<i64: 1, 1, 1>, scalar_prefetch = 0 : i64, scratch_operands = 1 : i64, tpu.core_type = #tpu.core_type<tc>, window_params = [{transform_indices = @transform_0, window_bounds = array<i64: 16, 32>}, {transform_indices = @transform_1, window_bounds = array<i64: 32, 32>}, {transform_indices = @transform_2, window_bounds = array<i64: 1, 32>}, {transform_indices = @transform_3, window_bounds = array<i64: 16, 32>}]} {
    %c0_i32 = arith.constant 0 : i32
    %0 = arith.cmpi eq, %arg2, %c0_i32 : i32
    %1 = arith.extui %0 : i1 to i32
    %c0_i32_0 = arith.constant 0 : i32
    %2 = arith.cmpi ne, %1, %c0_i32_0 : i32
    scf.if %2 {
      %cst_10 = arith.constant 0.000000e+00 : f32
      %12 = vector.broadcast %cst_10 : f32 to vector<16x32xf32>
      %c0_11 = arith.constant 0 : index
      %c0_12 = arith.constant 0 : index
      %13 = vector.load %arg7[%c0_11, %c0_12] : memref<16x32xf32, #tpu.memory_space<vmem>>, vector<16x32xf32>
      tpu.vector_store %arg7[%c0_11, %c0_12], %12 {strides = array<i32>} : memref<16x32xf32, #tpu.memory_space<vmem>>, vector<16x32xf32>,
    } else {
    }
    %c0 = arith.constant 0 : index
    %c0_1 = arith.constant 0 : index
    %3 = vector.load %arg7[%c0, %c0_1] : memref<16x32xf32, #tpu.memory_space<vmem>>, vector<16x32xf32>
    %c0_2 = arith.constant 0 : index
    %c0_3 = arith.constant 0 : index
    %4 = vector.load %arg3[%c0_2, %c0_3] : memref<16x32xf32, #tpu.memory_space<vmem>>, vector<16x32xf32>
    %c0_4 = arith.constant 0 : index
    %c0_5 = arith.constant 0 : index
    %5 = vector.load %arg4[%c0_4, %c0_5] : memref<32x32xf32, #tpu.memory_space<vmem>>, vector<32x32xf32>
    %cst = arith.constant dense<0.000000e+00> : vector<16x32xf32>
    %6 = tpu.matmul %4, %5, %cst {dimension_numbers = #tpu.dot_dimension_numbers<[1], [0], [0], [1], [0, 0, 1, 1], [], []>} : vector<16x32xf32>, vector<32x32xf32>, vector<16x32xf32> -> vector<16x32xf32>
    %7 = arith.addf %3, %6 : vector<16x32xf32>
    %c0_6 = arith.constant 0 : index
    %c0_7 = arith.constant 0 : index
    %8 = vector.load %arg7[%c0_6, %c0_7] : memref<16x32xf32, #tpu.memory_space<vmem>>, vector<16x32xf32>
    tpu.vector_store %arg7[%c0_6, %c0_7], %7 {strides = array<i32>} : memref<16x32xf32, #tpu.memory_space<vmem>>, vector<16x32xf32>,
    %c0_i32_8 = arith.constant 0 : i32
    %9 = arith.cmpi eq, %arg2, %c0_i32_8 : i32
    %10 = arith.extui %9 : i1 to i32
    %c0_i32_9 = arith.constant 0 : i32
    %11 = arith.cmpi ne, %10, %c0_i32_9 : i32
    scf.if %11 {
      %c0_10 = arith.constant 0 : index
      %c0_11 = arith.constant 0 : index
      %12 = vector.load %arg7[%c0_10, %c0_11] : memref<16x32xf32, #tpu.memory_space<vmem>>, vector<16x32xf32>
      %c0_12 = arith.constant 0 : index
      %c0_13 = arith.constant 0 : index
      %13 = vector.load %arg5[%c0_12, %c0_13] : memref<1x32xf32, #tpu.memory_space<vmem>>, vector<1x32xf32>
      %14 = vector.broadcast %13 : vector<1x32xf32> to vector<16x32xf32>
      %15 = arith.addf %12, %14 : vector<16x32xf32>
      %c0_14 = arith.constant 0 : index
      %c0_15 = arith.constant 0 : index
      %16 = vector.load %arg6[%c0_14, %c0_15] : memref<16x32xf32, #tpu.memory_space<vmem>>, vector<16x32xf32>
      tpu.vector_store %arg6[%c0_14, %c0_15], %15 {strides = array<i32>} : memref<16x32xf32, #tpu.memory_space<vmem>>, vector<16x32xf32>,
    } else {
    }
    return
  }
  func.func @transform_0(%arg0: i32, %arg1: i32, %arg2: i32) -> (i32, i32) {
    %c0_i32 = arith.constant 0 : i32
    return %arg0, %arg2 : i32, i32
  }
  func.func @transform_1(%arg0: i32, %arg1: i32, %arg2: i32) -> (i32, i32) {
    %c0_i32 = arith.constant 0 : i32
    return %arg2, %arg1 : i32, i32
  }
  func.func @transform_2(%arg0: i32, %arg1: i32, %arg2: i32) -> (i32, i32) {
    %c0_i32 = arith.constant 0 : i32
    %c0_i32_0 = arith.constant 0 : i32
    return %c0_i32, %arg1 : i32, i32
  }
  func.func @transform_3(%arg0: i32, %arg1: i32, %arg2: i32) -> (i32, i32) {
    %c0_i32 = arith.constant 0 : i32
    return %arg0, %arg1 : i32, i32
  }
}

module attributes {stable_mosaic.version = 11 : i64} {
  func.func @_dense_kernel(%arg0: i32, %arg1: i32, %arg2: i32, %arg3: memref<16x32xf32, #tpu.memory_space<vmem>>, %arg4: memref<32x32xf32, #tpu.memory_space<vmem>>, %arg5: memref<1x32xf32, #tpu.memory_space<vmem>>, %arg6: memref<16x32xf32, #tpu.memory_space<vmem>>, %arg7: memref<1x32xf32, #tpu.memory_space<vmem>>, %arg8: memref<1x32xf32, #tpu.memory_space<vmem>>, %arg9: memref<16x32xf32, #tpu.memory_space<vmem>>, %arg10: memref<16x32xf32, #tpu.memory_space<vmem>>) attributes {dimension_semantics = [#tpu.dimension_semantics<parallel>, #tpu.dimension_semantics<parallel>, #tpu.dimension_semantics<arbitrary>], iteration_bounds = array<i64: 1, 1, 1>, scalar_prefetch = 0 : i64, scratch_operands = 1 : i64, tpu.core_type = #tpu.core_type<tc>, window_params = [{transform_indices = @transform_0, window_bounds = array<i64: 16, 32>}, {transform_indices = @transform_1, window_bounds = array<i64: 32, 32>}, {transform_indices = @transform_2, window_bounds = array<i64: 1, 32>}, {transform_indices = @transform_3, window_bounds = array<i64: 16, 32>}, {transform_indices = @transform_4, window_bounds = array<i64: 1, 32>}, {transform_indices = @transform_5, window_bounds = array<i64: 1, 32>}, {transform_indices = @transform_6, window_bounds = array<i64: 16, 32>}]} {
    %c0_i32 = arith.constant 0 : i32
    %0 = arith.cmpi eq, %arg2, %c0_i32 : i32
    %1 = arith.extui %0 : i1 to i32
    %c0_i32_0 = arith.constant 0 : i32
    %2 = arith.cmpi ne, %1, %c0_i32_0 : i32
    scf.if %2 {
      %cst_10 = arith.constant 0.000000e+00 : f32
      %12 = vector.broadcast %cst_10 : f32 to vector<16x32xf32>
      %c0_11 = arith.constant 0 : index
      %c0_12 = arith.constant 0 : index
      %13 = vector.load %arg10[%c0_11, %c0_12] : memref<16x32xf32, #tpu.memory_space<vmem>>, vector<16x32xf32>
      tpu.vector_store %arg10[%c0_11, %c0_12], %12 {strides = array<i32>} : memref<16x32xf32, #tpu.memory_space<vmem>>, vector<16x32xf32>,
    } else {
    }
    %c0 = arith.constant 0 : index
    %c0_1 = arith.constant 0 : index
    %3 = vector.load %arg10[%c0, %c0_1] : memref<16x32xf32, #tpu.memory_space<vmem>>, vector<16x32xf32>
    %c0_2 = arith.constant 0 : index
    %c0_3 = arith.constant 0 : index
    %4 = vector.load %arg3[%c0_2, %c0_3] : memref<16x32xf32, #tpu.memory_space<vmem>>, vector<16x32xf32>
    %c0_4 = arith.constant 0 : index
    %c0_5 = arith.constant 0 : index
    %5 = vector.load %arg4[%c0_4, %c0_5] : memref<32x32xf32, #tpu.memory_space<vmem>>, vector<32x32xf32>
    %cst = arith.constant dense<0.000000e+00> : vector<16x32xf32>
    %6 = tpu.matmul %4, %5, %cst {dimension_numbers = #tpu.dot_dimension_numbers<[1], [0], [0], [1], [0, 0, 1, 1], [], []>} : vector<16x32xf32>, vector<32x32xf32>, vector<16x32xf32> -> vector<16x32xf32>
    %7 = arith.addf %3, %6 : vector<16x32xf32>
    %c0_6 = arith.constant 0 : index
    %c0_7 = arith.constant 0 : index
    %8 = vector.load %arg10[%c0_6, %c0_7] : memref<16x32xf32, #tpu.memory_space<vmem>>, vector<16x32xf32>
    tpu.vector_store %arg10[%c0_6, %c0_7], %7 {strides = array<i32>} : memref<16x32xf32, #tpu.memory_space<vmem>>, vector<16x32xf32>,
    %c0_i32_8 = arith.constant 0 : i32
    %9 = arith.cmpi eq, %arg2, %c0_i32_8 : i32
    %10 = arith.extui %9 : i1 to i32
    %c0_i32_9 = arith.constant 0 : i32
    %11 = arith.cmpi ne, %10, %c0_i32_9 : i32
    scf.if %11 {
      %c0_10 = arith.constant 0 : index
      %c0_11 = arith.constant 0 : index
      %12 = vector.load %arg10[%c0_10, %c0_11] : memref<16x32xf32, #tpu.memory_space<vmem>>, vector<16x32xf32>
      %c0_12 = arith.constant 0 : index
      %c0_13 = arith.constant 0 : index
      %13 = vector.load %arg5[%c0_12, %c0_13] : memref<1x32xf32, #tpu.memory_space<vmem>>, vector<1x32xf32>
      %14 = vector.broadcast %13 : vector<1x32xf32> to vector<16x32xf32>
      %15 = arith.addf %12, %14 : vector<16x32xf32>
      %c0_14 = arith.constant 0 : index
      %c0_15 = arith.constant 0 : index
      %16 = vector.load %arg6[%c0_14, %c0_15] : memref<16x32xf32, #tpu.memory_space<vmem>>, vector<16x32xf32>
      %17 = arith.addf %15, %16 : vector<16x32xf32>
      %cst_16 = arith.constant dense<0.000000e+00> : vector<16xf32>
      %18 = vector.multi_reduction <add>, %17, %cst_16 [1] : vector<16x32xf32> to vector<16xf32>
      %19 = vector.shape_cast %18 : vector<16xf32> to vector<16x1xf32>
      %cst_17 = arith.constant 3.200000e+01 : f32
      %20 = vector.broadcast %cst_17 : f32 to vector<16x1xf32>
      %21 = arith.divf %19, %20 : vector<16x1xf32>
      %22 = vector.broadcast %21 : vector<16x1xf32> to vector<16x32xf32>
      %23 = arith.subf %17, %22 : vector<16x32xf32>
      %24 = arith.mulf %23, %23 : vector<16x32xf32>
      %cst_18 = arith.constant dense<0.000000e+00> : vector<16xf32>
      %25 = vector.multi_reduction <add>, %24, %cst_18 [1] : vector<16x32xf32> to vector<16xf32>
      %26 = vector.shape_cast %25 : vector<16xf32> to vector<16x1xf32>
      %cst_19 = arith.constant 3.200000e+01 : f32
      %27 = vector.broadcast %cst_19 : f32 to vector<16x1xf32>
      %28 = arith.divf %26, %27 : vector<16x1xf32>
      %29 = vector.broadcast %21 : vector<16x1xf32> to vector<16x32xf32>
      %30 = arith.subf %17, %29 : vector<16x32xf32>
      %cst_20 = arith.constant 9.99999974E-6 : f32
      %31 = vector.broadcast %cst_20 : f32 to vector<16x1xf32>
      %32 = arith.addf %28, %31 : vector<16x1xf32>
      %33 = math.rsqrt %32 : vector<16x1xf32>
      %34 = vector.broadcast %33 : vector<16x1xf32> to vector<16x32xf32>
      %35 = arith.mulf %30, %34 : vector<16x32xf32>
      %c0_21 = arith.constant 0 : index
      %c0_22 = arith.constant 0 : index
      %36 = vector.load %arg7[%c0_21, %c0_22] : memref<1x32xf32, #tpu.memory_space<vmem>>, vector<1x32xf32>
      %37 = vector.broadcast %36 : vector<1x32xf32> to vector<16x32xf32>
      %38 = arith.mulf %35, %37 : vector<16x32xf32>
      %c0_23 = arith.constant 0 : index
      %c0_24 = arith.constant 0 : index
      %39 = vector.load %arg8[%c0_23, %c0_24] : memref<1x32xf32, #tpu.memory_space<vmem>>, vector<1x32xf32>
      %40 = vector.broadcast %39 : vector<1x32xf32> to vector<16x32xf32>
      %41 = arith.addf %38, %40 : vector<16x32xf32>
      %c0_25 = arith.constant 0 : index
      %c0_26 = arith.constant 0 : index
      %42 = vector.load %arg9[%c0_25, %c0_26] : memref<16x32xf32, #tpu.memory_space<vmem>>, vector<16x32xf32>
      tpu.vector_store %arg9[%c0_25, %c0_26], %41 {strides = array<i32>} : memref<16x32xf32, #tpu.memory_space<vmem>>, vector<16x32xf32>,
    } else {
    }
    return
  }
  func.func @transform_0(%arg0: i32, %arg1: i32, %arg2: i32) -> (i32, i32) {
    %c0_i32 = arith.constant 0 : i32
    return %arg0, %arg2 : i32, i32
  }
  func.func @transform_1(%arg0: i32, %arg1: i32, %arg2: i32) -> (i32, i32) {
    %c0_i32 = arith.constant 0 : i32
    return %arg2, %arg1 : i32, i32
  }
  func.func @transform_2(%arg0: i32, %arg1: i32, %arg2: i32) -> (i32, i32) {
    %c0_i32 = arith.constant 0 : i32
    %c0_i32_0 = arith.constant 0 : i32
    return %c0_i32, %arg1 : i32, i32
  }
  func.func @transform_3(%arg0: i32, %arg1: i32, %arg2: i32) -> (i32, i32) {
    %c0_i32 = arith.constant 0 : i32
    return %arg0, %arg1 : i32, i32
  }
  func.func @transform_4(%arg0: i32, %arg1: i32, %arg2: i32) -> (i32, i32) {
    %c0_i32 = arith.constant 0 : i32
    %c0_i32_0 = arith.constant 0 : i32
    return %c0_i32, %arg1 : i32, i32
  }
  func.func @transform_5(%arg0: i32, %arg1: i32, %arg2: i32) -> (i32, i32) {
    %c0_i32 = arith.constant 0 : i32
    %c0_i32_0 = arith.constant 0 : i32
    return %c0_i32, %arg1 : i32, i32
  }
  func.func @transform_6(%arg0: i32, %arg1: i32, %arg2: i32) -> (i32, i32) {
    %c0_i32 = arith.constant 0 : i32
    return %arg0, %arg1 : i32, i32
  }
}

module attributes {stable_mosaic.version = 11 : i64} {
  func.func @_dense_kernel(%arg0: i32, %arg1: i32, %arg2: i32, %arg3: memref<20x32xf32, #tpu.memory_space<vmem>>, %arg4: memref<32x64xf32, #tpu.memory_space<vmem>>, %arg5: memref<1x64xf32, #tpu.memory_space<vmem>>, %arg6: memref<20x64xf32, #tpu.memory_space<vmem>>, %arg7: memref<20x64xf32, #tpu.memory_space<vmem>>) attributes {dimension_semantics = [#tpu.dimension_semantics<parallel>, #tpu.dimension_semantics<parallel>, #tpu.dimension_semantics<arbitrary>], iteration_bounds = array<i64: 1, 1, 1>, scalar_prefetch = 0 : i64, scratch_operands = 1 : i64, tpu.core_type = #tpu.core_type<tc>, window_params = [{transform_indices = @transform_0, window_bounds = array<i64: 20, 32>}, {transform_indices = @transform_1, window_bounds = array<i64: 32, 64>}, {transform_indices = @transform_2, window_bounds = array<i64: 1, 64>}, {transform_indices = @transform_3, window_bounds = array<i64: 20, 64>}]} {
    %c0_i32 = arith.constant 0 : i32
    %0 = arith.cmpi eq, %arg2, %c0_i32 : i32
    %1 = arith.extui %0 : i1 to i32
    %c0_i32_0 = arith.constant 0 : i32
    %2 = arith.cmpi ne, %1, %c0_i32_0 : i32
    scf.if %2 {
      %cst_10 = arith.constant 0.000000e+00 : f32
      %12 = vector.broadcast %cst_10 : f32 to vector<20x64xf32>
      %c0_11 = arith.constant 0 : index
      %c0_12 = arith.constant 0 : index
      %13 = vector.load %arg7[%c0_11, %c0_12] : memref<20x64xf32, #tpu.memory_space<vmem>>, vector<20x64xf32>
      tpu.vector_store %arg7[%c0_11, %c0_12], %12 {strides = array<i32>} : memref<20x64xf32, #tpu.memory_space<vmem>>, vector<20x64xf32>,
    } else {
    }
    %c0 = arith.constant 0 : index
    %c0_1 = arith.constant 0 : index
    %3 = vector.load %arg7[%c0, %c0_1] : memref<20x64xf32, #tpu.memory_space<vmem>>, vector<20x64xf32>
    %c0_2 = arith.constant 0 : index
    %c0_3 = arith.constant 0 : index
    %4 = vector.load %arg3[%c0_2, %c0_3] : memref<20x32xf32, #tpu.memory_space<vmem>>, vector<20x32xf32>
    %c0_4 = arith.constant 0 : index
    %c0_5 = arith.constant 0 : index
    %5 = vector.load %arg4[%c0_4, %c0_5] : memref<32x64xf32, #tpu.memory_space<vmem>>, vector<32x64xf32>
    %cst = arith.constant dense<0.000000e+00> : vector<20x64xf32>
    %6 = tpu.matmul %4, %5, %cst {dimension_numbers = #tpu.dot_dimension_numbers<[1], [0], [0], [1], [0, 0, 1, 1], [], []>} : vector<20x32xf32>, vector<32x64xf32>, vector<20x64xf32> -> vector<20x64xf32>
    %7 = arith.addf %3, %6 : vector<20x64xf32>
    %c0_6 = arith.constant 0 : index
    %c0_7 = arith.constant 0 : index
    %8 = vector.load %arg7[%c0_6, %c0_7] : memref<20x64xf32, #tpu.memory_space<vmem>>, vector<20x64xf32>
    tpu.vector_store %arg7[%c0_6, %c0_7], %7 {strides = array<i32>} : memref<20x64xf32, #tpu.memory_space<vmem>>, vector<20x64xf32>,
    %c0_i32_8 = arith.constant 0 : i32
    %9 = arith.cmpi eq, %arg2, %c0_i32_8 : i32
    %10 = arith.extui %9 : i1 to i32
    %c0_i32_9 = arith.constant 0 : i32
    %11 = arith.cmpi ne, %10, %c0_i32_9 : i32
    scf.if %11 {
      %c0_10 = arith.constant 0 : index
      %c0_11 = arith.constant 0 : index
      %12 = vector.load %arg7[%c0_10, %c0_11] : memref<20x64xf32, #tpu.memory_space<vmem>>, vector<20x64xf32>
      %c0_12 = arith.constant 0 : index
      %c0_13 = arith.constant 0 : index
      %13 = vector.load %arg5[%c0_12, %c0_13] : memref<1x64xf32, #tpu.memory_space<vmem>>, vector<1x64xf32>
      %14 = vector.broadcast %13 : vector<1x64xf32> to vector<20x64xf32>
      %15 = arith.addf %12, %14 : vector<20x64xf32>
      %c0_14 = arith.constant 0 : index
      %c0_15 = arith.constant 0 : index
      %16 = vector.load %arg6[%c0_14, %c0_15] : memref<20x64xf32, #tpu.memory_space<vmem>>, vector<20x64xf32>
      tpu.vector_store %arg6[%c0_14, %c0_15], %15 {strides = array<i32>} : memref<20x64xf32, #tpu.memory_space<vmem>>, vector<20x64xf32>,
    } else {
    }
    return
  }
  func.func @transform_0(%arg0: i32, %arg1: i32, %arg2: i32) -> (i32, i32) {
    %c0_i32 = arith.constant 0 : i32
    return %arg0, %arg2 : i32, i32
  }
  func.func @transform_1(%arg0: i32, %arg1: i32, %arg2: i32) -> (i32, i32) {
    %c0_i32 = arith.constant 0 : i32
    return %arg2, %arg1 : i32, i32
  }
  func.func @transform_2(%arg0: i32, %arg1: i32, %arg2: i32) -> (i32, i32) {
    %c0_i32 = arith.constant 0 : i32
    %c0_i32_0 = arith.constant 0 : i32
    return %c0_i32, %arg1 : i32, i32
  }
  func.func @transform_3(%arg0: i32, %arg1: i32, %arg2: i32) -> (i32, i32) {
    %c0_i32 = arith.constant 0 : i32
    return %arg0, %arg1 : i32, i32
  }
}

module attributes {stable_mosaic.version = 11 : i64} {
  func.func @_attn_kernel(%arg0: i32, %arg1: i32, %arg2: memref<1x8x32xf32, #tpu.memory_space<vmem>>, %arg3: memref<1x10x32xf32, #tpu.memory_space<vmem>>, %arg4: memref<1x10x32xf32, #tpu.memory_space<vmem>>, %arg5: memref<1x1x8x10xf32, #tpu.memory_space<vmem>>, %arg6: memref<1x8xf32, #tpu.memory_space<vmem>>, %arg7: memref<1x1xf32, #tpu.memory_space<vmem>>, %arg8: memref<1x8x32xf32, #tpu.memory_space<vmem>>) attributes {dimension_semantics = [#tpu.dimension_semantics<parallel>, #tpu.dimension_semantics<parallel>], iteration_bounds = array<i64: 2, 1>, scalar_prefetch = 0 : i64, scratch_operands = 0 : i64, tpu.core_type = #tpu.core_type<tc>, window_params = [{transform_indices = @transform_0, window_bounds = array<i64: 1, 8, 32>}, {transform_indices = @transform_1, window_bounds = array<i64: 1, 10, 32>}, {transform_indices = @transform_2, window_bounds = array<i64: 1, 10, 32>}, {transform_indices = @transform_3, window_bounds = array<i64: 1, 1, 8, 10>}, {pipeline_mode = #tpu.pipeline_mode<synchronous>, transform_indices = @transform_4, window_bounds = array<i64: 1, 8>}, {pipeline_mode = #tpu.pipeline_mode<synchronous>, transform_indices = @transform_5, window_bounds = array<i64: 1, 1>}, {transform_indices = @transform_6, window_bounds = array<i64: 1, 8, 32>}]} {
    %c0 = arith.constant 0 : index
    %c0_0 = arith.constant 0 : index
    %c0_1 = arith.constant 0 : index
    %c0_2 = arith.constant 0 : index
    %0 = vector.load %arg5[%c0, %c0_0, %c0_1, %c0_2] : memref<1x1x8x10xf32, #tpu.memory_space<vmem>>, vector<1x1x8x10xf32>
    %1 = vector.shape_cast %0 : vector<1x1x8x10xf32> to vector<8x10xf32>
    %c0_3 = arith.constant 0 : index
    %c0_4 = arith.constant 0 : index
    %2 = vector.load %arg6[%c0_3, %c0_4] : memref<1x8xf32, #tpu.memory_space<vmem>>, vector<1x8xf32>
    %3 = vector.shape_cast %2 : vector<1x8xf32> to vector<8xf32>
    %c0_5 = arith.constant 0 : index
    %c0_6 = arith.constant 0 : index
    %4 = vector.load %arg7[%c0_5, %c0_6] : memref<1x1xf32, #tpu.memory_space<vmem>>, vector<1x1xf32>
    %c0_7 = arith.constant 0 : index
    %c0_8 = arith.constant 0 : index
    %c0_9 = arith.constant 0 : index
    %5 = vector.load %arg2[%c0_7, %c0_8, %c0_9] : memref<1x8x32xf32, #tpu.memory_space<vmem>>, vector<1x8x8xf32>
    %6 = vector.shape_cast %5 : vector<1x8x8xf32> to vector<8x8xf32>
    %c0_10 = arith.constant 0 : index
    %c0_11 = arith.constant 0 : index
    %c0_12 = arith.constant 0 : index
    %7 = vector.load %arg4[%c0_10, %c0_11, %c0_12] : memref<1x10x32xf32, #tpu.memory_space<vmem>>, vector<1x10x8xf32>
    %8 = vector.shape_cast %7 : vector<1x10x8xf32> to vector<10x8xf32>
    %c0_13 = arith.constant 0 : index
    %c0_14 = arith.constant 0 : index
    %c0_15 = arith.constant 0 : index
    %9 = vector.load %arg3[%c0_13, %c0_14, %c0_15] : memref<1x10x32xf32, #tpu.memory_space<vmem>>, vector<1x10x8xf32>
    %10 = vector.shape_cast %9 : vector<1x10x8xf32> to vector<10x8xf32>
    %11 = vector.shape_cast %6 : vector<8x8xf32> to vector<8x1x8xf32>
    %12 = vector.shape_cast %10 : vector<10x8xf32> to vector<1x10x8xf32>
    %13 = vector.broadcast %11 : vector<8x1x8xf32> to vector<8x10x8xf32>
    %14 = vector.broadcast %12 : vector<1x10x8xf32> to vector<8x10x8xf32>
    %15 = arith.addf %13, %14 : vector<8x10x8xf32>
    %16 = math.tanh %15 : vector<8x10x8xf32>
    %17 = vector.shape_cast %3 : vector<8xf32> to vector<1x1x8xf32>
    %18 = vector.broadcast %17 : vector<1x1x8xf32> to vector<8x10x8xf32>
    %19 = arith.mulf %16, %18 : vector<8x10x8xf32>
    %cst = arith.constant dense<0.000000e+00> : vector<8x10xf32>
    %20 = vector.multi_reduction <add>, %19, %cst [2] : vector<8x10x8xf32> to vector<8x10xf32>
    %21 = vector.broadcast %4 : vector<1x1xf32> to vector<8x10xf32>
    %22 = arith.addf %20, %21 : vector<8x10xf32>
    %cst_16 = arith.constant 0.000000e+00 : f32
    %23 = vector.broadcast %cst_16 : f32 to vector<8x10xf32>
    %24 = arith.cmpf oeq, %1, %23 : vector<8x10xf32>
    %cst_17 = arith.constant -1.000000e+10 : f32
    %25 = vector.broadcast %cst_17 : f32 to vector<8x10xf32>
    %26 = arith.select %24, %25, %22 : vector<8x10xi1>, vector<8x10xf32>
    %cst_18 = arith.constant dense<0xFF800000> : vector<8xf32>
    %27 = vector.multi_reduction <maximumf>, %26, %cst_18 [1] : vector<8x10xf32> to vector<8xf32>
    %28 = vector.shape_cast %27 : vector<8xf32> to vector<8x1xf32>
    %29 = vector.broadcast %28 : vector<8x1xf32> to vector<8x10xf32>
    %30 = arith.subf %26, %29 : vector<8x10xf32>
    %31 = math.exp %30 : vector<8x10xf32>
    %cst_19 = arith.constant dense<0.000000e+00> : vector<8xf32>
    %32 = vector.multi_reduction <add>, %31, %cst_19 [1] : vector<8x10xf32> to vector<8xf32>
    %33 = vector.shape_cast %32 : vector<8xf32> to vector<8x1xf32>
    %34 = tpu.reciprocal %33 {approx = true} : vector<8x1xf32> -> vector<8x1xf32>
    %35 = vector.broadcast %34 : vector<8x1xf32> to vector<8x10xf32>
    %36 = arith.mulf %31, %35 : vector<8x10xf32>
    %cst_20 = arith.constant dense<0.000000e+00> : vector<8x8xf32>
    %37 = tpu.matmul %36, %8, %cst_20 {dimension_numbers = #tpu.dot_dimension_numbers<[1], [0], [0], [1], [0, 0, 1, 1], [], []>} : vector<8x10xf32>, vector<10x8xf32>, vector<8x8xf32> -> vector<8x8xf32>
    %c0_21 = arith.constant 0 : index
    %c0_22 = arith.constant 0 : index
    %c0_23 = arith.constant 0 : index
    %38 = vector.load %arg8[%c0_21, %c0_22, %c0_23] : memref<1x8x32xf32, #tpu.memory_space<vmem>>, vector<1x8x8xf32>
    %39 = vector.shape_cast %38 : vector<1x8x8xf32> to vector<8x8xf32>
    %40 = vector.shape_cast %37 : vector<8x8xf32> to vector<1x8x8xf32>
    tpu.vector_store %arg8[%c0_21, %c0_22, %c0_23], %40 {strides = array<i32>} : memref<1x8x32xf32, #tpu.memory_space<vmem>>, vector<1x8x8xf32>,
    %c0_24 = arith.constant 0 : index
    %c0_25 = arith.constant 0 : index
    %c8 = arith.constant 8 : index
    %41 = vector.load %arg2[%c0_24, %c0_25, %c8] : memref<1x8x32xf32, #tpu.memory_space<vmem>>, vector<1x8x8xf32>
    %42 = vector.shape_cast %41 : vector<1x8x8xf32> to vector<8x8xf32>
    %c0_26 = arith.constant 0 : index
    %c0_27 = arith.constant 0 : index
    %c8_28 = arith.constant 8 : index
    %43 = vector.load %arg4[%c0_26, %c0_27, %c8_28] : memref<1x10x32xf32, #tpu.memory_space<vmem>>, vector<1x10x8xf32>
    %44 = vector.shape_cast %43 : vector<1x10x8xf32> to vector<10x8xf32>
    %c0_29 = arith.constant 0 : index
    %c0_30 = arith.constant 0 : index
    %c8_31 = arith.constant 8 : index
    %45 = vector.load %arg3[%c0_29, %c0_30, %c8_31] : memref<1x10x32xf32, #tpu.memory_space<vmem>>, vector<1x10x8xf32>
    %46 = vector.shape_cast %45 : vector<1x10x8xf32> to vector<10x8xf32>
    %47 = vector.shape_cast %42 : vector<8x8xf32> to vector<8x1x8xf32>
    %48 = vector.shape_cast %46 : vector<10x8xf32> to vector<1x10x8xf32>
    %49 = vector.broadcast %47 : vector<8x1x8xf32> to vector<8x10x8xf32>
    %50 = vector.broadcast %48 : vector<1x10x8xf32> to vector<8x10x8xf32>
    %51 = arith.addf %49, %50 : vector<8x10x8xf32>
    %52 = math.tanh %51 : vector<8x10x8xf32>
    %53 = vector.shape_cast %3 : vector<8xf32> to vector<1x1x8xf32>
    %54 = vector.broadcast %53 : vector<1x1x8xf32> to vector<8x10x8xf32>
    %55 = arith.mulf %52, %54 : vector<8x10x8xf32>
    %cst_32 = arith.constant dense<0.000000e+00> : vector<8x10xf32>
    %56 = vector.multi_reduction <add>, %55, %cst_32 [2] : vector<8x10x8xf32> to vector<8x10xf32>
    %57 = vector.broadcast %4 : vector<1x1xf32> to vector<8x10xf32>
    %58 = arith.addf %56, %57 : vector<8x10xf32>
    %cst_33 = arith.constant 0.000000e+00 : f32
    %59 = vector.broadcast %cst_33 : f32 to vector<8x10xf32>
    %60 = arith.cmpf oeq, %1, %59 : vector<8x10xf32>
    %cst_34 = arith.constant -1.000000e+10 : f32
    %61 = vector.broadcast %cst_34 : f32 to vector<8x10xf32>
    %62 = arith.select %60, %61, %58 : vector<8x10xi1>, vector<8x10xf32>
    %cst_35 = arith.constant dense<0xFF800000> : vector<8xf32>
    %63 = vector.multi_reduction <maximumf>, %62, %cst_35 [1] : vector<8x10xf32> to vector<8xf32>
    %64 = vector.shape_cast %63 : vector<8xf32> to vector<8x1xf32>
    %65 = vector.broadcast %64 : vector<8x1xf32> to vector<8x10xf32>
    %66 = arith.subf %62, %65 : vector<8x10xf32>
    %67 = math.exp %66 : vector<8x10xf32>
    %cst_36 = arith.constant dense<0.000000e+00> : vector<8xf32>
    %68 = vector.multi_reduction <add>, %67, %cst_36 [1] : vector<8x10xf32> to vector<8xf32>
    %69 = vector.shape_cast %68 : vector<8xf32> to vector<8x1xf32>
    %70 = tpu.reciprocal %69 {approx = true} : vector<8x1xf32> -> vector<8x1xf32>
    %71 = vector.broadcast %70 : vector<8x1xf32> to vector<8x10xf32>
    %72 = arith.mulf %67, %71 : vector<8x10xf32>
    %cst_37 = arith.constant dense<0.000000e+00> : vector<8x8xf32>
    %73 = tpu.matmul %72, %44, %cst_37 {dimension_numbers = #tpu.dot_dimension_numbers<[1], [0], [0], [1], [0, 0, 1, 1], [], []>} : vector<8x10xf32>, vector<10x8xf32>, vector<8x8xf32> -> vector<8x8xf32>
    %c0_38 = arith.constant 0 : index
    %c0_39 = arith.constant 0 : index
    %c8_40 = arith.constant 8 : index
    %74 = vector.load %arg8[%c0_38, %c0_39, %c8_40] : memref<1x8x32xf32, #tpu.memory_space<vmem>>, vector<1x8x8xf32>
    %75 = vector.shape_cast %74 : vector<1x8x8xf32> to vector<8x8xf32>
    %76 = vector.shape_cast %73 : vector<8x8xf32> to vector<1x8x8xf32>
    tpu.vector_store %arg8[%c0_38, %c0_39, %c8_40], %76 {strides = array<i32>} : memref<1x8x32xf32, #tpu.memory_space<vmem>>, vector<1x8x8xf32>,
    %c0_41 = arith.constant 0 : index
    %c0_42 = arith.constant 0 : index
    %c16 = arith.constant 16 : index
    %77 = vector.load %arg2[%c0_41, %c0_42, %c16] : memref<1x8x32xf32, #tpu.memory_space<vmem>>, vector<1x8x8xf32>
    %78 = vector.shape_cast %77 : vector<1x8x8xf32> to vector<8x8xf32>
    %c0_43 = arith.constant 0 : index
    %c0_44 = arith.constant 0 : index
    %c16_45 = arith.constant 16 : index
    %79 = vector.load %arg4[%c0_43, %c0_44, %c16_45] : memref<1x10x32xf32, #tpu.memory_space<vmem>>, vector<1x10x8xf32>
    %80 = vector.shape_cast %79 : vector<1x10x8xf32> to vector<10x8xf32>
    %c0_46 = arith.constant 0 : index
    %c0_47 = arith.constant 0 : index
    %c16_48 = arith.constant 16 : index
    %81 = vector.load %arg3[%c0_46, %c0_47, %c16_48] : memref<1x10x32xf32, #tpu.memory_space<vmem>>, vector<1x10x8xf32>
    %82 = vector.shape_cast %81 : vector<1x10x8xf32> to vector<10x8xf32>
    %83 = vector.shape_cast %78 : vector<8x8xf32> to vector<8x1x8xf32>
    %84 = vector.shape_cast %82 : vector<10x8xf32> to vector<1x10x8xf32>
    %85 = vector.broadcast %83 : vector<8x1x8xf32> to vector<8x10x8xf32>
    %86 = vector.broadcast %84 : vector<1x10x8xf32> to vector<8x10x8xf32>
    %87 = arith.addf %85, %86 : vector<8x10x8xf32>
    %88 = math.tanh %87 : vector<8x10x8xf32>
    %89 = vector.shape_cast %3 : vector<8xf32> to vector<1x1x8xf32>
    %90 = vector.broadcast %89 : vector<1x1x8xf32> to vector<8x10x8xf32>
    %91 = arith.mulf %88, %90 : vector<8x10x8xf32>
    %cst_49 = arith.constant dense<0.000000e+00> : vector<8x10xf32>
    %92 = vector.multi_reduction <add>, %91, %cst_49 [2] : vector<8x10x8xf32> to vector<8x10xf32>
    %93 = vector.broadcast %4 : vector<1x1xf32> to vector<8x10xf32>
    %94 = arith.addf %92, %93 : vector<8x10xf32>
    %cst_50 = arith.constant 0.000000e+00 : f32
    %95 = vector.broadcast %cst_50 : f32 to vector<8x10xf32>
    %96 = arith.cmpf oeq, %1, %95 : vector<8x10xf32>
    %cst_51 = arith.constant -1.000000e+10 : f32
    %97 = vector.broadcast %cst_51 : f32 to vector<8x10xf32>
    %98 = arith.select %96, %97, %94 : vector<8x10xi1>, vector<8x10xf32>
    %cst_52 = arith.constant dense<0xFF800000> : vector<8xf32>
    %99 = vector.multi_reduction <maximumf>, %98, %cst_52 [1] : vector<8x10xf32> to vector<8xf32>
    %100 = vector.shape_cast %99 : vector<8xf32> to vector<8x1xf32>
    %101 = vector.broadcast %100 : vector<8x1xf32> to vector<8x10xf32>
    %102 = arith.subf %98, %101 : vector<8x10xf32>
    %103 = math.exp %102 : vector<8x10xf32>
    %cst_53 = arith.constant dense<0.000000e+00> : vector<8xf32>
    %104 = vector.multi_reduction <add>, %103, %cst_53 [1] : vector<8x10xf32> to vector<8xf32>
    %105 = vector.shape_cast %104 : vector<8xf32> to vector<8x1xf32>
    %106 = tpu.reciprocal %105 {approx = true} : vector<8x1xf32> -> vector<8x1xf32>
    %107 = vector.broadcast %106 : vector<8x1xf32> to vector<8x10xf32>
    %108 = arith.mulf %103, %107 : vector<8x10xf32>
    %cst_54 = arith.constant dense<0.000000e+00> : vector<8x8xf32>
    %109 = tpu.matmul %108, %80, %cst_54 {dimension_numbers = #tpu.dot_dimension_numbers<[1], [0], [0], [1], [0, 0, 1, 1], [], []>} : vector<8x10xf32>, vector<10x8xf32>, vector<8x8xf32> -> vector<8x8xf32>
    %c0_55 = arith.constant 0 : index
    %c0_56 = arith.constant 0 : index
    %c16_57 = arith.constant 16 : index
    %110 = vector.load %arg8[%c0_55, %c0_56, %c16_57] : memref<1x8x32xf32, #tpu.memory_space<vmem>>, vector<1x8x8xf32>
    %111 = vector.shape_cast %110 : vector<1x8x8xf32> to vector<8x8xf32>
    %112 = vector.shape_cast %109 : vector<8x8xf32> to vector<1x8x8xf32>
    tpu.vector_store %arg8[%c0_55, %c0_56, %c16_57], %112 {strides = array<i32>} : memref<1x8x32xf32, #tpu.memory_space<vmem>>, vector<1x8x8xf32>,
    %c0_58 = arith.constant 0 : index
    %c0_59 = arith.constant 0 : index
    %c24 = arith.constant 24 : index
    %113 = vector.load %arg2[%c0_58, %c0_59, %c24] : memref<1x8x32xf32, #tpu.memory_space<vmem>>, vector<1x8x8xf32>
    %114 = vector.shape_cast %113 : vector<1x8x8xf32> to vector<8x8xf32>
    %c0_60 = arith.constant 0 : index
    %c0_61 = arith.constant 0 : index
    %c24_62 = arith.constant 24 : index
    %115 = vector.load %arg4[%c0_60, %c0_61, %c24_62] : memref<1x10x32xf32, #tpu.memory_space<vmem>>, vector<1x10x8xf32>
    %116 = vector.shape_cast %115 : vector<1x10x8xf32> to vector<10x8xf32>
    %c0_63 = arith.constant 0 : index
    %c0_64 = arith.constant 0 : index
    %c24_65 = arith.constant 24 : index
    %117 = vector.load %arg3[%c0_63, %c0_64, %c24_65] : memref<1x10x32xf32, #tpu.memory_space<vmem>>, vector<1x10x8xf32>
    %118 = vector.shape_cast %117 : vector<1x10x8xf32> to vector<10x8xf32>
    %119 = vector.shape_cast %114 : vector<8x8xf32> to vector<8x1x8xf32>
    %120 = vector.shape_cast %118 : vector<10x8xf32> to vector<1x10x8xf32>
    %121 = vector.broadcast %119 : vector<8x1x8xf32> to vector<8x10x8xf32>
    %122 = vector.broadcast %120 : vector<1x10x8xf32> to vector<8x10x8xf32>
    %123 = arith.addf %121, %122 : vector<8x10x8xf32>
    %124 = math.tanh %123 : vector<8x10x8xf32>
    %125 = vector.shape_cast %3 : vector<8xf32> to vector<1x1x8xf32>
    %126 = vector.broadcast %125 : vector<1x1x8xf32> to vector<8x10x8xf32>
    %127 = arith.mulf %124, %126 : vector<8x10x8xf32>
    %cst_66 = arith.constant dense<0.000000e+00> : vector<8x10xf32>
    %128 = vector.multi_reduction <add>, %127, %cst_66 [2] : vector<8x10x8xf32> to vector<8x10xf32>
    %129 = vector.broadcast %4 : vector<1x1xf32> to vector<8x10xf32>
    %130 = arith.addf %128, %129 : vector<8x10xf32>
    %cst_67 = arith.constant 0.000000e+00 : f32
    %131 = vector.broadcast %cst_67 : f32 to vector<8x10xf32>
    %132 = arith.cmpf oeq, %1, %131 : vector<8x10xf32>
    %cst_68 = arith.constant -1.000000e+10 : f32
    %133 = vector.broadcast %cst_68 : f32 to vector<8x10xf32>
    %134 = arith.select %132, %133, %130 : vector<8x10xi1>, vector<8x10xf32>
    %cst_69 = arith.constant dense<0xFF800000> : vector<8xf32>
    %135 = vector.multi_reduction <maximumf>, %134, %cst_69 [1] : vector<8x10xf32> to vector<8xf32>
    %136 = vector.shape_cast %135 : vector<8xf32> to vector<8x1xf32>
    %137 = vector.broadcast %136 : vector<8x1xf32> to vector<8x10xf32>
    %138 = arith.subf %134, %137 : vector<8x10xf32>
    %139 = math.exp %138 : vector<8x10xf32>
    %cst_70 = arith.constant dense<0.000000e+00> : vector<8xf32>
    %140 = vector.multi_reduction <add>, %139, %cst_70 [1] : vector<8x10xf32> to vector<8xf32>
    %141 = vector.shape_cast %140 : vector<8xf32> to vector<8x1xf32>
    %142 = tpu.reciprocal %141 {approx = true} : vector<8x1xf32> -> vector<8x1xf32>
    %143 = vector.broadcast %142 : vector<8x1xf32> to vector<8x10xf32>
    %144 = arith.mulf %139, %143 : vector<8x10xf32>
    %cst_71 = arith.constant dense<0.000000e+00> : vector<8x8xf32>
    %145 = tpu.matmul %144, %116, %cst_71 {dimension_numbers = #tpu.dot_dimension_numbers<[1], [0], [0], [1], [0, 0, 1, 1], [], []>} : vector<8x10xf32>, vector<10x8xf32>, vector<8x8xf32> -> vector<8x8xf32>
    %c0_72 = arith.constant 0 : index
    %c0_73 = arith.constant 0 : index
    %c24_74 = arith.constant 24 : index
    %146 = vector.load %arg8[%c0_72, %c0_73, %c24_74] : memref<1x8x32xf32, #tpu.memory_space<vmem>>, vector<1x8x8xf32>
    %147 = vector.shape_cast %146 : vector<1x8x8xf32> to vector<8x8xf32>
    %148 = vector.shape_cast %145 : vector<8x8xf32> to vector<1x8x8xf32>
    tpu.vector_store %arg8[%c0_72, %c0_73, %c24_74], %148 {strides = array<i32>} : memref<1x8x32xf32, #tpu.memory_space<vmem>>, vector<1x8x8xf32>,
    return
  }
  func.func @transform_0(%arg0: i32, %arg1: i32) -> (i32, i32, i32) {
    %c0_i32 = arith.constant 0 : i32
    %c0_i32_0 = arith.constant 0 : i32
    return %arg0, %arg1, %c0_i32 : i32, i32, i32
  }
  func.func @transform_1(%arg0: i32, %arg1: i32) -> (i32, i32, i32) {
    %c0_i32 = arith.constant 0 : i32
    %c0_i32_0 = arith.constant 0 : i32
    %c0_i32_1 = arith.constant 0 : i32
    return %arg0, %c0_i32, %c0_i32_0 : i32, i32, i32
  }
  func.func @transform_2(%arg0: i32, %arg1: i32) -> (i32, i32, i32) {
    %c0_i32 = arith.constant 0 : i32
    %c0_i32_0 = arith.constant 0 : i32
    %c0_i32_1 = arith.constant 0 : i32
    return %arg0, %c0_i32, %c0_i32_0 : i32, i32, i32
  }
  func.func @transform_3(%arg0: i32, %arg1: i32) -> (i32, i32, i32, i32) {
    %c0_i32 = arith.constant 0 : i32
    %c0_i32_0 = arith.constant 0 : i32
    %c0_i32_1 = arith.constant 0 : i32
    return %arg0, %c0_i32, %arg1, %c0_i32_0 : i32, i32, i32, i32
  }
  func.func @transform_4(%arg0: i32, %arg1: i32) -> (i32, i32) {
    %c0_i32 = arith.constant 0 : i32
    %c0_i32_0 = arith.constant 0 : i32
    %c0_i32_1 = arith.constant 0 : i32
    return %c0_i32, %c0_i32_0 : i32, i32
  }
  func.func @transform_5(%arg0: i32, %arg1: i32) -> (i32, i32) {
    %c0_i32 = arith.constant 0 : i32
    %c0_i32_0 = arith.constant 0 : i32
    %c0_i32_1 = arith.constant 0 : i32
    return %c0_i32, %c0_i32_0 : i32, i32
  }
  func.func @transform_6(%arg0: i32, %arg1: i32) -> (i32, i32, i32) {
    %c0_i32 = arith.constant 0 : i32
    %c0_i32_0 = arith.constant 0 : i32
    return %arg0, %arg1, %c0_i32 : i32, i32, i32
  }
}

module attributes {stable_mosaic.version = 11 : i64} {
  func.func @_dense_kernel(%arg0: i32, %arg1: i32, %arg2: i32, %arg3: memref<16x32xf32, #tpu.memory_space<vmem>>, %arg4: memref<32x64xf32, #tpu.memory_space<vmem>>, %arg5: memref<1x64xf32, #tpu.memory_space<vmem>>, %arg6: memref<16x64xf32, #tpu.memory_space<vmem>>, %arg7: memref<16x64xf32, #tpu.memory_space<vmem>>) attributes {dimension_semantics = [#tpu.dimension_semantics<parallel>, #tpu.dimension_semantics<parallel>, #tpu.dimension_semantics<arbitrary>], iteration_bounds = array<i64: 1, 1, 1>, scalar_prefetch = 0 : i64, scratch_operands = 1 : i64, tpu.core_type = #tpu.core_type<tc>, window_params = [{transform_indices = @transform_0, window_bounds = array<i64: 16, 32>}, {transform_indices = @transform_1, window_bounds = array<i64: 32, 64>}, {transform_indices = @transform_2, window_bounds = array<i64: 1, 64>}, {transform_indices = @transform_3, window_bounds = array<i64: 16, 64>}]} {
    %c0_i32 = arith.constant 0 : i32
    %0 = arith.cmpi eq, %arg2, %c0_i32 : i32
    %1 = arith.extui %0 : i1 to i32
    %c0_i32_0 = arith.constant 0 : i32
    %2 = arith.cmpi ne, %1, %c0_i32_0 : i32
    scf.if %2 {
      %cst_10 = arith.constant 0.000000e+00 : f32
      %12 = vector.broadcast %cst_10 : f32 to vector<16x64xf32>
      %c0_11 = arith.constant 0 : index
      %c0_12 = arith.constant 0 : index
      %13 = vector.load %arg7[%c0_11, %c0_12] : memref<16x64xf32, #tpu.memory_space<vmem>>, vector<16x64xf32>
      tpu.vector_store %arg7[%c0_11, %c0_12], %12 {strides = array<i32>} : memref<16x64xf32, #tpu.memory_space<vmem>>, vector<16x64xf32>,
    } else {
    }
    %c0 = arith.constant 0 : index
    %c0_1 = arith.constant 0 : index
    %3 = vector.load %arg7[%c0, %c0_1] : memref<16x64xf32, #tpu.memory_space<vmem>>, vector<16x64xf32>
    %c0_2 = arith.constant 0 : index
    %c0_3 = arith.constant 0 : index
    %4 = vector.load %arg3[%c0_2, %c0_3] : memref<16x32xf32, #tpu.memory_space<vmem>>, vector<16x32xf32>
    %c0_4 = arith.constant 0 : index
    %c0_5 = arith.constant 0 : index
    %5 = vector.load %arg4[%c0_4, %c0_5] : memref<32x64xf32, #tpu.memory_space<vmem>>, vector<32x64xf32>
    %cst = arith.constant dense<0.000000e+00> : vector<16x64xf32>
    %6 = tpu.matmul %4, %5, %cst {dimension_numbers = #tpu.dot_dimension_numbers<[1], [0], [0], [1], [0, 0, 1, 1], [], []>} : vector<16x32xf32>, vector<32x64xf32>, vector<16x64xf32> -> vector<16x64xf32>
    %7 = arith.addf %3, %6 : vector<16x64xf32>
    %c0_6 = arith.constant 0 : index
    %c0_7 = arith.constant 0 : index
    %8 = vector.load %arg7[%c0_6, %c0_7] : memref<16x64xf32, #tpu.memory_space<vmem>>, vector<16x64xf32>
    tpu.vector_store %arg7[%c0_6, %c0_7], %7 {strides = array<i32>} : memref<16x64xf32, #tpu.memory_space<vmem>>, vector<16x64xf32>,
    %c0_i32_8 = arith.constant 0 : i32
    %9 = arith.cmpi eq, %arg2, %c0_i32_8 : i32
    %10 = arith.extui %9 : i1 to i32
    %c0_i32_9 = arith.constant 0 : i32
    %11 = arith.cmpi ne, %10, %c0_i32_9 : i32
    scf.if %11 {
      %c0_10 = arith.constant 0 : index
      %c0_11 = arith.constant 0 : index
      %12 = vector.load %arg7[%c0_10, %c0_11] : memref<16x64xf32, #tpu.memory_space<vmem>>, vector<16x64xf32>
      %c0_12 = arith.constant 0 : index
      %c0_13 = arith.constant 0 : index
      %13 = vector.load %arg5[%c0_12, %c0_13] : memref<1x64xf32, #tpu.memory_space<vmem>>, vector<1x64xf32>
      %14 = vector.broadcast %13 : vector<1x64xf32> to vector<16x64xf32>
      %15 = arith.addf %12, %14 : vector<16x64xf32>
      %cst_14 = arith.constant 0.000000e+00 : f32
      %16 = vector.broadcast %cst_14 : f32 to vector<16x64xf32>
      %17 = arith.maximumf %15, %16 : vector<16x64xf32>
      %c0_15 = arith.constant 0 : index
      %c0_16 = arith.constant 0 : index
      %18 = vector.load %arg6[%c0_15, %c0_16] : memref<16x64xf32, #tpu.memory_space<vmem>>, vector<16x64xf32>
      tpu.vector_store %arg6[%c0_15, %c0_16], %17 {strides = array<i32>} : memref<16x64xf32, #tpu.memory_space<vmem>>, vector<16x64xf32>,
    } else {
    }
    return
  }
  func.func @transform_0(%arg0: i32, %arg1: i32, %arg2: i32) -> (i32, i32) {
    %c0_i32 = arith.constant 0 : i32
    return %arg0, %arg2 : i32, i32
  }
  func.func @transform_1(%arg0: i32, %arg1: i32, %arg2: i32) -> (i32, i32) {
    %c0_i32 = arith.constant 0 : i32
    return %arg2, %arg1 : i32, i32
  }
  func.func @transform_2(%arg0: i32, %arg1: i32, %arg2: i32) -> (i32, i32) {
    %c0_i32 = arith.constant 0 : i32
    %c0_i32_0 = arith.constant 0 : i32
    return %c0_i32, %arg1 : i32, i32
  }
  func.func @transform_3(%arg0: i32, %arg1: i32, %arg2: i32) -> (i32, i32) {
    %c0_i32 = arith.constant 0 : i32
    return %arg0, %arg1 : i32, i32
  }
}

module attributes {stable_mosaic.version = 11 : i64} {
  func.func @_dense_kernel(%arg0: i32, %arg1: i32, %arg2: i32, %arg3: memref<16x64xf32, #tpu.memory_space<vmem>>, %arg4: memref<64x32xf32, #tpu.memory_space<vmem>>, %arg5: memref<1x32xf32, #tpu.memory_space<vmem>>, %arg6: memref<16x32xf32, #tpu.memory_space<vmem>>, %arg7: memref<1x32xf32, #tpu.memory_space<vmem>>, %arg8: memref<1x32xf32, #tpu.memory_space<vmem>>, %arg9: memref<16x32xf32, #tpu.memory_space<vmem>>, %arg10: memref<16x32xf32, #tpu.memory_space<vmem>>) attributes {dimension_semantics = [#tpu.dimension_semantics<parallel>, #tpu.dimension_semantics<parallel>, #tpu.dimension_semantics<arbitrary>], iteration_bounds = array<i64: 1, 1, 1>, scalar_prefetch = 0 : i64, scratch_operands = 1 : i64, tpu.core_type = #tpu.core_type<tc>, window_params = [{transform_indices = @transform_0, window_bounds = array<i64: 16, 64>}, {transform_indices = @transform_1, window_bounds = array<i64: 64, 32>}, {transform_indices = @transform_2, window_bounds = array<i64: 1, 32>}, {transform_indices = @transform_3, window_bounds = array<i64: 16, 32>}, {transform_indices = @transform_4, window_bounds = array<i64: 1, 32>}, {transform_indices = @transform_5, window_bounds = array<i64: 1, 32>}, {transform_indices = @transform_6, window_bounds = array<i64: 16, 32>}]} {
    %c0_i32 = arith.constant 0 : i32
    %0 = arith.cmpi eq, %arg2, %c0_i32 : i32
    %1 = arith.extui %0 : i1 to i32
    %c0_i32_0 = arith.constant 0 : i32
    %2 = arith.cmpi ne, %1, %c0_i32_0 : i32
    scf.if %2 {
      %cst_10 = arith.constant 0.000000e+00 : f32
      %12 = vector.broadcast %cst_10 : f32 to vector<16x32xf32>
      %c0_11 = arith.constant 0 : index
      %c0_12 = arith.constant 0 : index
      %13 = vector.load %arg10[%c0_11, %c0_12] : memref<16x32xf32, #tpu.memory_space<vmem>>, vector<16x32xf32>
      tpu.vector_store %arg10[%c0_11, %c0_12], %12 {strides = array<i32>} : memref<16x32xf32, #tpu.memory_space<vmem>>, vector<16x32xf32>,
    } else {
    }
    %c0 = arith.constant 0 : index
    %c0_1 = arith.constant 0 : index
    %3 = vector.load %arg10[%c0, %c0_1] : memref<16x32xf32, #tpu.memory_space<vmem>>, vector<16x32xf32>
    %c0_2 = arith.constant 0 : index
    %c0_3 = arith.constant 0 : index
    %4 = vector.load %arg3[%c0_2, %c0_3] : memref<16x64xf32, #tpu.memory_space<vmem>>, vector<16x64xf32>
    %c0_4 = arith.constant 0 : index
    %c0_5 = arith.constant 0 : index
    %5 = vector.load %arg4[%c0_4, %c0_5] : memref<64x32xf32, #tpu.memory_space<vmem>>, vector<64x32xf32>
    %cst = arith.constant dense<0.000000e+00> : vector<16x32xf32>
    %6 = tpu.matmul %4, %5, %cst {dimension_numbers = #tpu.dot_dimension_numbers<[1], [0], [0], [1], [0, 0, 1, 1], [], []>} : vector<16x64xf32>, vector<64x32xf32>, vector<16x32xf32> -> vector<16x32xf32>
    %7 = arith.addf %3, %6 : vector<16x32xf32>
    %c0_6 = arith.constant 0 : index
    %c0_7 = arith.constant 0 : index
    %8 = vector.load %arg10[%c0_6, %c0_7] : memref<16x32xf32, #tpu.memory_space<vmem>>, vector<16x32xf32>
    tpu.vector_store %arg10[%c0_6, %c0_7], %7 {strides = array<i32>} : memref<16x32xf32, #tpu.memory_space<vmem>>, vector<16x32xf32>,
    %c0_i32_8 = arith.constant 0 : i32
    %9 = arith.cmpi eq, %arg2, %c0_i32_8 : i32
    %10 = arith.extui %9 : i1 to i32
    %c0_i32_9 = arith.constant 0 : i32
    %11 = arith.cmpi ne, %10, %c0_i32_9 : i32
    scf.if %11 {
      %c0_10 = arith.constant 0 : index
      %c0_11 = arith.constant 0 : index
      %12 = vector.load %arg10[%c0_10, %c0_11] : memref<16x32xf32, #tpu.memory_space<vmem>>, vector<16x32xf32>
      %c0_12 = arith.constant 0 : index
      %c0_13 = arith.constant 0 : index
      %13 = vector.load %arg5[%c0_12, %c0_13] : memref<1x32xf32, #tpu.memory_space<vmem>>, vector<1x32xf32>
      %14 = vector.broadcast %13 : vector<1x32xf32> to vector<16x32xf32>
      %15 = arith.addf %12, %14 : vector<16x32xf32>
      %c0_14 = arith.constant 0 : index
      %c0_15 = arith.constant 0 : index
      %16 = vector.load %arg6[%c0_14, %c0_15] : memref<16x32xf32, #tpu.memory_space<vmem>>, vector<16x32xf32>
      %17 = arith.addf %15, %16 : vector<16x32xf32>
      %cst_16 = arith.constant dense<0.000000e+00> : vector<16xf32>
      %18 = vector.multi_reduction <add>, %17, %cst_16 [1] : vector<16x32xf32> to vector<16xf32>
      %19 = vector.shape_cast %18 : vector<16xf32> to vector<16x1xf32>
      %cst_17 = arith.constant 3.200000e+01 : f32
      %20 = vector.broadcast %cst_17 : f32 to vector<16x1xf32>
      %21 = arith.divf %19, %20 : vector<16x1xf32>
      %22 = vector.broadcast %21 : vector<16x1xf32> to vector<16x32xf32>
      %23 = arith.subf %17, %22 : vector<16x32xf32>
      %24 = arith.mulf %23, %23 : vector<16x32xf32>
      %cst_18 = arith.constant dense<0.000000e+00> : vector<16xf32>
      %25 = vector.multi_reduction <add>, %24, %cst_18 [1] : vector<16x32xf32> to vector<16xf32>
      %26 = vector.shape_cast %25 : vector<16xf32> to vector<16x1xf32>
      %cst_19 = arith.constant 3.200000e+01 : f32
      %27 = vector.broadcast %cst_19 : f32 to vector<16x1xf32>
      %28 = arith.divf %26, %27 : vector<16x1xf32>
      %29 = vector.broadcast %21 : vector<16x1xf32> to vector<16x32xf32>
      %30 = arith.subf %17, %29 : vector<16x32xf32>
      %cst_20 = arith.constant 9.99999974E-6 : f32
      %31 = vector.broadcast %cst_20 : f32 to vector<16x1xf32>
      %32 = arith.addf %28, %31 : vector<16x1xf32>
      %33 = math.rsqrt %32 : vector<16x1xf32>
      %34 = vector.broadcast %33 : vector<16x1xf32> to vector<16x32xf32>
      %35 = arith.mulf %30, %34 : vector<16x32xf32>
      %c0_21 = arith.constant 0 : index
      %c0_22 = arith.constant 0 : index
      %36 = vector.load %arg7[%c0_21, %c0_22] : memref<1x32xf32, #tpu.memory_space<vmem>>, vector<1x32xf32>
      %37 = vector.broadcast %36 : vector<1x32xf32> to vector<16x32xf32>
      %38 = arith.mulf %35, %37 : vector<16x32xf32>
      %c0_23 = arith.constant 0 : index
      %c0_24 = arith.constant 0 : index
      %39 = vector.load %arg8[%c0_23, %c0_24] : memref<1x32xf32, #tpu.memory_space<vmem>>, vector<1x32xf32>
      %40 = vector.broadcast %39 : vector<1x32xf32> to vector<16x32xf32>
      %41 = arith.addf %38, %40 : vector<16x32xf32>
      %c0_25 = arith.constant 0 : index
      %c0_26 = arith.constant 0 : index
      %42 = vector.load %arg9[%c0_25, %c0_26] : memref<16x32xf32, #tpu.memory_space<vmem>>, vector<16x32xf32>
      tpu.vector_store %arg9[%c0_25, %c0_26], %41 {strides = array<i32>} : memref<16x32xf32, #tpu.memory_space<vmem>>, vector<16x32xf32>,
    } else {
    }
    return
  }
  func.func @transform_0(%arg0: i32, %arg1: i32, %arg2: i32) -> (i32, i32) {
    %c0_i32 = arith.constant 0 : i32
    return %arg0, %arg2 : i32, i32
  }
  func.func @transform_1(%arg0: i32, %arg1: i32, %arg2: i32) -> (i32, i32) {
    %c0_i32 = arith.constant 0 : i32
    return %arg2, %arg1 : i32, i32
  }
  func.func @transform_2(%arg0: i32, %arg1: i32, %arg2: i32) -> (i32, i32) {
    %c0_i32 = arith.constant 0 : i32
    %c0_i32_0 = arith.constant 0 : i32
    return %c0_i32, %arg1 : i32, i32
  }
  func.func @transform_3(%arg0: i32, %arg1: i32, %arg2: i32) -> (i32, i32) {
    %c0_i32 = arith.constant 0 : i32
    return %arg0, %arg1 : i32, i32
  }
  func.func @transform_4(%arg0: i32, %arg1: i32, %arg2: i32) -> (i32, i32) {
    %c0_i32 = arith.constant 0 : i32
    %c0_i32_0 = arith.constant 0 : i32
    return %c0_i32, %arg1 : i32, i32
  }
  func.func @transform_5(%arg0: i32, %arg1: i32, %arg2: i32) -> (i32, i32) {
    %c0_i32 = arith.constant 0 : i32
    %c0_i32_0 = arith.constant 0 : i32
    return %c0_i32, %arg1 : i32, i32
  }
  func.func @transform_6(%arg0: i32, %arg1: i32, %arg2: i32) -> (i32, i32) {
    %c0_i32 = arith.constant 0 : i32
    return %arg0, %arg1 : i32, i32
  }
}

module attributes {stable_mosaic.version = 11 : i64} {
  func.func @_attn_kernel(%arg0: i32, %arg1: i32, %arg2: memref<1x8x32xf32, #tpu.memory_space<vmem>>, %arg3: memref<1x10x32xf32, #tpu.memory_space<vmem>>, %arg4: memref<1x10x32xf32, #tpu.memory_space<vmem>>, %arg5: memref<1x1x8x10xf32, #tpu.memory_space<vmem>>, %arg6: memref<1x8xf32, #tpu.memory_space<vmem>>, %arg7: memref<1x1xf32, #tpu.memory_space<vmem>>, %arg8: memref<1x8x32xf32, #tpu.memory_space<vmem>>, %arg9: memref<1x4x8x10xf32, #tpu.memory_space<vmem>>) attributes {dimension_semantics = [#tpu.dimension_semantics<parallel>, #tpu.dimension_semantics<parallel>], iteration_bounds = array<i64: 2, 1>, scalar_prefetch = 0 : i64, scratch_operands = 0 : i64, tpu.core_type = #tpu.core_type<tc>, window_params = [{transform_indices = @transform_0, window_bounds = array<i64: 1, 8, 32>}, {transform_indices = @transform_1, window_bounds = array<i64: 1, 10, 32>}, {transform_indices = @transform_2, window_bounds = array<i64: 1, 10, 32>}, {transform_indices = @transform_3, window_bounds = array<i64: 1, 1, 8, 10>}, {pipeline_mode = #tpu.pipeline_mode<synchronous>, transform_indices = @transform_4, window_bounds = array<i64: 1, 8>}, {pipeline_mode = #tpu.pipeline_mode<synchronous>, transform_indices = @transform_5, window_bounds = array<i64: 1, 1>}, {transform_indices = @transform_6, window_bounds = array<i64: 1, 8, 32>}, {transform_indices = @transform_7, window_bounds = array<i64: 1, 4, 8, 10>}]} {
    %c0 = arith.constant 0 : index
    %c0_0 = arith.constant 0 : index
    %c0_1 = arith.constant 0 : index
    %c0_2 = arith.constant 0 : index
    %0 = vector.load %arg5[%c0, %c0_0, %c0_1, %c0_2] : memref<1x1x8x10xf32, #tpu.memory_space<vmem>>, vector<1x1x8x10xf32>
    %1 = vector.shape_cast %0 : vector<1x1x8x10xf32> to vector<8x10xf32>
    %c0_3 = arith.constant 0 : index
    %c0_4 = arith.constant 0 : index
    %2 = vector.load %arg6[%c0_3, %c0_4] : memref<1x8xf32, #tpu.memory_space<vmem>>, vector<1x8xf32>
    %3 = vector.shape_cast %2 : vector<1x8xf32> to vector<8xf32>
    %c0_5 = arith.constant 0 : index
    %c0_6 = arith.constant 0 : index
    %4 = vector.load %arg7[%c0_5, %c0_6] : memref<1x1xf32, #tpu.memory_space<vmem>>, vector<1x1xf32>
    %c0_7 = arith.constant 0 : index
    %c0_8 = arith.constant 0 : index
    %c0_9 = arith.constant 0 : index
    %5 = vector.load %arg2[%c0_7, %c0_8, %c0_9] : memref<1x8x32xf32, #tpu.memory_space<vmem>>, vector<1x8x8xf32>
    %6 = vector.shape_cast %5 : vector<1x8x8xf32> to vector<8x8xf32>
    %c0_10 = arith.constant 0 : index
    %c0_11 = arith.constant 0 : index
    %c0_12 = arith.constant 0 : index
    %7 = vector.load %arg4[%c0_10, %c0_11, %c0_12] : memref<1x10x32xf32, #tpu.memory_space<vmem>>, vector<1x10x8xf32>
    %8 = vector.shape_cast %7 : vector<1x10x8xf32> to vector<10x8xf32>
    %c0_13 = arith.constant 0 : index
    %c0_14 = arith.constant 0 : index
    %c0_15 = arith.constant 0 : index
    %9 = vector.load %arg3[%c0_13, %c0_14, %c0_15] : memref<1x10x32xf32, #tpu.memory_space<vmem>>, vector<1x10x8xf32>
    %10 = vector.shape_cast %9 : vector<1x10x8xf32> to vector<10x8xf32>
    %11 = vector.shape_cast %6 : vector<8x8xf32> to vector<8x1x8xf32>
    %12 = vector.shape_cast %10 : vector<10x8xf32> to vector<1x10x8xf32>
    %13 = vector.broadcast %11 : vector<8x1x8xf32> to vector<8x10x8xf32>
    %14 = vector.broadcast %12 : vector<1x10x8xf32> to vector<8x10x8xf32>
    %15 = arith.addf %13, %14 : vector<8x10x8xf32>
    %16 = math.tanh %15 : vector<8x10x8xf32>
    %17 = vector.shape_cast %3 : vector<8xf32> to vector<1x1x8xf32>
    %18 = vector.broadcast %17 : vector<1x1x8xf32> to vector<8x10x8xf32>
    %19 = arith.mulf %16, %18 : vector<8x10x8xf32>
    %cst = arith.constant dense<0.000000e+00> : vector<8x10xf32>
    %20 = vector.multi_reduction <add>, %19, %cst [2] : vector<8x10x8xf32> to vector<8x10xf32>
    %21 = vector.broadcast %4 : vector<1x1xf32> to vector<8x10xf32>
    %22 = arith.addf %20, %21 : vector<8x10xf32>
    %cst_16 = arith.constant 0.000000e+00 : f32
    %23 = vector.broadcast %cst_16 : f32 to vector<8x10xf32>
    %24 = arith.cmpf oeq, %1, %23 : vector<8x10xf32>
    %cst_17 = arith.constant -1.000000e+10 : f32
    %25 = vector.broadcast %cst_17 : f32 to vector<8x10xf32>
    %26 = arith.select %24, %25, %22 : vector<8x10xi1>, vector<8x10xf32>
    %cst_18 = arith.constant dense<0xFF800000> : vector<8xf32>
    %27 = vector.multi_reduction <maximumf>, %26, %cst_18 [1] : vector<8x10xf32> to vector<8xf32>
    %28 = vector.shape_cast %27 : vector<8xf32> to vector<8x1xf32>
    %29 = vector.broadcast %28 : vector<8x1xf32> to vector<8x10xf32>
    %30 = arith.subf %26, %29 : vector<8x10xf32>
    %31 = math.exp %30 : vector<8x10xf32>
    %cst_19 = arith.constant dense<0.000000e+00> : vector<8xf32>
    %32 = vector.multi_reduction <add>, %31, %cst_19 [1] : vector<8x10xf32> to vector<8xf32>
    %33 = vector.shape_cast %32 : vector<8xf32> to vector<8x1xf32>
    %34 = tpu.reciprocal %33 {approx = true} : vector<8x1xf32> -> vector<8x1xf32>
    %35 = vector.broadcast %34 : vector<8x1xf32> to vector<8x10xf32>
    %36 = arith.mulf %31, %35 : vector<8x10xf32>
    %cst_20 = arith.constant dense<0.000000e+00> : vector<8x8xf32>
    %37 = tpu.matmul %36, %8, %cst_20 {dimension_numbers = #tpu.dot_dimension_numbers<[1], [0], [0], [1], [0, 0, 1, 1], [], []>} : vector<8x10xf32>, vector<10x8xf32>, vector<8x8xf32> -> vector<8x8xf32>
    %c0_21 = arith.constant 0 : index
    %c0_22 = arith.constant 0 : index
    %c0_23 = arith.constant 0 : index
    %38 = vector.load %arg8[%c0_21, %c0_22, %c0_23] : memref<1x8x32xf32, #tpu.memory_space<vmem>>, vector<1x8x8xf32>
    %39 = vector.shape_cast %38 : vector<1x8x8xf32> to vector<8x8xf32>
    %40 = vector.shape_cast %37 : vector<8x8xf32> to vector<1x8x8xf32>
    tpu.vector_store %arg8[%c0_21, %c0_22, %c0_23], %40 {strides = array<i32>} : memref<1x8x32xf32, #tpu.memory_space<vmem>>, vector<1x8x8xf32>,
    %c0_24 = arith.constant 0 : index
    %c0_25 = arith.constant 0 : index
    %c0_26 = arith.constant 0 : index
    %c0_27 = arith.constant 0 : index
    %41 = vector.load %arg9[%c0_24, %c0_25, %c0_26, %c0_27] : memref<1x4x8x10xf32, #tpu.memory_space<vmem>>, vector<1x1x8x10xf32>
    %42 = vector.shape_cast %41 : vector<1x1x8x10xf32> to vector<8x10xf32>
    %43 = vector.shape_cast %36 : vector<8x10xf32> to vector<1x1x8x10xf32>
    tpu.vector_store %arg9[%c0_24, %c0_25, %c0_26, %c0_27], %43 {strides = array<i32>} : memref<1x4x8x10xf32, #tpu.memory_space<vmem>>, vector<1x1x8x10xf32>,
    %c0_28 = arith.constant 0 : index
    %c0_29 = arith.constant 0 : index
    %c8 = arith.constant 8 : index
    %44 = vector.load %arg2[%c0_28, %c0_29, %c8] : memref<1x8x32xf32, #tpu.memory_space<vmem>>, vector<1x8x8xf32>
    %45 = vector.shape_cast %44 : vector<1x8x8xf32> to vector<8x8xf32>
    %c0_30 = arith.constant 0 : index
    %c0_31 = arith.constant 0 : index
    %c8_32 = arith.constant 8 : index
    %46 = vector.load %arg4[%c0_30, %c0_31, %c8_32] : memref<1x10x32xf32, #tpu.memory_space<vmem>>, vector<1x10x8xf32>
    %47 = vector.shape_cast %46 : vector<1x10x8xf32> to vector<10x8xf32>
    %c0_33 = arith.constant 0 : index
    %c0_34 = arith.constant 0 : index
    %c8_35 = arith.constant 8 : index
    %48 = vector.load %arg3[%c0_33, %c0_34, %c8_35] : memref<1x10x32xf32, #tpu.memory_space<vmem>>, vector<1x10x8xf32>
    %49 = vector.shape_cast %48 : vector<1x10x8xf32> to vector<10x8xf32>
    %50 = vector.shape_cast %45 : vector<8x8xf32> to vector<8x1x8xf32>
    %51 = vector.shape_cast %49 : vector<10x8xf32> to vector<1x10x8xf32>
    %52 = vector.broadcast %50 : vector<8x1x8xf32> to vector<8x10x8xf32>
    %53 = vector.broadcast %51 : vector<1x10x8xf32> to vector<8x10x8xf32>
    %54 = arith.addf %52, %53 : vector<8x10x8xf32>
    %55 = math.tanh %54 : vector<8x10x8xf32>
    %56 = vector.shape_cast %3 : vector<8xf32> to vector<1x1x8xf32>
    %57 = vector.broadcast %56 : vector<1x1x8xf32> to vector<8x10x8xf32>
    %58 = arith.mulf %55, %57 : vector<8x10x8xf32>
    %cst_36 = arith.constant dense<0.000000e+00> : vector<8x10xf32>
    %59 = vector.multi_reduction <add>, %58, %cst_36 [2] : vector<8x10x8xf32> to vector<8x10xf32>
    %60 = vector.broadcast %4 : vector<1x1xf32> to vector<8x10xf32>
    %61 = arith.addf %59, %60 : vector<8x10xf32>
    %cst_37 = arith.constant 0.000000e+00 : f32
    %62 = vector.broadcast %cst_37 : f32 to vector<8x10xf32>
    %63 = arith.cmpf oeq, %1, %62 : vector<8x10xf32>
    %cst_38 = arith.constant -1.000000e+10 : f32
    %64 = vector.broadcast %cst_38 : f32 to vector<8x10xf32>
    %65 = arith.select %63, %64, %61 : vector<8x10xi1>, vector<8x10xf32>
    %cst_39 = arith.constant dense<0xFF800000> : vector<8xf32>
    %66 = vector.multi_reduction <maximumf>, %65, %cst_39 [1] : vector<8x10xf32> to vector<8xf32>
    %67 = vector.shape_cast %66 : vector<8xf32> to vector<8x1xf32>
    %68 = vector.broadcast %67 : vector<8x1xf32> to vector<8x10xf32>
    %69 = arith.subf %65, %68 : vector<8x10xf32>
    %70 = math.exp %69 : vector<8x10xf32>
    %cst_40 = arith.constant dense<0.000000e+00> : vector<8xf32>
    %71 = vector.multi_reduction <add>, %70, %cst_40 [1] : vector<8x10xf32> to vector<8xf32>
    %72 = vector.shape_cast %71 : vector<8xf32> to vector<8x1xf32>
    %73 = tpu.reciprocal %72 {approx = true} : vector<8x1xf32> -> vector<8x1xf32>
    %74 = vector.broadcast %73 : vector<8x1xf32> to vector<8x10xf32>
    %75 = arith.mulf %70, %74 : vector<8x10xf32>
    %cst_41 = arith.constant dense<0.000000e+00> : vector<8x8xf32>
    %76 = tpu.matmul %75, %47, %cst_41 {dimension_numbers = #tpu.dot_dimension_numbers<[1], [0], [0], [1], [0, 0, 1, 1], [], []>} : vector<8x10xf32>, vector<10x8xf32>, vector<8x8xf32> -> vector<8x8xf32>
    %c0_42 = arith.constant 0 : index
    %c0_43 = arith.constant 0 : index
    %c8_44 = arith.constant 8 : index
    %77 = vector.load %arg8[%c0_42, %c0_43, %c8_44] : memref<1x8x32xf32, #tpu.memory_space<vmem>>, vector<1x8x8xf32>
    %78 = vector.shape_cast %77 : vector<1x8x8xf32> to vector<8x8xf32>
    %79 = vector.shape_cast %76 : vector<8x8xf32> to vector<1x8x8xf32>
    tpu.vector_store %arg8[%c0_42, %c0_43, %c8_44], %79 {strides = array<i32>} : memref<1x8x32xf32, #tpu.memory_space<vmem>>, vector<1x8x8xf32>,
    %c0_45 = arith.constant 0 : index
    %c1 = arith.constant 1 : index
    %c0_46 = arith.constant 0 : index
    %c0_47 = arith.constant 0 : index
    %80 = vector.load %arg9[%c0_45, %c1, %c0_46, %c0_47] : memref<1x4x8x10xf32, #tpu.memory_space<vmem>>, vector<1x1x8x10xf32>
    %81 = vector.shape_cast %80 : vector<1x1x8x10xf32> to vector<8x10xf32>
    %82 = vector.shape_cast %75 : vector<8x10xf32> to vector<1x1x8x10xf32>
    tpu.vector_store %arg9[%c0_45, %c1, %c0_46, %c0_47], %82 {strides = array<i32>} : memref<1x4x8x10xf32, #tpu.memory_space<vmem>>, vector<1x1x8x10xf32>,
    %c0_48 = arith.constant 0 : index
    %c0_49 = arith.constant 0 : index
    %c16 = arith.constant 16 : index
    %83 = vector.load %arg2[%c0_48, %c0_49, %c16] : memref<1x8x32xf32, #tpu.memory_space<vmem>>, vector<1x8x8xf32>
    %84 = vector.shape_cast %83 : vector<1x8x8xf32> to vector<8x8xf32>
    %c0_50 = arith.constant 0 : index
    %c0_51 = arith.constant 0 : index
    %c16_52 = arith.constant 16 : index
    %85 = vector.load %arg4[%c0_50, %c0_51, %c16_52] : memref<1x10x32xf32, #tpu.memory_space<vmem>>, vector<1x10x8xf32>
    %86 = vector.shape_cast %85 : vector<1x10x8xf32> to vector<10x8xf32>
    %c0_53 = arith.constant 0 : index
    %c0_54 = arith.constant 0 : index
    %c16_55 = arith.constant 16 : index
    %87 = vector.load %arg3[%c0_53, %c0_54, %c16_55] : memref<1x10x32xf32, #tpu.memory_space<vmem>>, vector<1x10x8xf32>
    %88 = vector.shape_cast %87 : vector<1x10x8xf32> to vector<10x8xf32>
    %89 = vector.shape_cast %84 : vector<8x8xf32> to vector<8x1x8xf32>
    %90 = vector.shape_cast %88 : vector<10x8xf32> to vector<1x10x8xf32>
    %91 = vector.broadcast %89 : vector<8x1x8xf32> to vector<8x10x8xf32>
    %92 = vector.broadcast %90 : vector<1x10x8xf32> to vector<8x10x8xf32>
    %93 = arith.addf %91, %92 : vector<8x10x8xf32>
    %94 = math.tanh %93 : vector<8x10x8xf32>
    %95 = vector.shape_cast %3 : vector<8xf32> to vector<1x1x8xf32>
    %96 = vector.broadcast %95 : vector<1x1x8xf32> to vector<8x10x8xf32>
    %97 = arith.mulf %94, %96 : vector<8x10x8xf32>
    %cst_56 = arith.constant dense<0.000000e+00> : vector<8x10xf32>
    %98 = vector.multi_reduction <add>, %97, %cst_56 [2] : vector<8x10x8xf32> to vector<8x10xf32>
    %99 = vector.broadcast %4 : vector<1x1xf32> to vector<8x10xf32>
    %100 = arith.addf %98, %99 : vector<8x10xf32>
    %cst_57 = arith.constant 0.000000e+00 : f32
    %101 = vector.broadcast %cst_57 : f32 to vector<8x10xf32>
    %102 = arith.cmpf oeq, %1, %101 : vector<8x10xf32>
    %cst_58 = arith.constant -1.000000e+10 : f32
    %103 = vector.broadcast %cst_58 : f32 to vector<8x10xf32>
    %104 = arith.select %102, %103, %100 : vector<8x10xi1>, vector<8x10xf32>
    %cst_59 = arith.constant dense<0xFF800000> : vector<8xf32>
    %105 = vector.multi_reduction <maximumf>, %104, %cst_59 [1] : vector<8x10xf32> to vector<8xf32>
    %106 = vector.shape_cast %105 : vector<8xf32> to vector<8x1xf32>
    %107 = vector.broadcast %106 : vector<8x1xf32> to vector<8x10xf32>
    %108 = arith.subf %104, %107 : vector<8x10xf32>
    %109 = math.exp %108 : vector<8x10xf32>
    %cst_60 = arith.constant dense<0.000000e+00> : vector<8xf32>
    %110 = vector.multi_reduction <add>, %109, %cst_60 [1] : vector<8x10xf32> to vector<8xf32>
    %111 = vector.shape_cast %110 : vector<8xf32> to vector<8x1xf32>
    %112 = tpu.reciprocal %111 {approx = true} : vector<8x1xf32> -> vector<8x1xf32>
    %113 = vector.broadcast %112 : vector<8x1xf32> to vector<8x10xf32>
    %114 = arith.mulf %109, %113 : vector<8x10xf32>
    %cst_61 = arith.constant dense<0.000000e+00> : vector<8x8xf32>
    %115 = tpu.matmul %114, %86, %cst_61 {dimension_numbers = #tpu.dot_dimension_numbers<[1], [0], [0], [1], [0, 0, 1, 1], [], []>} : vector<8x10xf32>, vector<10x8xf32>, vector<8x8xf32> -> vector<8x8xf32>
    %c0_62 = arith.constant 0 : index
    %c0_63 = arith.constant 0 : index
    %c16_64 = arith.constant 16 : index
    %116 = vector.load %arg8[%c0_62, %c0_63, %c16_64] : memref<1x8x32xf32, #tpu.memory_space<vmem>>, vector<1x8x8xf32>
    %117 = vector.shape_cast %116 : vector<1x8x8xf32> to vector<8x8xf32>
    %118 = vector.shape_cast %115 : vector<8x8xf32> to vector<1x8x8xf32>
    tpu.vector_store %arg8[%c0_62, %c0_63, %c16_64], %118 {strides = array<i32>} : memref<1x8x32xf32, #tpu.memory_space<vmem>>, vector<1x8x8xf32>,
    %c0_65 = arith.constant 0 : index
    %c2 = arith.constant 2 : index
    %c0_66 = arith.constant 0 : index
    %c0_67 = arith.constant 0 : index
    %119 = vector.load %arg9[%c0_65, %c2, %c0_66, %c0_67] : memref<1x4x8x10xf32, #tpu.memory_space<vmem>>, vector<1x1x8x10xf32>
    %120 = vector.shape_cast %119 : vector<1x1x8x10xf32> to vector<8x10xf32>
    %121 = vector.shape_cast %114 : vector<8x10xf32> to vector<1x1x8x10xf32>
    tpu.vector_store %arg9[%c0_65, %c2, %c0_66, %c0_67], %121 {strides = array<i32>} : memref<1x4x8x10xf32, #tpu.memory_space<vmem>>, vector<1x1x8x10xf32>,
    %c0_68 = arith.constant 0 : index
    %c0_69 = arith.constant 0 : index
    %c24 = arith.constant 24 : index
    %122 = vector.load %arg2[%c0_68, %c0_69, %c24] : memref<1x8x32xf32, #tpu.memory_space<vmem>>, vector<1x8x8xf32>
    %123 = vector.shape_cast %122 : vector<1x8x8xf32> to vector<8x8xf32>
    %c0_70 = arith.constant 0 : index
    %c0_71 = arith.constant 0 : index
    %c24_72 = arith.constant 24 : index
    %124 = vector.load %arg4[%c0_70, %c0_71, %c24_72] : memref<1x10x32xf32, #tpu.memory_space<vmem>>, vector<1x10x8xf32>
    %125 = vector.shape_cast %124 : vector<1x10x8xf32> to vector<10x8xf32>
    %c0_73 = arith.constant 0 : index
    %c0_74 = arith.constant 0 : index
    %c24_75 = arith.constant 24 : index
    %126 = vector.load %arg3[%c0_73, %c0_74, %c24_75] : memref<1x10x32xf32, #tpu.memory_space<vmem>>, vector<1x10x8xf32>
    %127 = vector.shape_cast %126 : vector<1x10x8xf32> to vector<10x8xf32>
    %128 = vector.shape_cast %123 : vector<8x8xf32> to vector<8x1x8xf32>
    %129 = vector.shape_cast %127 : vector<10x8xf32> to vector<1x10x8xf32>
    %130 = vector.broadcast %128 : vector<8x1x8xf32> to vector<8x10x8xf32>
    %131 = vector.broadcast %129 : vector<1x10x8xf32> to vector<8x10x8xf32>
    %132 = arith.addf %130, %131 : vector<8x10x8xf32>
    %133 = math.tanh %132 : vector<8x10x8xf32>
    %134 = vector.shape_cast %3 : vector<8xf32> to vector<1x1x8xf32>
    %135 = vector.broadcast %134 : vector<1x1x8xf32> to vector<8x10x8xf32>
    %136 = arith.mulf %133, %135 : vector<8x10x8xf32>
    %cst_76 = arith.constant dense<0.000000e+00> : vector<8x10xf32>
    %137 = vector.multi_reduction <add>, %136, %cst_76 [2] : vector<8x10x8xf32> to vector<8x10xf32>
    %138 = vector.broadcast %4 : vector<1x1xf32> to vector<8x10xf32>
    %139 = arith.addf %137, %138 : vector<8x10xf32>
    %cst_77 = arith.constant 0.000000e+00 : f32
    %140 = vector.broadcast %cst_77 : f32 to vector<8x10xf32>
    %141 = arith.cmpf oeq, %1, %140 : vector<8x10xf32>
    %cst_78 = arith.constant -1.000000e+10 : f32
    %142 = vector.broadcast %cst_78 : f32 to vector<8x10xf32>
    %143 = arith.select %141, %142, %139 : vector<8x10xi1>, vector<8x10xf32>
    %cst_79 = arith.constant dense<0xFF800000> : vector<8xf32>
    %144 = vector.multi_reduction <maximumf>, %143, %cst_79 [1] : vector<8x10xf32> to vector<8xf32>
    %145 = vector.shape_cast %144 : vector<8xf32> to vector<8x1xf32>
    %146 = vector.broadcast %145 : vector<8x1xf32> to vector<8x10xf32>
    %147 = arith.subf %143, %146 : vector<8x10xf32>
    %148 = math.exp %147 : vector<8x10xf32>
    %cst_80 = arith.constant dense<0.000000e+00> : vector<8xf32>
    %149 = vector.multi_reduction <add>, %148, %cst_80 [1] : vector<8x10xf32> to vector<8xf32>
    %150 = vector.shape_cast %149 : vector<8xf32> to vector<8x1xf32>
    %151 = tpu.reciprocal %150 {approx = true} : vector<8x1xf32> -> vector<8x1xf32>
    %152 = vector.broadcast %151 : vector<8x1xf32> to vector<8x10xf32>
    %153 = arith.mulf %148, %152 : vector<8x10xf32>
    %cst_81 = arith.constant dense<0.000000e+00> : vector<8x8xf32>
    %154 = tpu.matmul %153, %125, %cst_81 {dimension_numbers = #tpu.dot_dimension_numbers<[1], [0], [0], [1], [0, 0, 1, 1], [], []>} : vector<8x10xf32>, vector<10x8xf32>, vector<8x8xf32> -> vector<8x8xf32>
    %c0_82 = arith.constant 0 : index
    %c0_83 = arith.constant 0 : index
    %c24_84 = arith.constant 24 : index
    %155 = vector.load %arg8[%c0_82, %c0_83, %c24_84] : memref<1x8x32xf32, #tpu.memory_space<vmem>>, vector<1x8x8xf32>
    %156 = vector.shape_cast %155 : vector<1x8x8xf32> to vector<8x8xf32>
    %157 = vector.shape_cast %154 : vector<8x8xf32> to vector<1x8x8xf32>
    tpu.vector_store %arg8[%c0_82, %c0_83, %c24_84], %157 {strides = array<i32>} : memref<1x8x32xf32, #tpu.memory_space<vmem>>, vector<1x8x8xf32>,
    %c0_85 = arith.constant 0 : index
    %c3 = arith.constant 3 : index
    %c0_86 = arith.constant 0 : index
    %c0_87 = arith.constant 0 : index
    %158 = vector.load %arg9[%c0_85, %c3, %c0_86, %c0_87] : memref<1x4x8x10xf32, #tpu.memory_space<vmem>>, vector<1x1x8x10xf32>
    %159 = vector.shape_cast %158 : vector<1x1x8x10xf32> to vector<8x10xf32>
    %160 = vector.shape_cast %153 : vector<8x10xf32> to vector<1x1x8x10xf32>
    tpu.vector_store %arg9[%c0_85, %c3, %c0_86, %c0_87], %160 {strides = array<i32>} : memref<1x4x8x10xf32, #tpu.memory_space<vmem>>, vector<1x1x8x10xf32>,
    return
  }
  func.func @transform_0(%arg0: i32, %arg1: i32) -> (i32, i32, i32) {
    %c0_i32 = arith.constant 0 : i32
    %c0_i32_0 = arith.constant 0 : i32
    return %arg0, %arg1, %c0_i32 : i32, i32, i32
  }
  func.func @transform_1(%arg0: i32, %arg1: i32) -> (i32, i32, i32) {
    %c0_i32 = arith.constant 0 : i32
    %c0_i32_0 = arith.constant 0 : i32
    %c0_i32_1 = arith.constant 0 : i32
    return %arg0, %c0_i32, %c0_i32_0 : i32, i32, i32
  }
  func.func @transform_2(%arg0: i32, %arg1: i32) -> (i32, i32, i32) {
    %c0_i32 = arith.constant 0 : i32
    %c0_i32_0 = arith.constant 0 : i32
    %c0_i32_1 = arith.constant 0 : i32
    return %arg0, %c0_i32, %c0_i32_0 : i32, i32, i32
  }
  func.func @transform_3(%arg0: i32, %arg1: i32) -> (i32, i32, i32, i32) {
    %c0_i32 = arith.constant 0 : i32
    %c0_i32_0 = arith.constant 0 : i32
    %c0_i32_1 = arith.constant 0 : i32
    return %arg0, %c0_i32, %arg1, %c0_i32_0 : i32, i32, i32, i32
  }
  func.func @transform_4(%arg0: i32, %arg1: i32) -> (i32, i32) {
    %c0_i32 = arith.constant 0 : i32
    %c0_i32_0 = arith.constant 0 : i32
    %c0_i32_1 = arith.constant 0 : i32
    return %c0_i32, %c0_i32_0 : i32, i32
  }
  func.func @transform_5(%arg0: i32, %arg1: i32) -> (i32, i32) {
    %c0_i32 = arith.constant 0 : i32
    %c0_i32_0 = arith.constant 0 : i32
    %c0_i32_1 = arith.constant 0 : i32
    return %c0_i32, %c0_i32_0 : i32, i32
  }
  func.func @transform_6(%arg0: i32, %arg1: i32) -> (i32, i32, i32) {
    %c0_i32 = arith.constant 0 : i32
    %c0_i32_0 = arith.constant 0 : i32
    return %arg0, %arg1, %c0_i32 : i32, i32, i32
  }
  func.func @transform_7(%arg0: i32, %arg1: i32) -> (i32, i32, i32, i32) {
    %c0_i32 = arith.constant 0 : i32
    %c0_i32_0 = arith.constant 0 : i32
    %c0_i32_1 = arith.constant 0 : i32
    return %arg0, %c0_i32, %arg1, %c0_i32_0 : i32, i32, i32, i32
  }
}

module attributes {stable_mosaic.version = 11 : i64} {
  func.func @_dense_kernel(%arg0: i32, %arg1: i32, %arg2: i32, %arg3: memref<16x32xf32, #tpu.memory_space<vmem>>, %arg4: memref<32x50xf32, #tpu.memory_space<vmem>>, %arg5: memref<1x50xf32, #tpu.memory_space<vmem>>, %arg6: memref<16x50xf32, #tpu.memory_space<vmem>>, %arg7: memref<16x50xf32, #tpu.memory_space<vmem>>) attributes {dimension_semantics = [#tpu.dimension_semantics<parallel>, #tpu.dimension_semantics<parallel>, #tpu.dimension_semantics<arbitrary>], iteration_bounds = array<i64: 1, 1, 1>, scalar_prefetch = 0 : i64, scratch_operands = 1 : i64, tpu.core_type = #tpu.core_type<tc>, window_params = [{transform_indices = @transform_0, window_bounds = array<i64: 16, 32>}, {transform_indices = @transform_1, window_bounds = array<i64: 32, 50>}, {transform_indices = @transform_2, window_bounds = array<i64: 1, 50>}, {transform_indices = @transform_3, window_bounds = array<i64: 16, 50>}]} {
    %c0_i32 = arith.constant 0 : i32
    %0 = arith.cmpi eq, %arg2, %c0_i32 : i32
    %1 = arith.extui %0 : i1 to i32
    %c0_i32_0 = arith.constant 0 : i32
    %2 = arith.cmpi ne, %1, %c0_i32_0 : i32
    scf.if %2 {
      %cst_10 = arith.constant 0.000000e+00 : f32
      %12 = vector.broadcast %cst_10 : f32 to vector<16x50xf32>
      %c0_11 = arith.constant 0 : index
      %c0_12 = arith.constant 0 : index
      %13 = vector.load %arg7[%c0_11, %c0_12] : memref<16x50xf32, #tpu.memory_space<vmem>>, vector<16x50xf32>
      tpu.vector_store %arg7[%c0_11, %c0_12], %12 {strides = array<i32>} : memref<16x50xf32, #tpu.memory_space<vmem>>, vector<16x50xf32>,
    } else {
    }
    %c0 = arith.constant 0 : index
    %c0_1 = arith.constant 0 : index
    %3 = vector.load %arg7[%c0, %c0_1] : memref<16x50xf32, #tpu.memory_space<vmem>>, vector<16x50xf32>
    %c0_2 = arith.constant 0 : index
    %c0_3 = arith.constant 0 : index
    %4 = vector.load %arg3[%c0_2, %c0_3] : memref<16x32xf32, #tpu.memory_space<vmem>>, vector<16x32xf32>
    %c0_4 = arith.constant 0 : index
    %c0_5 = arith.constant 0 : index
    %5 = vector.load %arg4[%c0_4, %c0_5] : memref<32x50xf32, #tpu.memory_space<vmem>>, vector<32x50xf32>
    %cst = arith.constant dense<0.000000e+00> : vector<16x50xf32>
    %6 = tpu.matmul %4, %5, %cst {dimension_numbers = #tpu.dot_dimension_numbers<[1], [0], [0], [1], [0, 0, 1, 1], [], []>} : vector<16x32xf32>, vector<32x50xf32>, vector<16x50xf32> -> vector<16x50xf32>
    %7 = arith.addf %3, %6 : vector<16x50xf32>
    %c0_6 = arith.constant 0 : index
    %c0_7 = arith.constant 0 : index
    %8 = vector.load %arg7[%c0_6, %c0_7] : memref<16x50xf32, #tpu.memory_space<vmem>>, vector<16x50xf32>
    tpu.vector_store %arg7[%c0_6, %c0_7], %7 {strides = array<i32>} : memref<16x50xf32, #tpu.memory_space<vmem>>, vector<16x50xf32>,
    %c0_i32_8 = arith.constant 0 : i32
    %9 = arith.cmpi eq, %arg2, %c0_i32_8 : i32
    %10 = arith.extui %9 : i1 to i32
    %c0_i32_9 = arith.constant 0 : i32
    %11 = arith.cmpi ne, %10, %c0_i32_9 : i32
    scf.if %11 {
      %c0_10 = arith.constant 0 : index
      %c0_11 = arith.constant 0 : index
      %12 = vector.load %arg7[%c0_10, %c0_11] : memref<16x50xf32, #tpu.memory_space<vmem>>, vector<16x50xf32>
      %c0_12 = arith.constant 0 : index
      %c0_13 = arith.constant 0 : index
      %13 = vector.load %arg5[%c0_12, %c0_13] : memref<1x50xf32, #tpu.memory_space<vmem>>, vector<1x50xf32>
      %14 = vector.broadcast %13 : vector<1x50xf32> to vector<16x50xf32>
      %15 = arith.addf %12, %14 : vector<16x50xf32>
      %c0_14 = arith.constant 0 : index
      %c0_15 = arith.constant 0 : index
      %16 = vector.load %arg6[%c0_14, %c0_15] : memref<16x50xf32, #tpu.memory_space<vmem>>, vector<16x50xf32>
      tpu.vector_store %arg6[%c0_14, %c0_15], %15 {strides = array<i32>} : memref<16x50xf32, #tpu.memory_space<vmem>>, vector<16x50xf32>,
    } else {
    }
    return
  }
  func.func @transform_0(%arg0: i32, %arg1: i32, %arg2: i32) -> (i32, i32) {
    %c0_i32 = arith.constant 0 : i32
    return %arg0, %arg2 : i32, i32
  }
  func.func @transform_1(%arg0: i32, %arg1: i32, %arg2: i32) -> (i32, i32) {
    %c0_i32 = arith.constant 0 : i32
    return %arg2, %arg1 : i32, i32
  }
  func.func @transform_2(%arg0: i32, %arg1: i32, %arg2: i32) -> (i32, i32) {
    %c0_i32 = arith.constant 0 : i32
    %c0_i32_0 = arith.constant 0 : i32
    return %c0_i32, %arg1 : i32, i32
  }
  func.func @transform_3(%arg0: i32, %arg1: i32, %arg2: i32) -> (i32, i32) {
    %c0_i32 = arith.constant 0 : i32
    return %arg0, %arg1 : i32, i32
  }
}

</mosaic_0001>

<bundles_post_ra>
// kernel: decoder_forward.22
= control target key start
LH: loop header
LB: loop body
LE: loop exit
PB: predicated region body
PF: predicated region fallthrough
CT: control target
= control target key end

     0   :  { %vm18_vm0 = vcmask 261120   ;;  %v88_v2 = vmov 0.0   ;;  %s144_s1 = inlined_call_operand.vmem [shape: f32[32,32], index: 1, kind: input, shape index: {}]   ;;  %s145_s2 = inlined_call_operand.vmem [shape: f32[1,32], index: 2, kind: input, shape index: {}]   ;;  %s146_s0 = inlined_call_operand.vmem [shape: f32[16,32], index: 0, kind: input, shape index: {}]   ;;  %s147_s3 = inlined_call_operand.vmem [shape: f32[16,32], index: 3, kind: output, shape index: {}]  }
   0x1   :  { %v28_v0 = vld [vmem:[%s144_s1 + $0x18] sm:$0xff]  ;;  %v27_v1 = vld [vmem:[%s144_s1 + $0x10] sm:$0xff]  ;;  %19 = vst.msk [vmem:[#allocation2] sm:$0xff] %vm18_vm0, %v88_v2  ;;  %v26_v3 = vld [vmem:[%s144_s1 + $0x8] sm:$0xff] }
   0x2   :  { %48 = vmatpush.msra.mxu0 %v28_v0  ;;  %82 = vmatpush.msra.mxu1 %v28_v0  ;;  %20 = vst.msk [vmem:[#allocation2 + $0x8] sm:$0xff] %vm18_vm0, %v88_v2  ;;  %v25_v4 = vld [vmem:[%s144_s1] sm:$0xff]  ;;  %v24_v6 = vld [vmem:[%s146_s0 + $0x8] sm:$0xff] }
   0x3   :  { %v23_v5 = vld [vmem:[%s146_s0] sm:$0xff] }
   0x4   :  { %49 = vmatpush.msra.mxu0 %v27_v1  ;;  %83 = vmatpush.msra.mxu1 %v27_v1  ;;  %v87_v13 = vld [vmem:[%s145_s2] ss:$0 sm:$0xff] }
   0x6   :  { %50 = vmatpush.msra.mxu0 %v26_v3  ;;  %84 = vmatpush.msra.mxu1 %v26_v3 }
   0x8   :  { %51 = vmatpush.msra.mxu0 %v25_v4  ;;  %85 = vmatpush.msra.mxu1 %v25_v4  ;;  %v21_v7 = vld [vmem:[#allocation2] sm:$0xff] }
   0x9   :  { %80 = vmatmul.msk.f32.vlgmr.msra.gmra.mxu0 %vm18_vm0, %v23_v5  ;;  %81 = vmatmul.msk.f32.vlgmr.msra.gmra.mxu1 %vm18_vm0, %v24_v6  ;;  %v22_v8 = vld [vmem:[#allocation2 + $0x8] sm:$0xff] }
  0x86   :  { %v53_v9 = vpop.f32.mrf.mxu0  ;;  %v56_v10 = vpop.f32.mrf.mxu1 }
  0x87   :  { %v59_v11 = vadd.f32 %v53_v9, %v21_v7  ;;  %v60_v12 = vadd.f32 %v56_v10, %v22_v8 }
  0x89   :  { %61 = vst.msk [vmem:[#allocation2] sm:$0xff] %vm18_vm0, %v59_v11 }
  0x8a   :  { %62 = vst.msk [vmem:[#allocation2 + $0x8] sm:$0xff] %vm18_vm0, %v60_v12 }
  0x90   :  { %v66_v14 = vld [vmem:[#allocation2] sm:$0xff] }
  0x91   :  { %v72_v15 = vadd.f32 %v87_v13, %v66_v14  ;;  %v67_v16 = vld [vmem:[#allocation2 + $0x8] sm:$0xff] }
  0x92   :  { %v73_v17 = vadd.f32 %v87_v13, %v67_v16 }
  0x93   :  { %74 = vst.msk [vmem:[%s147_s3] sm:$0xff] %vm18_vm0, %v72_v15 }
  0x94   :  { %75 = vst.msk [vmem:[%s147_s3 + $0x8] sm:$0xff] %vm18_vm0, %v73_v17 }

// kernel: decoder_forward.19
= control target key start
LH: loop header
LB: loop body
LE: loop exit
PB: predicated region body
PF: predicated region fallthrough
CT: control target
= control target key end

     0   :  { %vm18_vm0 = vcmask 785408   ;;  %v89_v2 = vmov 0.0   ;;  %vm29_vm1 = vcmask 261120   ;;  %s143_s1 = inlined_call_operand.vmem [shape: f32[32,96], index: 1, kind: input, shape index: {}]   ;;  %s144_s2 = inlined_call_operand.vmem [shape: f32[1,96], index: 2, kind: input, shape index: {}]   ;;  %s145_s0 = inlined_call_operand.vmem [shape: f32[16,32], index: 0, kind: input, shape index: {}]   ;;  %s146_s3 = inlined_call_operand.vmem [shape: f32[16,96], index: 3, kind: output, shape index: {}]  }
   0x1   :  { %v28_v0 = vld [vmem:[%s143_s1 + $0x18] sm:$0xff]  ;;  %v27_v1 = vld [vmem:[%s143_s1 + $0x10] sm:$0xff]  ;;  %19 = vst.msk [vmem:[#allocation2] sm:$0xff] %vm18_vm0, %v89_v2  ;;  %v26_v3 = vld [vmem:[%s143_s1 + $0x8] sm:$0xff] }
   0x2   :  { %48 = vmatpush.msra.mxu0 %v28_v0  ;;  %83 = vmatpush.msra.mxu1 %v28_v0  ;;  %20 = vst.msk [vmem:[#allocation2 + $0x8] sm:$0xff] %vm18_vm0, %v89_v2  ;;  %v25_v4 = vld [vmem:[%s143_s1] sm:$0xff]  ;;  %v24_v6 = vld [vmem:[%s145_s0 + $0x8] sm:$0xff] }
   0x3   :  { %v23_v5 = vld [vmem:[%s145_s0] sm:$0xff] }
   0x4   :  { %49 = vmatpush.msra.mxu0 %v27_v1  ;;  %84 = vmatpush.msra.mxu1 %v27_v1  ;;  %v88_v13 = vld [vmem:[%s144_s2] ss:$0 sm:$0xff] }
   0x6   :  { %50 = vmatpush.msra.mxu0 %v26_v3  ;;  %85 = vmatpush.msra.mxu1 %v26_v3 }
   0x8   :  { %51 = vmatpush.msra.mxu0 %v25_v4  ;;  %86 = vmatpush.msra.mxu1 %v25_v4  ;;  %v21_v7 = vld [vmem:[#allocation2] sm:$0xff] }
   0x9   :  { %81 = vmatmul.msk.f32.vlgmr.msra.gmra.mxu0 %vm29_vm1, %v23_v5  ;;  %82 = vmatmul.msk.f32.vlgmr.msra.gmra.mxu1 %vm29_vm1, %v24_v6  ;;  %v22_v8 = vld [vmem:[#allocation2 + $0x8] sm:$0xff] }
  0x86   :  { %v53_v9 = vpop.f32.mrf.mxu0  ;;  %v56_v10 = vpop.f32.mrf.mxu1 }
  0x87   :  { %v59_v11 = vadd.f32 %v53_v9, %v21_v7  ;;  %v60_v12 = vadd.f32 %v56_v10, %v22_v8 }
  0x89   :  { %62 = vst.msk [vmem:[#allocation2] sm:$0xff] %vm18_vm0, %v59_v11 }
  0x8a   :  { %63 = vst.msk [vmem:[#allocation2 + $0x8] sm:$0xff] %vm18_vm0, %v60_v12 }
  0x90   :  { %v67_v14 = vld [vmem:[#allocation2] sm:$0xff] }
  0x91   :  { %v73_v15 = vadd.f32 %v88_v13, %v67_v14  ;;  %v68_v16 = vld [vmem:[#allocation2 + $0x8] sm:$0xff] }
  0x92   :  { %v74_v17 = vadd.f32 %v88_v13, %v68_v16 }
  0x93   :  { %75 = vst.msk [vmem:[%s146_s3] sm:$0xff] %vm18_vm0, %v73_v15 }
  0x94   :  { %76 = vst.msk [vmem:[%s146_s3 + $0x8] sm:$0xff] %vm18_vm0, %v74_v17 }

// kernel: decoder_forward.21
= control target key start
LH: loop header
LB: loop body
LE: loop exit
PB: predicated region body
PF: predicated region fallthrough
CT: control target
= control target key end

     0   :  { %vm27_vm0 = vcmask 261120   ;;  %v173_v2 = vmov 0.0   ;;  %v174_v24 = vmov 32.0   ;;  %s261_s1 = inlined_call_operand.vmem [shape: f32[32,32], index: 1, kind: input, shape index: {}]   ;;  %s262_s0 = inlined_call_operand.vmem [shape: f32[16,32], index: 0, kind: input, shape index: {}]   ;;  %s263_s2 = inlined_call_operand.vmem [shape: f32[1,32], index: 2, kind: input, shape index: {}]   ;;  %s264_s3 = inlined_call_operand.vmem [shape: f32[16,32], index: 3, kind: input, shape index: {}]   ;;  %s265_s4 = inlined_call_operand.vmem [shape: f32[1,32], index: 4, kind: input, shape index: {}]   ;;  %s266_s5 = inlined_call_operand.vmem [shape: f32[1,32], index: 5, kind: input, shape index: {}]   ;;  %s267_s6 = inlined_call_operand.vmem [shape: f32[16,32], index: 6, kind: output, shape index: {}]  }
   0x1   :  { %v37_v0 = vld [vmem:[%s261_s1 + $0x18] sm:$0xff]  ;;  %v36_v1 = vld [vmem:[%s261_s1 + $0x10] sm:$0xff]  ;;  %28 = vst.msk [vmem:[#allocation2] sm:$0xff] %vm27_vm0, %v173_v2  ;;  %v35_v3 = vld [vmem:[%s261_s1 + $0x8] sm:$0xff]  ;;  %167 = vrcp.f32 %v174_v24 }
   0x2   :  { %57 = vmatpush.msra.mxu0 %v37_v0  ;;  %158 = vmatpush.msra.mxu1 %v37_v0  ;;  %29 = vst.msk [vmem:[#allocation2 + $0x8] sm:$0xff] %vm27_vm0, %v173_v2  ;;  %v34_v4 = vld [vmem:[%s261_s1] sm:$0xff]  ;;  %v33_v6 = vld [vmem:[%s262_s0 + $0x8] sm:$0xff] }
   0x3   :  { %v32_v5 = vld [vmem:[%s262_s0] sm:$0xff]  ;;  %v84_v20 = vld [vmem:[%s264_s3 + $0x8] sm:$0xff] }
   0x4   :  { %58 = vmatpush.msra.mxu0 %v36_v1  ;;  %159 = vmatpush.msra.mxu1 %v36_v1  ;;  %v164_v13 = vld [vmem:[%s263_s2] ss:$0 sm:$0xff] }
   0x5   :  { %v83_v15 = vld [vmem:[%s264_s3] sm:$0xff] }
   0x6   :  { %59 = vmatpush.msra.mxu0 %v35_v3  ;;  %160 = vmatpush.msra.mxu1 %v35_v3  ;;  %v165_v55 = vld [vmem:[%s265_s4] ss:$0 sm:$0xff] }
   0x7   :  { %v168_v25 = vpop.eup %167  ;;  %v166_v58 = vld [vmem:[%s266_s5] ss:$0 sm:$0xff] }
   0x8   :  { %60 = vmatpush.msra.mxu0 %v34_v4  ;;  %161 = vmatpush.msra.mxu1 %v34_v4  ;;  %v30_v7 = vld [vmem:[#allocation2] sm:$0xff]  ;;  %v94_v26 = vmul.f32 32.0, %v168_v25  ;;  %vm98_vm1 = vweird.f32 %v168_v25 }
   0x9   :  { %156 = vmatmul.msk.f32.vlgmr.msra.gmra.mxu0 %vm27_vm0, %v32_v5  ;;  %157 = vmatmul.msk.f32.vlgmr.msra.gmra.mxu1 %vm27_vm0, %v33_v6  ;;  %v31_v8 = vld [vmem:[#allocation2 + $0x8] sm:$0xff] }
   0xa   :  { %v95_v27 = vsub.f32 1.0, %v94_v26 }
   0xc   :  { %v96_v28 = vmul.f32 %v168_v25, %v95_v27 }
   0xe   :  { %v97_v29 = vadd.f32 %v168_v25, %v96_v28 }
  0x10   :  { %v99_v30 = vsel %vm98_vm1, %v168_v25, %v97_v29 }
  0x86   :  { %v62_v9 = vpop.f32.mrf.mxu0  ;;  %v65_v10 = vpop.f32.mrf.mxu1 }
  0x87   :  { %v68_v11 = vadd.f32 %v62_v9, %v30_v7  ;;  %v69_v12 = vadd.f32 %v65_v10, %v31_v8 }
  0x89   :  { %70 = vst.msk [vmem:[#allocation2] sm:$0xff] %vm27_vm0, %v68_v11 }
  0x8a   :  { %71 = vst.msk [vmem:[#allocation2 + $0x8] sm:$0xff] %vm27_vm0, %v69_v12 }
  0x90   :  { %v75_v14 = vld [vmem:[#allocation2] sm:$0xff] }
  0x91   :  { %v81_v16 = vadd.f32 %v164_v13, %v75_v14  ;;  %v76_v17 = vld [vmem:[#allocation2 + $0x8] sm:$0xff] }
  0x92   :  { %v82_v19 = vadd.f32 %v164_v13, %v76_v17 }
  0x93   :  { %v85_v18 = vadd.f32 %v83_v15, %v81_v16 }
  0x94   :  { %v86_v22 = vadd.f32 %v84_v20, %v82_v19 }
  0x95   :  { %v87_v21 = vsel %vm27_vm0, %v85_v18, 0.0 }
  0x96   :  { %88 = vadd.xlane.f32.xlu0 %v87_v21  ;;  %v90_v23 = vsel %vm27_vm0, %v86_v22, 0.0 }
  0x9e   :  { %91 = vadd.xlane.f32.xlu0 %v90_v23 }
 0x109   :  { %v89_v31 = vpop.xlane.xlu0 %88 }
 0x10a   :  { %v100_v32 = vmul.f32 %v99_v30, %v89_v31 }
 0x10c   :  { %v102_v33 = vsub.f32 %v85_v18, %v100_v32 }
 0x10e   :  { %v104_v34 = vmul.f32 %v102_v33, %v102_v33 }
 0x110   :  { %v106_v35 = vsel %vm27_vm0, %v104_v34, 0.0 }
 0x111   :  { %107 = vadd.xlane.f32.xlu1 %v106_v35  ;;  %v92_v36 = vpop.xlane.xlu0 %91 }
 0x112   :  { %v101_v37 = vmul.f32 %v99_v30, %v92_v36 }
 0x114   :  { %v103_v38 = vsub.f32 %v86_v22, %v101_v37 }
 0x116   :  { %v105_v39 = vmul.f32 %v103_v38, %v103_v38 }
 0x118   :  { %v109_v40 = vsel %vm27_vm0, %v105_v39, 0.0 }
 0x119   :  { %110 = vadd.xlane.f32.xlu1 %v109_v40 }
 0x184   :  { %v108_v41 = vpop.xlane.xlu1 %107 }
 0x185   :  { %v112_v42 = vmul.f32 %v108_v41, %v99_v30 }
 0x187   :  { %v114_v43 = vadd.f32 1e-05, %v112_v42 }
 0x189   :  { %169 = vrsqrt.f32 %v114_v43  ;;  %vm122_vm3 = vweird.f32 %v114_v43 }
 0x18c   :  { %v111_v44 = vpop.xlane.xlu1 %110 }
 0x18d   :  { %v113_v45 = vmul.f32 %v111_v44, %v99_v30 }
 0x18f   :  { %v170_v46 = vpop.eup %169  ;;  %v115_v47 = vadd.f32 1e-05, %v113_v45 }
 0x190   :  { %v117_v48 = vmul.f32 %v170_v46, %v114_v43  ;;  %vm123_vm2 = vweird.f32 %v170_v46 }
 0x191   :  { %171 = vrsqrt.f32 %v115_v47  ;;  %vm124_vm4 = vmor %vm122_vm3, %vm123_vm2  ;;  %vm132_vm6 = vweird.f32 %v115_v47 }
 0x192   :  { %v118_v49 = vmul.f32 %v170_v46, %v117_v48 }
 0x194   :  { %v119_v50 = vmul.f32 0.5, %v118_v49 }
 0x196   :  { %v120_v51 = vsub.f32 1.5, %v119_v50 }
 0x197   :  { %v172_v52 = vpop.eup %171 }
 0x198   :  { %v121_v53 = vmul.f32 %v170_v46, %v120_v51  ;;  %v127_v54 = vmul.f32 %v172_v52, %v115_v47  ;;  %vm133_vm5 = vweird.f32 %v172_v52 }
 0x199   :  { %vm134_vm7 = vmor %vm132_vm6, %vm133_vm5 }
 0x19a   :  { %v125_v56 = vsel %vm124_vm4, %v170_v46, %v121_v53  ;;  %v128_v57 = vmul.f32 %v172_v52, %v127_v54 }
 0x19b   :  { %v136_v59 = vmul.f32 %v125_v56, %v102_v33 }
 0x19c   :  { %v129_v60 = vmul.f32 0.5, %v128_v57 }
 0x19d   :  { %v142_v61 = vmul.f32 %v165_v55, %v136_v59 }
 0x19e   :  { %v130_v62 = vsub.f32 1.5, %v129_v60 }
 0x19f   :  { %v148_v63 = vadd.f32 %v166_v58, %v142_v61 }
 0x1a0   :  { %v131_v0 = vmul.f32 %v172_v52, %v130_v62 }
 0x1a1   :  { %150 = vst.msk [vmem:[%s267_s6] sm:$0xff] %vm27_vm0, %v148_v63 }
 0x1a2   :  { %v135_v1 = vsel %vm134_vm7, %v172_v52, %v131_v0 }
 0x1a3   :  { %v137_v2 = vmul.f32 %v135_v1, %v103_v38 }
 0x1a5   :  { %v143_v3 = vmul.f32 %v165_v55, %v137_v2 }
 0x1a7   :  { %v149_v4 = vadd.f32 %v166_v58, %v143_v3 }
 0x1a9   :  { %151 = vst.msk [vmem:[%s267_s6 + $0x8] sm:$0xff] %vm27_vm0, %v149_v4 }

// kernel: decoder_forward.20
= control target key start
LH: loop header
LB: loop body
LE: loop exit
PB: predicated region body
PF: predicated region fallthrough
CT: control target
= control target key end

     0   :  { %s1334_s23 = smov 0   ;;  %s1336_s24 = smov 0   ;;  %s1643_s0 = inlined_call_operand.vmem [shape: f32[2,8,32], index: 0, kind: input, shape index: {}]   ;;  %s1644_s1 = inlined_call_operand.vmem [shape: f32[2,8,32], index: 1, kind: input, shape index: {}]   ;;  %s1645_s2 = inlined_call_operand.vmem [shape: f32[2,8,32], index: 2, kind: input, shape index: {}]   ;;  %s1646_s3 = inlined_call_operand.vmem [shape: f32[2,1,8,8], index: 3, kind: input, shape index: {}]   ;;  %s1647_s4 = inlined_call_operand.vmem [shape: f32[1,8], index: 4, kind: input, shape index: {}]   ;;  %s1648_s5 = inlined_call_operand.<no memory space> [shape: f32[1,1], index: 5, kind: input, shape index: {}]   ;;  %s1649_s6 = inlined_call_operand.vmem [shape: f32[2,8,32], index: 6, kind: output, shape index: {}]  }
   0x1   :  { %v11_v0 = vstv %s1648_s5  ;;  %s1338_s25 = smov 0  }
   0x2   :  { %12 = vst [vmem:[#allocation2] sm:$0x1] %v11_v0 }
   0x3 LB: > { %s30_s5 = sadd.s32 1, %s1283_s24  ;;  %p1186_p0 = scmp.ge.s32.totalorder %s1287_s25, 1  ;;  %s1287_s25 = sphi %s1338_s25, %s18_s25   ;;  %s1283_s24 = sphi %s1336_s24, %s1651_s24   ;;  %s1279_s23 = sphi %s1334_s23, %s1650_s23  }
   0x4   : > { %p32_p1 = scmp.ge.s32.totalorder %s30_s5, 2  ;;  %p264_p2 = scmp.lt.s32.totalorder %s1287_s25, 3 }
   0x6   : > { %s1653_s5 = smov (%p32_p1, %s30_s5), 0  ;;  %p265_p3 = pnand %p1186_p0, %p264_p2 }
   0x7   : > { %s1289_s28 = smov (!%p265_p3), 16   ;;  %s1290_s29 = smov (!%p265_p3), 8  }
   0x8   : > { %268 = sbr.rel (%p265_p3) target bundleno = 935 (0x3a7), region = 44  ;;  %s1292_s30 = smov (!%p265_p3), 24  }
   0x9   : > { %p313_p4 = scmp.lt.s32.totalorder (!%p265_p3), %s1279_s23, 1  ;;  %s1293_s14 = smov (!%p265_p3), 112  }
   0xa   : > { %s1294_s15 = smov (!%p265_p3), 104   ;;  %s1295_s16 = smov (!%p265_p3), 120  }
   0xd   : > { %v1355_v1 = vld [vmem:[%s1647_s4] ss:$0 sm:$0xff]  ;;  %v1291_v3 = vmov 0   ;;  %s1655_s23 = smov (!%p313_p4, %s1279_s23), 1  ;;  %vm399_vm0 = vcmask 64512   ;;  %vm457_vm1 = vcmask 1041409  }
   0xe   : > { %v1232_v2 = vld [vmem:[#allocation2] ss:$0 sm:$0xff]  ;;  %738 = vrot.lane.b32.xlu0 %v1355_v1, %s1289_s28  ;;  %551 = vrot.lane.b32.xlu1 %v1355_v1, %s1290_s29  ;;  %s1363_s7 = sshll.u32 %s1655_s23, 3  ;;  %vm459_vm2 = vcmask 1042434   ;;  %vm461_vm3 = vcmask 1043459   ;;  %vm463_vm4 = vcmask 1044484  }
   0xf   : > { %1229 = vset.pattern.permute.xlu2 %v1291_v3  ;;  %1230 = vset.pattern.permute.xlu0 %v1291_v3  ;;  %s319_s10 = scalar_lea.vmem %s1643_s0, %s1363_s7  ;;  %s323_s13 = scalar_lea.vmem %s1644_s1, %s1363_s7  ;;  %vm465_vm5 = vcmask 1045509   ;;  %vm467_vm6 = vcmask 1046534   ;;  %vm469_vm7 = vcmask 1047559   ;;  %vm693_vm9 = vcmask 130112  }
  0x10   : > { %427 = vperm.xlu2 %1229, %v1232_v2   ;;  %v695_v4 = vld [vmem:[%s319_s10] sm:$0xff]  ;;  %s334_s19 = scalar_lea.vmem %s1646_s3, %s1363_s7  ;;  %s327_s22 = scalar_lea.vmem %s1645_s2, %s1363_s7  ;;  %vm880_vm10 = vcmask 195712   ;;  %vm1067_vm11 = vcmask 261312  }
  0x11   : > { %v699_v5 = vrot.slane %v695_v4, 1  ;;  %v706_v6 = vperm.slane %v695_v4, 0  ;;  %v697_v7 = vld [vmem:[%s323_s13] sm:$0xff]  ;;  %v700_v11 = vrot.slane %v695_v4, 2  ;;  %v702_v13 = vrot.slane %v695_v4, 4  ;;  %s341_s27 = scalar_lea.vmem %s1649_s6, %s1363_s7 }
  0x12   : > { %v701_v16 = vrot.slane %v695_v4, 3  ;;  %v703_v24 = vrot.slane %v695_v4, 5  ;;  %v704_v33 = vrot.slane %v695_v4, 6  ;;  %v705_v41 = vrot.slane %v695_v4, 7 }
  0x13   : > { %v707_v8 = vperm.slane %v699_v5, 0  ;;  %v722_v9 = vadd.f32 %v706_v6, %v697_v7  ;;  %v708_v12 = vperm.slane %v700_v11, 0  ;;  %v710_v19 = vperm.slane %v702_v13, 0 }
  0x14   : > { %v709_v22 = vperm.slane %v701_v16, 0  ;;  %v711_v28 = vperm.slane %v703_v24, 0  ;;  %v712_v36 = vperm.slane %v704_v33, 0  ;;  %v713_v43 = vperm.slane %v705_v41, 0 }
  0x15   : > { %v723_v10 = vadd.f32 %v707_v8, %v697_v7  ;;  %1233 = vtanh.f32 %v722_v9  ;;  %v724_v15 = vadd.f32 %v708_v12, %v697_v7  ;;  %v726_v23 = vadd.f32 %v710_v19, %v697_v7 }
  0x16   : > { %925 = vrot.lane.b32.xlu0 %v1355_v1, %s1292_s30  ;;  %v725_v25 = vadd.f32 %v709_v22, %v697_v7  ;;  %v727_v32 = vadd.f32 %v711_v28, %v697_v7  ;;  %v728_v40 = vadd.f32 %v712_v36, %v697_v7  ;;  %v729_v48 = vadd.f32 %v713_v43, %v697_v7 }
  0x17   : > { %1235 = vtanh.f32 %v723_v10 }
  0x18   : > { %1237 = vtanh.f32 %v724_v15 }
  0x19   : > { %1239 = vtanh.f32 %v726_v23 }
  0x1a   : > { %1241 = vtanh.f32 %v725_v25 }
  0x1b   : > { %v1373_v14 = vpop.eup %1233  ;;  %1243 = vtanh.f32 %v727_v32 }
  0x1c   : > { %1245 = vtanh.f32 %v728_v40 }
  0x1d   : > { %v1375_v17 = vpop.eup %1235  ;;  %1247 = vtanh.f32 %v729_v48 }
  0x1e   : > { %v1381_v26 = vpop.eup %1237 }
  0x1f   : > { %v1389_v34 = vpop.eup %1239 }
  0x20   : > { %v1391_v35 = vpop.eup %1241 }
  0x21   : > { %v1399_v42 = vpop.eup %1243 }
  0x22   : > { %v1407_v49 = vpop.eup %1245 }
  0x23   : > { %v1415_v53 = vpop.eup %1247 }
  0x6a   : > { %v1437_v0 = vpop.permute.xlu2 %427 }
  0x80   : > { %v739_v18 = vpop.permute.xlu0 %738  ;;  %v552_v47 = vpop.permute.xlu1 %551 }
  0x81   : > { %v741_v20 = vmul.f32 %v1373_v14, %v739_v18  ;;  %v742_v21 = vmul.f32 %v1375_v17, %v739_v18  ;;  %v743_v31 = vmul.f32 %v1381_v26, %v739_v18  ;;  %v745_v38 = vmul.f32 %v1389_v34, %v739_v18 }
  0x82   : > { %v744_v39 = vmul.f32 %v1391_v35, %v739_v18  ;;  %v746_v44 = vmul.f32 %v1399_v42, %v739_v18  ;;  %v555_v50 = vmul.f32 %v1375_v17, %v552_v47  ;;  %v554_v51 = vmul.f32 %v1373_v14, %v552_v47 }
  0x83   : > { %757 = vrot.lane.b32.xlu1 %v741_v20, %s1293_s14  ;;  %759 = vrot.lane.b32.xlu2 %v742_v21, %s1293_s14  ;;  %v747_v52 = vmul.f32 %v1407_v49, %v739_v18  ;;  %v748_v54 = vmul.f32 %v1415_v53, %v739_v18  ;;  %v556_v55 = vmul.f32 %v1381_v26, %v552_v47 }
  0x84   : > { %v557_v58 = vmul.f32 %v1391_v35, %v552_v47  ;;  %v560_v60 = vmul.f32 %v1407_v49, %v552_v47  ;;  %v559_v61 = vmul.f32 %v1399_v42, %v552_v47  ;;  %v558_v62 = vmul.f32 %v1389_v34, %v552_v47 }
  0x85   : > { %v561_v63 = vmul.f32 %v1415_v53, %v552_v47 }
  0x88   : > { %v926_v27 = vpop.permute.xlu0 %925 }
  0x89   : > { %v928_v29 = vmul.f32 %v1373_v14, %v926_v27  ;;  %v929_v30 = vmul.f32 %v1375_v17, %v926_v27  ;;  %v930_v37 = vmul.f32 %v1381_v26, %v926_v27  ;;  %v932_v45 = vmul.f32 %v1389_v34, %v926_v27 }
  0x8a   : > { %v931_v46 = vmul.f32 %v1391_v35, %v926_v27  ;;  %v933_v56 = vmul.f32 %v1399_v42, %v926_v27  ;;  %v935_v57 = vmul.f32 %v1415_v53, %v926_v27  ;;  %v934_v59 = vmul.f32 %v1407_v49, %v926_v27 }
  0x8b   : > { %944 = vrot.lane.b32.xlu0 %v928_v29, %s1294_s15  ;;  %946 = vrot.lane.b32.xlu1 %v929_v30, %s1294_s15 }
  0x8c   : > { %761 = vrot.lane.b32.xlu2 %v743_v31, %s1293_s14 }
  0x93   : > { %948 = vrot.lane.b32.xlu0 %v930_v37, %s1294_s15  ;;  %765 = vrot.lane.b32.xlu1 %v745_v38, %s1293_s14 }
  0x94   : > { %763 = vrot.lane.b32.xlu2 %v744_v39, %s1293_s14 }
  0x9b   : > { %767 = vrot.lane.b32.xlu0 %v746_v44, %s1293_s14  ;;  %952 = vrot.lane.b32.xlu1 %v932_v45, %s1294_s15 }
  0x9c   : > { %950 = vrot.lane.b32.xlu2 %v931_v46, %s1294_s15 }
  0xa3   : > { %769 = vrot.lane.b32.xlu1 %v747_v52, %s1293_s14  ;;  %572 = vrot.lane.b32.xlu0 %v555_v50, %s1295_s16 }
  0xa4   : > { %570 = vrot.lane.b32.xlu2 %v554_v51, %s1295_s16 }
  0xab   : > { %771 = vrot.lane.b32.xlu1 %v748_v54, %s1293_s14  ;;  %574 = vrot.lane.b32.xlu0 %v556_v55, %s1295_s16  ;;  %v393_v54 = vmul.f32 %v1381_v26, %v1355_v1  ;;  %v392_v26 = vmul.f32 %v1375_v17, %v1355_v1  ;;  %v397_v17 = vmul.f32 %v1407_v49, %v1355_v1 }
  0xac   : > { %954 = vrot.lane.b32.xlu2 %v933_v56, %s1294_s15 }
  0xad   : > { %v406_v55 = vsel %vm399_vm0, %v393_v54, 0.0  ;;  %v1518_v54 = vld [vmem:[%s334_s19] sm:$0xff] }
  0xae   : > { %vm438_vm8 = vcmp.eq.f32.partialorder %v1518_v54, 0.0 }
  0xb3   : > { %958 = vrot.lane.b32.xlu1 %v935_v57, %s1294_s15  ;;  %576 = vrot.lane.b32.xlu0 %v557_v58, %s1295_s16 }
  0xb4   : > { %956 = vrot.lane.b32.xlu2 %v934_v59, %s1294_s15 }
  0xbb   : > { %582 = vrot.lane.b32.xlu1 %v560_v60, %s1295_s16  ;;  %580 = vrot.lane.b32.xlu0 %v559_v61, %s1295_s16  ;;  %v396_v60 = vmul.f32 %v1399_v42, %v1355_v1  ;;  %v391_v61 = vmul.f32 %v1373_v14, %v1355_v1  ;;  %v394_v42 = vmul.f32 %v1391_v35, %v1355_v1 }
  0xbc   : > { %578 = vrot.lane.b32.xlu2 %v558_v62, %s1295_s16 }
  0xbd   : > { %v415_v62 = vsel %vm399_vm0, %v396_v60, 0.0  ;;  %v409_v14 = vsel %vm399_vm0, %v394_v42, 0.0 }
  0xc4   : > { %584 = vrot.lane.b32.xlu2 %v561_v63, %s1295_s16  ;;  %v400_v63 = vsel %vm399_vm0, %v391_v61, 0.0 }
  0xdd   : > { %v760_v2 = vpop.permute.xlu2 %759 }
  0xde   : > { %v784_v3 = vsel %vm399_vm0, %v760_v2, 0.0  ;;  %v403_v2 = vsel %vm399_vm0, %v392_v26, 0.0 }
  0xe5   : > { %785 = vadd.xlane.f32.xlu1 %v784_v3  ;;  %v395_v3 = vmul.f32 %v1389_v34, %v1355_v1 }
  0xe6   : > { %v762_v4 = vpop.permute.xlu2 %761 }
  0xe7   : > { %v787_v5 = vsel %vm399_vm0, %v762_v4, 0.0  ;;  %v412_v4 = vsel %vm399_vm0, %v395_v3, 0.0 }
  0xed   : > { %788 = vadd.xlane.f32.xlu2 %v787_v5  ;;  %v398_v5 = vmul.f32 %v1415_v53, %v1355_v1  ;;  %v447_v53 = vlaneseq }
  0xee   : > { %v764_v6 = vpop.permute.xlu2 %763 }
  0xef   : > { %v790_v7 = vsel %vm399_vm0, %v764_v6, 0.0  ;;  %v418_v6 = vsel %vm399_vm0, %v397_v17, 0.0 }
  0xf5   : > { %791 = vadd.xlane.f32.xlu2 %v790_v7  ;;  %v758_v8 = vpop.permute.xlu1 %757  ;;  %v421_v7 = vsel %vm399_vm0, %v398_v5, 0.0 }
  0xf6   : > { %v951_v9 = vpop.permute.xlu2 %950  ;;  %v781_v10 = vsel %vm399_vm0, %v758_v8, 0.0 }
  0xf7   : > { %782 = vadd.xlane.f32.xlu0 %v781_v10  ;;  %v977_v11 = vsel %vm399_vm0, %v951_v9, 0.0 }
  0xfd   : > { %978 = vadd.xlane.f32.xlu2 %v977_v11  ;;  %v945_v12 = vpop.permute.xlu0 %944  ;;  %v947_v13 = vpop.permute.xlu1 %946 }
  0xfe   : > { %v571_v15 = vpop.permute.xlu2 %570  ;;  %v971_v16 = vsel %vm399_vm0, %v947_v13, 0.0  ;;  %v968_v18 = vsel %vm399_vm0, %v945_v12, 0.0 }
  0xff   : > { %972 = vadd.xlane.f32.xlu1 %v971_v16  ;;  %969 = vadd.xlane.f32.xlu0 %v968_v18  ;;  %v594_v19 = vsel %vm399_vm0, %v571_v15, 0.0 }
 0x105   : > { %595 = vadd.xlane.f32.xlu2 %v594_v19  ;;  %v949_v20 = vpop.permute.xlu0 %948  ;;  %v766_v21 = vpop.permute.xlu1 %765 }
 0x106   : > { %v955_v22 = vpop.permute.xlu2 %954  ;;  %v793_v23 = vsel %vm399_vm0, %v766_v21, 0.0  ;;  %v974_v24 = vsel %vm399_vm0, %v949_v20, 0.0  ;;  %v1490_v20 = vand.u32 127, %v447_v53 }
 0x107   : > { %794 = vadd.xlane.f32.xlu1 %v793_v23  ;;  %975 = vadd.xlane.f32.xlu0 %v974_v24  ;;  %v983_v25 = vsel %vm399_vm0, %v955_v22, 0.0 }
 0x10d   : > { %984 = vadd.xlane.f32.xlu2 %v983_v25  ;;  %v768_v27 = vpop.permute.xlu0 %767  ;;  %v953_v28 = vpop.permute.xlu1 %952 }
 0x10e   : > { %v957_v29 = vpop.permute.xlu2 %956  ;;  %v980_v30 = vsel %vm399_vm0, %v953_v28, 0.0  ;;  %v796_v31 = vsel %vm399_vm0, %v768_v27, 0.0 }
 0x10f   : > { %981 = vadd.xlane.f32.xlu1 %v980_v30  ;;  %797 = vadd.xlane.f32.xlu0 %v796_v31  ;;  %v986_v32 = vsel %vm399_vm0, %v957_v29, 0.0 }
 0x115   : > { %987 = vadd.xlane.f32.xlu2 %v986_v32  ;;  %v770_v33 = vpop.permute.xlu1 %769  ;;  %v573_v36 = vpop.permute.xlu0 %572 }
 0x116   : > { %v799_v37 = vsel %vm399_vm0, %v770_v33, 0.0  ;;  %v597_v38 = vsel %vm399_vm0, %v573_v36, 0.0  ;;  %v579_v39 = vpop.permute.xlu2 %578 }
 0x117   : > { %800 = vadd.xlane.f32.xlu1 %v799_v37  ;;  %598 = vadd.xlane.f32.xlu0 %v597_v38  ;;  %v606_v40 = vsel %vm399_vm0, %v579_v39, 0.0 }
 0x11d   : > { %607 = vadd.xlane.f32.xlu2 %v606_v40  ;;  %v772_v41 = vpop.permute.xlu1 %771  ;;  %v575_v43 = vpop.permute.xlu0 %574 }
 0x11e   : > { %v802_v44 = vsel %vm399_vm0, %v772_v41, 0.0  ;;  %v600_v45 = vsel %vm399_vm0, %v575_v43, 0.0  ;;  %v585_v46 = vpop.permute.xlu2 %584 }
 0x11f   : > { %803 = vadd.xlane.f32.xlu1 %v802_v44  ;;  %601 = vadd.xlane.f32.xlu0 %v600_v45  ;;  %v615_v47 = vsel %vm399_vm0, %v585_v46, 0.0 }
 0x125   : > { %616 = vadd.xlane.f32.xlu2 %v615_v47  ;;  %v959_v48 = vpop.permute.xlu1 %958  ;;  %v577_v50 = vpop.permute.xlu0 %576 }
 0x126   : > { %v989_v51 = vsel %vm399_vm0, %v959_v48, 0.0  ;;  %v603_v52 = vsel %vm399_vm0, %v577_v50, 0.0 }
 0x127   : > { %990 = vadd.xlane.f32.xlu1 %v989_v51  ;;  %604 = vadd.xlane.f32.xlu0 %v603_v52 }
 0x12d   : > { %407 = vadd.xlane.f32.xlu2 %v406_v55  ;;  %v583_v56 = vpop.permute.xlu1 %582  ;;  %v581_v57 = vpop.permute.xlu0 %580 }
 0x12e   : > { %v612_v58 = vsel %vm399_vm0, %v583_v56, 0.0  ;;  %v609_v59 = vsel %vm399_vm0, %v581_v57, 0.0 }
 0x12f   : > { %613 = vadd.xlane.f32.xlu1 %v612_v58  ;;  %610 = vadd.xlane.f32.xlu0 %v609_v59 }
 0x135   : > { %416 = vadd.xlane.f32.xlu2 %v415_v62 }
 0x137   : > { %401 = vadd.xlane.f32.xlu0 %v400_v63  ;;  %404 = vadd.xlane.f32.xlu1 %v403_v2 }
 0x13f   : > { %410 = vadd.xlane.f32.xlu0 %v409_v14  ;;  %413 = vadd.xlane.f32.xlu1 %v412_v4 }
 0x147   : > { %419 = vadd.xlane.f32.xlu0 %v418_v6  ;;  %422 = vadd.xlane.f32.xlu1 %v421_v7 }
 0x158   : > { %v786_v8 = vpop.xlane.xlu1 %785 }
 0x159   : > { %v806_v21 = vadd.f32 %v786_v8, %v1437_v0 }
 0x15b   : > { %v822_v27 = vperm.slane %v806_v21, %v1490_v20 }
 0x160   : > { %v789_v35 = vpop.xlane.xlu2 %788 }
 0x161   : > { %v807_v23 = vadd.f32 %v789_v35, %v1437_v0 }
 0x163   : > { %v823_v37 = vperm.slane %v807_v23, %v1490_v20 }
 0x168   : > { %v792_v34 = vpop.xlane.xlu2 %791 }
 0x169   : > { %v808_v28 = vadd.f32 %v792_v34, %v1437_v0 }
 0x16a   : > { %v783_v9 = vpop.xlane.xlu0 %782 }
 0x16b   : > { %v805_v19 = vadd.f32 %v783_v9, %v1437_v0  ;;  %v824_v43 = vperm.slane %v808_v28, %v1490_v20 }
 0x16d   : > { %v821_v22 = vperm.slane %v805_v19, %v1490_v20 }
 0x16f   : > { %v829_v31 = vsel %vm457_vm1, %v822_v27, %v821_v22 }
 0x170   : > { %v979_v10 = vpop.xlane.xlu2 %978  ;;  %v830_v40 = vsel %vm459_vm2, %v823_v37, %v829_v31 }
 0x171   : > { %v995_v55 = vadd.f32 %v979_v10, %v1437_v0  ;;  %v831_v56 = vsel %vm461_vm3, %v824_v43, %v830_v40 }
 0x172   : > { %v973_v11 = vpop.xlane.xlu1 %972  ;;  %v970_v12 = vpop.xlane.xlu0 %969 }
 0x173   : > { %v993_v32 = vadd.f32 %v973_v11, %v1437_v0  ;;  %v992_v33 = vadd.f32 %v970_v12, %v1437_v0  ;;  %v1011_v3 = vperm.slane %v995_v55, %v1490_v20 }
 0x175   : > { %v1009_v44 = vperm.slane %v993_v32, %v1490_v20  ;;  %v1008_v45 = vperm.slane %v992_v33, %v1490_v20 }
 0x177   : > { %v1016_v59 = vsel %vm457_vm1, %v1009_v44, %v1008_v45 }
 0x178   : > { %v1487_v13 = vpop.xlane.xlu2 %595 }
 0x179   : > { %v618_v11 = vadd.f32 %v1487_v13, %v1437_v0 }
 0x17a   : > { %v795_v15 = vpop.xlane.xlu1 %794  ;;  %v976_v49 = vpop.xlane.xlu0 %975 }
 0x17b   : > { %v809_v29 = vadd.f32 %v795_v15, %v1437_v0  ;;  %v994_v38 = vadd.f32 %v976_v49, %v1437_v0  ;;  %v634_v21 = vperm.slane %v618_v11, %v1490_v20 }
 0x17d   : > { %v825_v41 = vperm.slane %v809_v29, %v1490_v20  ;;  %v1010_v47 = vperm.slane %v994_v38, %v1490_v20 }
 0x17f   : > { %v832_v58 = vsel %vm463_vm4, %v825_v41, %v831_v56  ;;  %v1017_v26 = vsel %vm459_vm2, %v1010_v47, %v1016_v59 }
 0x180   : > { %v985_v16 = vpop.xlane.xlu2 %984  ;;  %v1018_v5 = vsel %vm461_vm3, %v1011_v3, %v1017_v26 }
 0x181   : > { %v997_v14 = vadd.f32 %v985_v16, %v1437_v0 }
 0x182   : > { %v982_v18 = vpop.xlane.xlu1 %981  ;;  %v798_v1 = vpop.xlane.xlu0 %797 }
 0x183   : > { %v810_v36 = vadd.f32 %v798_v1, %v1437_v0  ;;  %v996_v48 = vadd.f32 %v982_v18, %v1437_v0  ;;  %v1013_v12 = vperm.slane %v997_v14, %v1490_v20 }
 0x185   : > { %v826_v46 = vperm.slane %v810_v36, %v1490_v20  ;;  %v1012_v62 = vperm.slane %v996_v48, %v1490_v20 }
 0x187   : > { %v833_v61 = vsel %vm465_vm5, %v826_v46, %v832_v58  ;;  %v1019_v35 = vsel %vm463_vm4, %v1012_v62, %v1018_v5 }
 0x188   : > { %v988_v30 = vpop.xlane.xlu2 %987  ;;  %v1020_v1 = vsel %vm465_vm5, %v1013_v12, %v1019_v35 }
 0x189   : > { %v998_v63 = vadd.f32 %v988_v30, %v1437_v0 }
 0x18a   : > { %v801_v24 = vpop.xlane.xlu1 %800  ;;  %v599_v25 = vpop.xlane.xlu0 %598 }
 0x18b   : > { %v811_v39 = vadd.f32 %v801_v24, %v1437_v0  ;;  %v619_v6 = vadd.f32 %v599_v25, %v1437_v0  ;;  %v1014_v34 = vperm.slane %v998_v63, %v1490_v20 }
 0x18d   : > { %v827_v50 = vperm.slane %v811_v39, %v1490_v20  ;;  %v635_v16 = vperm.slane %v619_v6, %v1490_v20  ;;  %v1021_v19 = vsel %vm467_vm6, %v1014_v34, %v1020_v1 }
 0x18f   : > { %v834_v42 = vsel %vm467_vm6, %v827_v50, %v833_v61  ;;  %v642_v27 = vsel %vm457_vm1, %v635_v16, %v634_v21 }
 0x190   : > { %v608_v2 = vpop.xlane.xlu2 %607 }
 0x191   : > { %v622_v23 = vadd.f32 %v608_v2, %v1437_v0 }
 0x192   : > { %v804_v51 = vpop.xlane.xlu1 %803  ;;  %v602_v52 = vpop.xlane.xlu0 %601 }
 0x193   : > { %v812_v57 = vadd.f32 %v804_v51, %v1437_v0  ;;  %v620_v8 = vadd.f32 %v602_v52, %v1437_v0  ;;  %v638_v38 = vperm.slane %v622_v23, %v1490_v20 }
 0x195   : > { %v828_v60 = vperm.slane %v812_v57, %v1490_v20  ;;  %v636_v53 = vperm.slane %v620_v8, %v1490_v20 }
 0x197   : > { %v835_v4 = vsel %vm469_vm7, %v828_v60, %v834_v42  ;;  %v643_v29 = vsel %vm459_vm2, %v636_v53, %v642_v27 }
 0x198   : > { %v1537_v17 = vsel %vm438_vm8, -1e+10, %v835_v4  ;;  %v617_v24 = vpop.xlane.xlu2 %616 }
 0x199   : > { %v838_v7 = vsel %vm399_vm0, %v1537_v17, -inf  ;;  %v625_v32 = vadd.f32 %v617_v24, %v1437_v0 }
 0x19a   : > { %v991_v9 = vpop.xlane.xlu1 %990  ;;  %v605_v10 = vpop.xlane.xlu0 %604  ;;  %839 = vmax.xlane.f32.xlu2 %v838_v7 }
 0x19b   : > { %v999_v15 = vadd.f32 %v991_v9, %v1437_v0  ;;  %v621_v49 = vadd.f32 %v605_v10, %v1437_v0  ;;  %v641_v43 = vperm.slane %v625_v32, %v1490_v20 }
 0x19d   : > { %v1015_v18 = vperm.slane %v999_v15, %v1490_v20  ;;  %v637_v13 = vperm.slane %v621_v49, %v1490_v20 }
 0x19f   : > { %v1022_v22 = vsel %vm469_vm7, %v1015_v18, %v1021_v19  ;;  %v644_v33 = vsel %vm461_vm3, %v637_v13, %v643_v29 }
 0x1a0   : > { %v1562_v25 = vsel %vm438_vm8, -1e+10, %v1022_v22  ;;  %v645_v41 = vsel %vm463_vm4, %v638_v38, %v644_v33  ;;  %v408_v51 = vpop.xlane.xlu2 %407 }
 0x1a1   : > { %v1025_v28 = vsel %vm399_vm0, %v1562_v25, -inf  ;;  %v432_v59 = vadd.f32 %v1437_v0, %v408_v51 }
 0x1a2   : > { %v614_v30 = vpop.xlane.xlu1 %613  ;;  %v611_v31 = vpop.xlane.xlu0 %610  ;;  %1026 = vmax.xlane.f32.xlu0 %v1025_v28 }
 0x1a3   : > { %v624_v36 = vadd.f32 %v614_v30, %v1437_v0  ;;  %v623_v37 = vadd.f32 %v611_v31, %v1437_v0  ;;  %v451_v2 = vperm.slane %v432_v59, %v1490_v20 }
 0x1a5   : > { %v640_v39 = vperm.slane %v624_v36, %v1490_v20  ;;  %v639_v40 = vperm.slane %v623_v37, %v1490_v20 }
 0x1a7   : > { %v646_v44 = vsel %vm465_vm5, %v639_v40, %v645_v41 }
 0x1a8   : > { %v647_v45 = vsel %vm467_vm6, %v640_v39, %v646_v44  ;;  %v417_v42 = vpop.xlane.xlu2 %416 }
 0x1a9   : > { %v648_v46 = vsel %vm469_vm7, %v641_v43, %v647_v45  ;;  %v435_v5 = vadd.f32 %v1437_v0, %v417_v42 }
 0x1aa   : > { %v402_v47 = vpop.xlane.xlu0 %401  ;;  %v405_v48 = vpop.xlane.xlu1 %404  ;;  %v650_v50 = vsel %vm438_vm8, -1e+10, %v648_v46 }
 0x1ab   : > { %v651_v52 = vsel %vm399_vm0, %v650_v50, -inf  ;;  %v430_v55 = vadd.f32 %v1437_v0, %v402_v47  ;;  %v431_v56 = vadd.f32 %v1437_v0, %v405_v48  ;;  %v454_v10 = vperm.slane %v435_v5, %v1490_v20 }
 0x1ac   : > { %652 = vmax.xlane.f32.xlu1 %v651_v52 }
 0x1ad   : > { %v449_v57 = vperm.slane %v430_v55, %v1490_v20  ;;  %v450_v58 = vperm.slane %v431_v56, %v1490_v20 }
 0x1af   : > { %v458_v63 = vsel %vm457_vm1, %v450_v58, %v449_v57 }
 0x1b0   : > { %v460_v14 = vsel %vm459_vm2, %v451_v2, %v458_v63 }
 0x1b2   : > { %v411_v60 = vpop.xlane.xlu0 %410  ;;  %v414_v61 = vpop.xlane.xlu1 %413 }
 0x1b3   : > { %v433_v26 = vadd.f32 %v1437_v0, %v411_v60  ;;  %v434_v62 = vadd.f32 %v1437_v0, %v414_v61 }
 0x1b5   : > { %v452_v3 = vperm.slane %v433_v26, %v1490_v20  ;;  %v453_v4 = vperm.slane %v434_v62, %v1490_v20 }
 0x1b7   : > { %v462_v6 = vsel %vm461_vm3, %v452_v3, %v460_v14 }
 0x1b8   : > { %v464_v34 = vsel %vm463_vm4, %v453_v4, %v462_v6 }
 0x1b9   : > { %v466_v15 = vsel %vm465_vm5, %v454_v10, %v464_v34 }
 0x1ba   : > { %v420_v7 = vpop.xlane.xlu0 %419  ;;  %v423_v35 = vpop.xlane.xlu1 %422 }
 0x1bb   : > { %v436_v8 = vadd.f32 %v1437_v0, %v420_v7  ;;  %v437_v9 = vadd.f32 %v1437_v0, %v423_v35  ;;  %v696_v0 = vld [vmem:[%s327_s22] sm:$0xff] }
 0x1bc   : > { %502 = vmatpush.msra.mxu0 %v696_v0 }
 0x1bd   : > { %v455_v11 = vperm.slane %v436_v8, %v1490_v20  ;;  %v456_v12 = vperm.slane %v437_v9, %v1490_v20 }
 0x1bf   : > { %v468_v49 = vsel %vm467_vm6, %v455_v11, %v466_v15 }
 0x1c0   : > { %v470_v16 = vsel %vm469_vm7, %v456_v12, %v468_v49 }
 0x1c1   : > { %v472_v18 = vsel %vm438_vm8, -1e+10, %v470_v16 }
 0x1c2   : > { %v473_v1 = vsel %vm399_vm0, %v472_v18, -inf }
 0x1c3   : > { %474 = vmax.xlane.f32.xlu2 %v473_v1 }
 0x20d   : > { %v840_v53 = vpop.xlane.xlu2 %839 }
 0x20e   : > { %v841_v20 = vsub.f32 %v1537_v17, %v840_v53 }
 0x210   : > { %v842_v19 = vmul.f32 1.442695, %v841_v20 }
 0x212   : > { %1249 = vpow2.f32 %v842_v19 }
 0x215   : > { %v1027_v21 = vpop.xlane.xlu0 %1026 }
 0x216   : > { %v1028_v13 = vsub.f32 %v1562_v25, %v1027_v21 }
 0x218   : > { %v1250_v22 = vpop.eup %1249  ;;  %v1029_v54 = vmul.f32 1.442695, %v1028_v13 }
 0x219   : > { %v844_v23 = vsel %vm399_vm0, %v1250_v22, 0.0 }
 0x21a   : > { %1251 = vpow2.f32 %v1029_v54  ;;  %845 = vadd.xlane.f32.xlu0 %v844_v23 }
 0x21f   : > { %v653_v24 = vpop.xlane.xlu1 %652 }
 0x220   : > { %v1252_v27 = vpop.eup %1251  ;;  %v654_v28 = vsub.f32 %v650_v50, %v653_v24 }
 0x221   : > { %v1031_v29 = vsel %vm399_vm0, %v1252_v27, 0.0 }
 0x222   : > { %v655_v30 = vmul.f32 1.442695, %v654_v28  ;;  %1032 = vadd.xlane.f32.xlu1 %v1031_v29 }
 0x224   : > { %1253 = vpow2.f32 %v655_v30 }
 0x22a   : > { %v1254_v17 = vpop.eup %1253 }
 0x22b   : > { %v657_v31 = vsel %vm399_vm0, %v1254_v17, 0.0 }
 0x22c   : > { %658 = vadd.xlane.f32.xlu2 %v657_v31 }
 0x22e   : > { %850 = vrot.lane.b32.xlu0 %v696_v0, %s1293_s14 }
 0x236   : > { %v475_v25 = vpop.xlane.xlu2 %474 }
 0x237   : > { %v476_v32 = vsub.f32 %v472_v18, %v475_v25 }
 0x239   : > { %v477_v33 = vmul.f32 1.442695, %v476_v32 }
 0x23b   : > { %1037 = vrot.lane.b32.xlu1 %v696_v0, %s1294_s15  ;;  %1255 = vpow2.f32 %v477_v33 }
 0x241   : > { %v1256_v36 = vpop.eup %1255 }
 0x242   : > { %v479_v37 = vsel %vm399_vm0, %v1256_v36, 0.0 }
 0x244   : > { %663 = vrot.lane.b32.xlu2 %v696_v0, %s1295_s16 }
 0x258   : > { %480 = vadd.xlane.f32.xlu0 %v479_v37 }
 0x28d   : > { %v846_v38 = vpop.xlane.xlu0 %845 }
 0x28e   : > { %1257 = vrcp.f32 %v846_v38 }
 0x294   : > { %v1258_v39 = vpop.eup %1257 }
 0x295   : > { %v848_v43 = vmul.f32 %v1258_v39, %v1250_v22  ;;  %v1033_v44 = vpop.xlane.xlu1 %1032 }
 0x29f   : > { %v659_v40 = vpop.xlane.xlu2 %658 }
 0x2a0   : > { %1259 = vrcp.f32 %v659_v40  ;;  %v851_v41 = vpop.permute.xlu0 %850 }
 0x2a1   : > { %871 = vmatpush.msra.mxu2 %v851_v41  ;;  %1261 = vrcp.f32 %v1033_v44 }
 0x2a2   : > { %1194 = vmatmul.msk.f32.vlgmr.msra.gmra.mxu2 %vm399_vm0, %v848_v43 }
 0x2a6   : > { %v1260_v45 = vpop.eup %1259 }
 0x2a7   : > { %v664_v46 = vpop.permute.xlu2 %663  ;;  %v661_v47 = vmul.f32 %v1260_v45, %v1254_v17  ;;  %v1262_v48 = vpop.eup %1261 }
 0x2a8   : > { %684 = vmatpush.msra.mxu1 %v664_v46  ;;  %v1035_v51 = vmul.f32 %v1262_v48, %v1252_v27 }
 0x2a9   : > { %1193 = vmatmul.msk.f32.vlgmr.msra.gmra.mxu1 %vm399_vm0, %v661_v47 }
 0x2ad   : > { %v1038_v50 = vpop.permute.xlu1 %1037 }
 0x2ae   : > { %1058 = vmatpush.msra.mxu3 %v1038_v50 }
 0x2af   : > { %1195 = vmatmul.msk.f32.vlgmr.msra.gmra.mxu3 %vm399_vm0, %v1035_v51 }
 0x2cb   : > { %v481_v52 = vpop.xlane.xlu0 %480 }
 0x2cc   : > { %1263 = vrcp.f32 %v481_v52 }
 0x2d2   : > { %v1264_v55 = vpop.eup %1263 }
 0x2d3   : > { %v483_v56 = vmul.f32 %v1264_v55, %v1256_v36 }
 0x2d5   : > { %1192 = vmatmul.msk.f32.vlgmr.msra.gmra.mxu0 %vm399_vm0, %v483_v56 }
 0x325   : > { %v873_v57 = vpop.f32.mrf.mxu2 }
 0x326   : > { %877 = vrot.lane.b32.xlu2 %v873_v57, %s1289_s28  ;;  %v686_v58 = vpop.f32.mrf.mxu1 }
 0x327   : > { %690 = vrot.lane.b32.xlu1 %v686_v58, %s1290_s29 }
 0x332   : > { %v1060_v59 = vpop.f32.mrf.mxu3 }
 0x333   : > { %1064 = vrot.lane.b32.xlu1 %v1060_v59, %s1292_s30 }
 0x352   : > { %v504_v60 = vpop.f32.mrf.mxu0 }
 0x353   : > { %507 = vst.msk [vmem:[%s341_s27] sm:$0xff] %vm399_vm0, %v504_v60 }
 0x380   : > { %v878_v26 = vpop.permute.xlu2 %877 }
 0x399   : > { %v691_v61 = vpop.permute.xlu1 %690 }
 0x39a   : > { %694 = vst.msk [vmem:[%s341_s27] sm:$0xff] %vm693_vm9, %v691_v61 }
 0x39b   : > { %881 = vst.msk [vmem:[%s341_s27] sm:$0xff] %vm880_vm10, %v878_v26 }
 0x3a5   : > { %v1065_v62 = vpop.permute.xlu1 %1064 }
 0x3a6   : > { %1068 = vst.msk [vmem:[%s341_s27] sm:$0xff] %vm1067_vm11, %v1065_v62 }
 0x3a7 PF: > { %s18_s25 = sadd.s32 1, %s1287_s25   ;;  %s1650_s23 = smov %s1283_s24 }
 0x3a8   : > { %p15_p5 = scmp.ge.s32.totalorder %s18_s25, 4   ;;  %s1651_s24 = smov %s1653_s5 }
 0x3aa   :  { %17 = sbr.rel (!%p15_p5) target bundleno = 3 (0x3), region = 83 }

// kernel: decoder_forward.23
= control target key start
LH: loop header
LB: loop body
LE: loop exit
PB: predicated region body
PF: predicated region fallthrough
CT: control target
= control target key end

     0   :  { %vm18_vm0 = vcmask 523264   ;;  %v110_v2 = vmov 0.0   ;;  %vm33_vm1 = vcmask 261120   ;;  %vm21_vm2 = vcmask 519168   ;;  %s173_s1 = inlined_call_operand.vmem [shape: f32[32,64], index: 1, kind: input, shape index: {}]   ;;  %s174_s0 = inlined_call_operand.vmem [shape: f32[20,32], index: 0, kind: input, shape index: {}]   ;;  %s175_s2 = inlined_call_operand.vmem [shape: f32[1,64], index: 2, kind: input, shape index: {}]   ;;  %s176_s3 = inlined_call_operand.vmem [shape: f32[20,64], index: 3, kind: output, shape index: {}]  }
   0x1   :  { %v32_v0 = vld [vmem:[%s173_s1 + $0x18] sm:$0xff]  ;;  %v31_v1 = vld [vmem:[%s173_s1 + $0x10] sm:$0xff]  ;;  %19 = vst.msk [vmem:[#allocation2] sm:$0xff] %vm18_vm0, %v110_v2  ;;  %v30_v3 = vld [vmem:[%s173_s1 + $0x8] sm:$0xff] }
   0x2   :  { %101 = vmatpush.msra.mxu2 %v32_v0  ;;  %55 = vmatpush.msra.mxu0 %v32_v0  ;;  %20 = vst.msk [vmem:[#allocation2 + $0x8] sm:$0xff] %vm18_vm0, %v110_v2  ;;  %v29_v4 = vld [vmem:[%s173_s1] sm:$0xff]  ;;  %v28_v5 = vld [vmem:[%s174_s0 + $0x10] sm:$0xf]  ;;  %v27_v7 = vld [vmem:[%s174_s0 + $0x8] sm:$0xff] }
   0x3   :  { %100 = vmatpush.msra.mxu1 %v32_v0  ;;  %v26_v6 = vld [vmem:[%s174_s0] sm:$0xff]  ;;  %22 = vst.msk [vmem:[#allocation2 + $0x10] sm:$0xf] %vm21_vm2, %v110_v2 }
   0x4   :  { %103 = vmatpush.msra.mxu2 %v31_v1  ;;  %56 = vmatpush.msra.mxu0 %v31_v1  ;;  %v109_v17 = vld [vmem:[%s175_s2] ss:$0 sm:$0xff] }
   0x5   :  { %102 = vmatpush.msra.mxu1 %v31_v1 }
   0x6   :  { %105 = vmatpush.msra.mxu2 %v30_v3  ;;  %57 = vmatpush.msra.mxu0 %v30_v3 }
   0x7   :  { %104 = vmatpush.msra.mxu1 %v30_v3 }
   0x8   :  { %107 = vmatpush.msra.mxu2 %v29_v4  ;;  %58 = vmatpush.msra.mxu0 %v29_v4  ;;  %v23_v8 = vld [vmem:[#allocation2] sm:$0xff] }
   0x9   :  { %99 = vmatmul.msk.f32.vlgmr.msra.gmra.mxu2 %vm33_vm1, %v28_v5  ;;  %106 = vmatpush.msra.mxu1 %v29_v4  ;;  %v24_v9 = vld [vmem:[#allocation2 + $0x8] sm:$0xff] }
   0xa   :  { %97 = vmatmul.msk.f32.vlgmr.msra.gmra.mxu0 %vm33_vm1, %v26_v6  ;;  %98 = vmatmul.msk.f32.vlgmr.msra.gmra.mxu1 %vm33_vm1, %v27_v7  ;;  %v25_v14 = vld [vmem:[#allocation2 + $0x10] sm:$0xf] }
  0x87   :  { %v60_v10 = vpop.f32.mrf.mxu0  ;;  %v63_v11 = vpop.f32.mrf.mxu1 }
  0x88   :  { %v69_v12 = vadd.f32 %v60_v10, %v23_v8  ;;  %v70_v13 = vadd.f32 %v63_v11, %v24_v9 }
  0x8a   :  { %73 = vst.msk [vmem:[#allocation2] sm:$0xff] %vm18_vm0, %v69_v12 }
  0x8b   :  { %74 = vst.msk [vmem:[#allocation2 + $0x8] sm:$0xff] %vm18_vm0, %v70_v13 }
  0x8c   :  { %v66_v15 = vpop.f32.mrf.mxu2 }
  0x8d   :  { %v71_v16 = vadd.f32 %v66_v15, %v25_v14 }
  0x8f   :  { %76 = vst.msk [vmem:[#allocation2 + $0x10] sm:$0xf] %vm21_vm2, %v71_v16 }
  0x91   :  { %v80_v18 = vld [vmem:[#allocation2] sm:$0xff] }
  0x92   :  { %v81_v19 = vld [vmem:[#allocation2 + $0x8] sm:$0xff]  ;;  %v87_v20 = vadd.f32 %v109_v17, %v80_v18 }
  0x93   :  { %v88_v21 = vadd.f32 %v109_v17, %v81_v19 }
  0x94   :  { %90 = vst.msk [vmem:[%s176_s3] sm:$0xff] %vm18_vm0, %v87_v20 }
  0x95   :  { %91 = vst.msk [vmem:[%s176_s3 + $0x8] sm:$0xff] %vm18_vm0, %v88_v21 }
  0x96   :  { %v82_v22 = vld [vmem:[#allocation2 + $0x10] sm:$0xf] }
  0x97   :  { %v89_v23 = vadd.f32 %v109_v17, %v82_v22 }
  0x99   :  { %92 = vst.msk [vmem:[%s176_s3 + $0x10] sm:$0xf] %vm21_vm2, %v89_v23 }

// kernel: decoder_forward.26
= control target key start
LH: loop header
LB: loop body
LE: loop exit
PB: predicated region body
PF: predicated region fallthrough
CT: control target
= control target key end

     0   :  { %vm18_vm0 = vcmask 523264   ;;  %v91_v2 = vmov 0.0   ;;  %vm29_vm1 = vcmask 261120   ;;  %s145_s1 = inlined_call_operand.vmem [shape: f32[32,64], index: 1, kind: input, shape index: {}]   ;;  %s146_s2 = inlined_call_operand.vmem [shape: f32[1,64], index: 2, kind: input, shape index: {}]   ;;  %s147_s0 = inlined_call_operand.vmem [shape: f32[16,32], index: 0, kind: input, shape index: {}]   ;;  %s148_s3 = inlined_call_operand.vmem [shape: f32[16,64], index: 3, kind: output, shape index: {}]  }
   0x1   :  { %v28_v0 = vld [vmem:[%s145_s1 + $0x18] sm:$0xff]  ;;  %v27_v1 = vld [vmem:[%s145_s1 + $0x10] sm:$0xff]  ;;  %19 = vst.msk [vmem:[#allocation2] sm:$0xff] %vm18_vm0, %v91_v2  ;;  %v26_v3 = vld [vmem:[%s145_s1 + $0x8] sm:$0xff] }
   0x2   :  { %48 = vmatpush.msra.mxu0 %v28_v0  ;;  %85 = vmatpush.msra.mxu1 %v28_v0  ;;  %20 = vst.msk [vmem:[#allocation2 + $0x8] sm:$0xff] %vm18_vm0, %v91_v2  ;;  %v25_v4 = vld [vmem:[%s145_s1] sm:$0xff]  ;;  %v24_v6 = vld [vmem:[%s147_s0 + $0x8] sm:$0xff] }
   0x3   :  { %v23_v5 = vld [vmem:[%s147_s0] sm:$0xff] }
   0x4   :  { %49 = vmatpush.msra.mxu0 %v27_v1  ;;  %86 = vmatpush.msra.mxu1 %v27_v1  ;;  %v90_v13 = vld [vmem:[%s146_s2] ss:$0 sm:$0xff] }
   0x6   :  { %50 = vmatpush.msra.mxu0 %v26_v3  ;;  %87 = vmatpush.msra.mxu1 %v26_v3 }
   0x8   :  { %51 = vmatpush.msra.mxu0 %v25_v4  ;;  %88 = vmatpush.msra.mxu1 %v25_v4  ;;  %v21_v7 = vld [vmem:[#allocation2] sm:$0xff] }
   0x9   :  { %83 = vmatmul.msk.f32.vlgmr.msra.gmra.mxu0 %vm29_vm1, %v23_v5  ;;  %84 = vmatmul.msk.f32.vlgmr.msra.gmra.mxu1 %vm29_vm1, %v24_v6  ;;  %v22_v8 = vld [vmem:[#allocation2 + $0x8] sm:$0xff] }
  0x86   :  { %v53_v9 = vpop.f32.mrf.mxu0  ;;  %v56_v10 = vpop.f32.mrf.mxu1 }
  0x87   :  { %v59_v11 = vadd.f32 %v53_v9, %v21_v7  ;;  %v60_v12 = vadd.f32 %v56_v10, %v22_v8 }
  0x89   :  { %62 = vst.msk [vmem:[#allocation2] sm:$0xff] %vm18_vm0, %v59_v11 }
  0x8a   :  { %63 = vst.msk [vmem:[#allocation2 + $0x8] sm:$0xff] %vm18_vm0, %v60_v12 }
  0x90   :  { %v67_v14 = vld [vmem:[#allocation2] sm:$0xff] }
  0x91   :  { %v73_v15 = vadd.f32 %v90_v13, %v67_v14  ;;  %v68_v16 = vld [vmem:[#allocation2 + $0x8] sm:$0xff] }
  0x92   :  { %v74_v17 = vadd.f32 %v90_v13, %v68_v16 }
  0x93   :  { %v75_v18 = vmax.f32 %v73_v15, 0.0 }
  0x94   :  { %v76_v19 = vmax.f32 %v74_v17, 0.0 }
  0x95   :  { %77 = vst.msk [vmem:[%s148_s3] sm:$0xff] %vm18_vm0, %v75_v18 }
  0x96   :  { %78 = vst.msk [vmem:[%s148_s3 + $0x8] sm:$0xff] %vm18_vm0, %v76_v19 }

// kernel: decoder_forward.27
= control target key start
LH: loop header
LB: loop body
LE: loop exit
PB: predicated region body
PF: predicated region fallthrough
CT: control target
= control target key end

     0   :  { %vm27_vm0 = vcmask 261120   ;;  %v182_v2 = vmov 0.0   ;;  %vm42_vm1 = vcmask 523264   ;;  %v183_v28 = vmov 32.0   ;;  %s280_s1 = inlined_call_operand.vmem [shape: f32[64,32], index: 1, kind: input, shape index: {}]   ;;  %s281_s0 = inlined_call_operand.vmem [shape: f32[16,64], index: 0, kind: input, shape index: {}]   ;;  %s282_s2 = inlined_call_operand.vmem [shape: f32[1,32], index: 2, kind: input, shape index: {}]   ;;  %s283_s3 = inlined_call_operand.vmem [shape: f32[16,32], index: 3, kind: input, shape index: {}]   ;;  %s284_s4 = inlined_call_operand.vmem [shape: f32[1,32], index: 4, kind: input, shape index: {}]   ;;  %s285_s5 = inlined_call_operand.vmem [shape: f32[1,32], index: 5, kind: input, shape index: {}]   ;;  %s286_s6 = inlined_call_operand.vmem [shape: f32[16,32], index: 6, kind: output, shape index: {}]  }
   0x1   :  { %v41_v0 = vld [vmem:[%s280_s1 + $0x38] sm:$0xff]  ;;  %v40_v1 = vld [vmem:[%s280_s1 + $0x30] sm:$0xff]  ;;  %28 = vst.msk [vmem:[#allocation2] sm:$0xff] %vm27_vm0, %v182_v2  ;;  %v39_v3 = vld [vmem:[%s280_s1 + $0x28] sm:$0xff]  ;;  %176 = vrcp.f32 %v183_v28 }
   0x2   :  { %57 = vmatpush.msra.mxu0 %v41_v0  ;;  %163 = vmatpush.msra.mxu1 %v41_v0  ;;  %29 = vst.msk [vmem:[#allocation2 + $0x8] sm:$0xff] %vm27_vm0, %v182_v2  ;;  %v38_v4 = vld [vmem:[%s280_s1 + $0x20] sm:$0xff]  ;;  %v37_v5 = vld [vmem:[%s280_s1 + $0x18] sm:$0xff]  ;;  %v36_v6 = vld [vmem:[%s280_s1 + $0x10] sm:$0xff] }
   0x3   :  { %v35_v7 = vld [vmem:[%s280_s1 + $0x8] sm:$0xff]  ;;  %v34_v8 = vld [vmem:[%s280_s1] sm:$0xff] }
   0x4   :  { %58 = vmatpush.msra.mxu0 %v40_v1  ;;  %164 = vmatpush.msra.mxu1 %v40_v1  ;;  %v32_v9 = vld [vmem:[%s281_s0] sm:$0xff]  ;;  %v33_v10 = vld [vmem:[%s281_s0 + $0x8] sm:$0xff] }
   0x5   :  { %v173_v17 = vld [vmem:[%s282_s2] ss:$0 sm:$0xff]  ;;  %v89_v24 = vld [vmem:[%s283_s3 + $0x8] sm:$0xff] }
   0x6   :  { %59 = vmatpush.msra.mxu0 %v39_v3  ;;  %165 = vmatpush.msra.mxu1 %v39_v3  ;;  %v88_v19 = vld [vmem:[%s283_s3] sm:$0xff] }
   0x7   :  { %v177_v29 = vpop.eup %176  ;;  %v174_v59 = vld [vmem:[%s284_s4] ss:$0 sm:$0xff] }
   0x8   :  { %60 = vmatpush.msra.mxu0 %v38_v4  ;;  %166 = vmatpush.msra.mxu1 %v38_v4  ;;  %v30_v11 = vld [vmem:[#allocation2] sm:$0xff]  ;;  %v99_v30 = vmul.f32 32.0, %v177_v29  ;;  %vm103_vm2 = vweird.f32 %v177_v29 }
   0x9   :  { %v31_v12 = vld [vmem:[#allocation2 + $0x8] sm:$0xff]  ;;  %v175_v62 = vld [vmem:[%s285_s5] ss:$0 sm:$0xff] }
   0xa   :  { %61 = vmatpush.msra.mxu0 %v37_v5  ;;  %167 = vmatpush.msra.mxu1 %v37_v5  ;;  %v100_v31 = vsub.f32 1.0, %v99_v30 }
   0xc   :  { %62 = vmatpush.msra.mxu0 %v36_v6  ;;  %168 = vmatpush.msra.mxu1 %v36_v6  ;;  %v101_v32 = vmul.f32 %v177_v29, %v100_v31 }
   0xe   :  { %63 = vmatpush.msra.mxu0 %v35_v7  ;;  %169 = vmatpush.msra.mxu1 %v35_v7  ;;  %v102_v33 = vadd.f32 %v177_v29, %v101_v32 }
  0x10   :  { %64 = vmatpush.msra.mxu0 %v34_v8  ;;  %170 = vmatpush.msra.mxu1 %v34_v8  ;;  %v104_v34 = vsel %vm103_vm2, %v177_v29, %v102_v33 }
  0x11   :  { %161 = vmatmul.msk.f32.vlgmr.msra.gmra.mxu0 %vm42_vm1, %v32_v9  ;;  %162 = vmatmul.msk.f32.vlgmr.msra.gmra.mxu1 %vm42_vm1, %v33_v10 }
  0x8e   :  { %v66_v13 = vpop.f32.mrf.mxu0  ;;  %v69_v14 = vpop.f32.mrf.mxu1 }
  0x8f   :  { %v72_v15 = vadd.f32 %v66_v13, %v30_v11  ;;  %v73_v16 = vadd.f32 %v69_v14, %v31_v12 }
  0x91   :  { %75 = vst.msk [vmem:[#allocation2] sm:$0xff] %vm27_vm0, %v72_v15 }
  0x92   :  { %76 = vst.msk [vmem:[#allocation2 + $0x8] sm:$0xff] %vm27_vm0, %v73_v16 }
  0x98   :  { %v80_v18 = vld [vmem:[#allocation2] sm:$0xff] }
  0x99   :  { %v86_v20 = vadd.f32 %v173_v17, %v80_v18  ;;  %v81_v21 = vld [vmem:[#allocation2 + $0x8] sm:$0xff] }
  0x9a   :  { %v87_v23 = vadd.f32 %v173_v17, %v81_v21 }
  0x9b   :  { %v90_v22 = vadd.f32 %v88_v19, %v86_v20 }
  0x9c   :  { %v91_v26 = vadd.f32 %v89_v24, %v87_v23 }
  0x9d   :  { %v92_v25 = vsel %vm27_vm0, %v90_v22, 0.0 }
  0x9e   :  { %93 = vadd.xlane.f32.xlu0 %v92_v25  ;;  %v95_v27 = vsel %vm27_vm0, %v91_v26, 0.0 }
  0xa6   :  { %96 = vadd.xlane.f32.xlu0 %v95_v27 }
 0x111   :  { %v94_v35 = vpop.xlane.xlu0 %93 }
 0x112   :  { %v105_v36 = vmul.f32 %v104_v34, %v94_v35 }
 0x114   :  { %v107_v37 = vsub.f32 %v90_v22, %v105_v36 }
 0x116   :  { %v109_v38 = vmul.f32 %v107_v37, %v107_v37 }
 0x118   :  { %v111_v39 = vsel %vm27_vm0, %v109_v38, 0.0 }
 0x119   :  { %112 = vadd.xlane.f32.xlu1 %v111_v39  ;;  %v97_v40 = vpop.xlane.xlu0 %96 }
 0x11a   :  { %v106_v41 = vmul.f32 %v104_v34, %v97_v40 }
 0x11c   :  { %v108_v42 = vsub.f32 %v91_v26, %v106_v41 }
 0x11e   :  { %v110_v43 = vmul.f32 %v108_v42, %v108_v42 }
 0x120   :  { %v114_v44 = vsel %vm27_vm0, %v110_v43, 0.0 }
 0x121   :  { %115 = vadd.xlane.f32.xlu1 %v114_v44 }
 0x18c   :  { %v113_v45 = vpop.xlane.xlu1 %112 }
 0x18d   :  { %v117_v46 = vmul.f32 %v113_v45, %v104_v34 }
 0x18f   :  { %v119_v47 = vadd.f32 1e-05, %v117_v46 }
 0x191   :  { %178 = vrsqrt.f32 %v119_v47  ;;  %vm127_vm4 = vweird.f32 %v119_v47 }
 0x194   :  { %v116_v48 = vpop.xlane.xlu1 %115 }
 0x195   :  { %v118_v49 = vmul.f32 %v116_v48, %v104_v34 }
 0x197   :  { %v179_v50 = vpop.eup %178  ;;  %v120_v51 = vadd.f32 1e-05, %v118_v49 }
 0x198   :  { %v122_v52 = vmul.f32 %v179_v50, %v119_v47  ;;  %vm128_vm3 = vweird.f32 %v179_v50 }
 0x199   :  { %180 = vrsqrt.f32 %v120_v51  ;;  %vm129_vm5 = vmor %vm127_vm4, %vm128_vm3  ;;  %vm137_vm7 = vweird.f32 %v120_v51 }
 0x19a   :  { %v123_v53 = vmul.f32 %v179_v50, %v122_v52 }
 0x19c   :  { %v124_v54 = vmul.f32 0.5, %v123_v53 }
 0x19e   :  { %v125_v55 = vsub.f32 1.5, %v124_v54 }
 0x19f   :  { %v181_v56 = vpop.eup %180 }
 0x1a0   :  { %v126_v57 = vmul.f32 %v179_v50, %v125_v55  ;;  %v132_v58 = vmul.f32 %v181_v56, %v120_v51  ;;  %vm138_vm6 = vweird.f32 %v181_v56 }
 0x1a1   :  { %vm139_vm8 = vmor %vm137_vm7, %vm138_vm6 }
 0x1a2   :  { %v130_v60 = vsel %vm129_vm5, %v179_v50, %v126_v57  ;;  %v133_v61 = vmul.f32 %v181_v56, %v132_v58 }
 0x1a3   :  { %v141_v63 = vmul.f32 %v130_v60, %v107_v37 }
 0x1a4   :  { %v134_v0 = vmul.f32 0.5, %v133_v61 }
 0x1a5   :  { %v147_v1 = vmul.f32 %v174_v59, %v141_v63 }
 0x1a6   :  { %v135_v2 = vsub.f32 1.5, %v134_v0 }
 0x1a7   :  { %v153_v3 = vadd.f32 %v175_v62, %v147_v1 }
 0x1a8   :  { %v136_v4 = vmul.f32 %v181_v56, %v135_v2 }
 0x1a9   :  { %155 = vst.msk [vmem:[%s286_s6] sm:$0xff] %vm27_vm0, %v153_v3 }
 0x1aa   :  { %v140_v5 = vsel %vm139_vm8, %v181_v56, %v136_v4 }
 0x1ab   :  { %v142_v6 = vmul.f32 %v140_v5, %v108_v42 }
 0x1ad   :  { %v148_v7 = vmul.f32 %v174_v59, %v142_v6 }
 0x1af   :  { %v154_v8 = vadd.f32 %v175_v62, %v148_v7 }
 0x1b1   :  { %156 = vst.msk [vmem:[%s286_s6 + $0x8] sm:$0xff] %vm27_vm0, %v154_v8 }

// kernel: decoder_forward.24
= control target key start
LH: loop header
LB: loop body
LE: loop exit
PB: predicated region body
PF: predicated region fallthrough
CT: control target
= control target key end

     0   :  { %s1858_s23 = smov 0   ;;  %s1860_s24 = smov 0   ;;  %s2638_s0 = inlined_call_operand.vmem [shape: f32[2,8,32], index: 0, kind: input, shape index: {}]   ;;  %s2639_s1 = inlined_call_operand.vmem [shape: f32[2,10,32], index: 1, kind: input, shape index: {}]   ;;  %s2640_s2 = inlined_call_operand.vmem [shape: f32[2,10,32], index: 2, kind: input, shape index: {}]   ;;  %s2641_s3 = inlined_call_operand.vmem [shape: f32[2,1,8,10], index: 3, kind: input, shape index: {}]   ;;  %s2642_s4 = inlined_call_operand.vmem [shape: f32[1,8], index: 4, kind: input, shape index: {}]   ;;  %s2643_s5 = inlined_call_operand.<no memory space> [shape: f32[1,1], index: 5, kind: input, shape index: {}]   ;;  %s2644_s6 = inlined_call_operand.vmem [shape: f32[2,8,32], index: 6, kind: output, shape index: {}]  }
   0x1   :  { %v11_v0 = vstv %s2643_s5  ;;  %s1862_s25 = smov 0  }
   0x2   :  { %12 = vst [vmem:[#allocation2] sm:$0x1] %v11_v0 }
   0x3 LB: > { %s30_s5 = sadd.s32 1, %s1807_s24  ;;  %p1638_p0 = scmp.ge.s32.totalorder %s1811_s25, 1  ;;  %s1811_s25 = sphi %s1862_s25, %s18_s25   ;;  %s1807_s24 = sphi %s1860_s24, %s2646_s24   ;;  %s1803_s23 = sphi %s1858_s23, %s2645_s23  }
   0x4   : > { %p32_p1 = scmp.ge.s32.totalorder %s30_s5, 2  ;;  %p266_p2 = scmp.lt.s32.totalorder %s1811_s25, 3 }
   0x6   : > { %s2648_s5 = smov (%p32_p1, %s30_s5), 0  ;;  %p267_p3 = pnand %p1638_p0, %p266_p2 }
   0x7   : > { %p317_p4 = scmp.lt.s32.totalorder (!%p267_p3), %s1803_s23, 1  ;;  %s1814_s12 = smov (!%p267_p3), 16  }
   0x8   : > { %270 = sbr.rel (%p267_p3) target bundleno = 1162 (0x48a), region = 44  ;;  %s1815_s13 = smov (!%p267_p3), 24  }
   0x9   : > { %s1816_s14 = smov (!%p267_p3), 8   ;;  %s1817_s15 = smov (!%p267_p3), 112  }
   0xa   : > { %s1818_s16 = smov (!%p267_p3), 120   ;;  %s1819_s17 = smov (!%p267_p3), 104  }
   0xd   : > { %s2650_s23 = smov (!%p317_p4, %s1803_s23), 1  ;;  %v1929_v18 = vld [vmem:[%s2642_s4] ss:$0 sm:$0xff]  ;;  %vm431_vm0 = vcmask 64512   ;;  %vm435_vm1 = vcmask 58368   ;;  %v1813_v53 = vmov 0  }
   0xe   : > { %s1879_s26 = sshll.u32 %s2650_s23, 3  ;;  %s1656_s27 = sshll.u32 %s2650_s23, 4  ;;  %1689 = vset.pattern.permute.xlu1 %v1813_v53  ;;  %1690 = vset.pattern.permute.xlu0 %v1813_v53  ;;  %vm525_vm2 = vcmask 130112   ;;  %vm548_vm3 = vcmask 1041409   ;;  %vm550_vm4 = vcmask 1042434   ;;  %vm552_vm5 = vcmask 1043459  }
   0xf   : > { %s323_s30 = scalar_lea.vmem %s2638_s0, %s1879_s26  ;;  %s1891_s9 = scalar_lea.vmem %s2639_s1, %s1656_s27  ;;  %vm554_vm6 = vcmask 1044484   ;;  %vm556_vm7 = vcmask 1045509   ;;  %vm558_vm8 = vcmask 1046534   ;;  %vm560_vm9 = vcmask 1047559  }
  0x10   : > { %v1893_v1 = vld [vmem:[%s323_s30] sm:$0xff]  ;;  %v1899_v3 = vld [vmem:[%s1891_s9 + $0x8] sm:$0x3]  ;;  %s340_s20 = scalar_lea.vmem %s2641_s3, %s1879_s26  ;;  %vm564_vm11 = vcmask 80896   ;;  %s2388_s28 = scalar_lea.vmem %s2640_s2, %s1656_s27  ;;  %vm579_vm12 = vcmask 1041408   ;;  %vm1213_vm13 = vcmask 195712  }
  0x11   : > { %v1896_v2 = vld [vmem:[%s1891_s9] sm:$0xff]  ;;  %v1902_v4 = vperm.slane %v1893_v1, 0  ;;  %v358_v5 = vrot.slane %v1893_v1, 2  ;;  %v357_v6 = vrot.slane %v1893_v1, 1  ;;  %v359_v7 = vrot.slane %v1893_v1, 3  ;;  %s2586_s29 = scalar_lea.vmem %s2644_s6, %s1879_s26 }
  0x12   : > { %v360_v12 = vrot.slane %v1893_v1, 4  ;;  %v361_v26 = vrot.slane %v1893_v1, 5  ;;  %v362_v41 = vrot.slane %v1893_v1, 6  ;;  %v363_v45 = vrot.slane %v1893_v1, 7 }
  0x13   : > { %v380_v8 = vadd.f32 %v1902_v4, %v1896_v2  ;;  %v1909_v9 = vperm.slane %v358_v5, 0  ;;  %v1911_v10 = vperm.slane %v357_v6, 0  ;;  %v381_v11 = vadd.f32 %v1902_v4, %v1899_v3 }
  0x14   : > { %v1924_v17 = vperm.slane %v359_v7, 0  ;;  %v1931_v19 = vperm.slane %v360_v12, 0  ;;  %v1956_v37 = vperm.slane %v361_v26, 0  ;;  %v1975_v50 = vperm.slane %v362_v41, 0  ;;  %v2043_v41 = vld [vmem:[%s1891_s9 + $0x8] sm:$0x3] }
  0x15   : > { %1693 = vtanh.f32 %v380_v8  ;;  %v384_v13 = vadd.f32 %v1909_v9, %v1896_v2  ;;  %v382_v14 = vadd.f32 %v1911_v10, %v1896_v2  ;;  %v385_v15 = vadd.f32 %v1909_v9, %v1899_v3 }
  0x16   : > { %1695 = vtanh.f32 %v381_v11  ;;  %v383_v16 = vadd.f32 %v1911_v10, %v1899_v3  ;;  %v386_v21 = vadd.f32 %v1924_v17, %v1896_v2  ;;  %v388_v25 = vadd.f32 %v1931_v19, %v1896_v2 }
  0x17   : > { %1697 = vtanh.f32 %v384_v13  ;;  %v387_v30 = vadd.f32 %v1924_v17, %v1899_v3  ;;  %v389_v40 = vadd.f32 %v1931_v19, %v1899_v3  ;;  %v391_v44 = vadd.f32 %v1956_v37, %v1899_v3 }
  0x18   : > { %1699 = vtanh.f32 %v382_v14  ;;  %v390_v47 = vadd.f32 %v1956_v37, %v1896_v2  ;;  %v1979_v54 = vperm.slane %v363_v45, 0  ;;  %v392_v57 = vadd.f32 %v1975_v50, %v1896_v2 }
  0x19   : > { %1701 = vtanh.f32 %v385_v15  ;;  %v393_v62 = vadd.f32 %v1975_v50, %v1899_v3  ;;  %v943_v45 = vadd.f32 %v2043_v41, %v1909_v9  ;;  %vm1519_vm14 = vcmask 261312  }
  0x1a   : > { %1703 = vtanh.f32 %v383_v16  ;;  %v394_v60 = vadd.f32 %v1979_v54, %v1896_v2  ;;  %v395_v7 = vadd.f32 %v1979_v54, %v1899_v3 }
  0x1b   : > { %v1933_v20 = vpop.eup %1693  ;;  %1705 = vtanh.f32 %v386_v21 }
  0x1c   : > { %v1696_v22 = vpop.eup %1695  ;;  %v415_v23 = vmul.f32 %v1933_v20, %v1929_v18  ;;  %1707 = vtanh.f32 %v388_v25 }
  0x1d   : > { %v1939_v24 = vpop.eup %1697  ;;  %v416_v35 = vmul.f32 %v1696_v22, %v1929_v18  ;;  %1709 = vtanh.f32 %v387_v30  ;;  %v1692_v30 = vld [vmem:[#allocation2] ss:$0 sm:$0xff] }
  0x1e   : > { %v1944_v27 = vpop.eup %1699  ;;  %v432_v28 = vsel %vm431_vm0, %v415_v23, 0.0  ;;  %v419_v29 = vmul.f32 %v1939_v24, %v1929_v18  ;;  %1711 = vtanh.f32 %v389_v40 }
  0x1f   : > { %v1702_v31 = vpop.eup %1701  ;;  %433 = vadd.xlane.f32.xlu0 %v432_v28  ;;  %v417_v32 = vmul.f32 %v1944_v27, %v1929_v18  ;;  %v436_v42 = vsel %vm435_vm1, %v416_v35, 0.0  ;;  %1713 = vtanh.f32 %v391_v44 }
  0x20   : > { %v1704_v33 = vpop.eup %1703  ;;  %v445_v34 = vsel %vm431_vm0, %v419_v29, 0.0  ;;  %v420_v38 = vmul.f32 %v1702_v31, %v1929_v18  ;;  %1715 = vtanh.f32 %v390_v47  ;;  %v949_v47 = vadd.f32 %v2043_v41, %v1956_v37 }
  0x21   : > { %446 = vadd.xlane.f32.xlu2 %v445_v34  ;;  %v439_v36 = vsel %vm431_vm0, %v417_v32, 0.0  ;;  %v418_v39 = vmul.f32 %v1704_v33, %v1929_v18  ;;  %v1964_v43 = vpop.eup %1705  ;;  %1717 = vtanh.f32 %v392_v57 }
  0x22   : > { %440 = vadd.xlane.f32.xlu1 %v439_v36  ;;  %v448_v46 = vsel %vm435_vm1, %v420_v38, 0.0  ;;  %v1972_v48 = vpop.eup %1707  ;;  %v421_v52 = vmul.f32 %v1964_v43, %v1929_v18  ;;  %1719 = vtanh.f32 %v394_v60 }
  0x23   : > { %v442_v49 = vsel %vm435_vm1, %v418_v39, 0.0  ;;  %v1710_v51 = vpop.eup %1709  ;;  %v423_v55 = vmul.f32 %v1972_v48, %v1929_v18  ;;  %1721 = vtanh.f32 %v393_v62 }
  0x24   : > { %v422_v56 = vmul.f32 %v1710_v51, %v1929_v18  ;;  %v451_v58 = vsel %vm431_vm0, %v421_v52, 0.0  ;;  %v1712_v59 = vpop.eup %1711  ;;  %1723 = vtanh.f32 %v395_v7  ;;  %v951_v51 = vadd.f32 %v2043_v41, %v1975_v50 }
  0x25   : > { %v457_v61 = vsel %vm431_vm0, %v423_v55, 0.0  ;;  %v1714_v63 = vpop.eup %1713  ;;  %v424_v5 = vmul.f32 %v1712_v59, %v1929_v18  ;;  %v953_v52 = vadd.f32 %v2043_v41, %v1979_v54 }
  0x26   : > { %v454_v0 = vsel %vm435_vm1, %v422_v56, 0.0  ;;  %v1993_v1 = vpop.eup %1715  ;;  %v426_v6 = vmul.f32 %v1714_v63, %v1929_v18 }
  0x27   : > { %437 = vadd.xlane.f32.xlu0 %v436_v42  ;;  %v425_v2 = vmul.f32 %v1993_v1, %v1929_v18  ;;  %v460_v8 = vsel %vm435_vm1, %v424_v5, 0.0  ;;  %v2002_v11 = vpop.eup %1717  ;;  %v939_v42 = vadd.f32 %v2043_v41, %v1902_v4 }
  0x28   : > { %v466_v12 = vsel %vm435_vm1, %v426_v6, 0.0  ;;  %v2005_v13 = vpop.eup %1719  ;;  %v427_v16 = vmul.f32 %v2002_v11, %v1929_v18  ;;  %v2078_v6 = vld [vmem:[%s1891_s9 + $0x8] sm:$0x3] }
  0x29   : > { %449 = vadd.xlane.f32.xlu2 %v448_v46  ;;  %v463_v14 = vsel %vm431_vm0, %v425_v2, 0.0  ;;  %v1722_v15 = vpop.eup %1721  ;;  %v429_v3 = vmul.f32 %v2005_v13, %v1929_v18  ;;  %v945_v46 = vadd.f32 %v2043_v41, %v1924_v17  ;;  %1725 = vtanh.f32 %v939_v42 }
  0x2a   : > { %443 = vadd.xlane.f32.xlu1 %v442_v49  ;;  %v428_v21 = vmul.f32 %v1722_v15, %v1929_v18  ;;  %v469_v22 = vsel %vm431_vm0, %v427_v16, 0.0  ;;  %v1724_v23 = vpop.eup %1723  ;;  %1727 = vtanh.f32 %v943_v45 }
  0x2b   : > { %v475_v25 = vsel %vm431_vm0, %v429_v3, 0.0  ;;  %v430_v28 = vmul.f32 %v1724_v23, %v1929_v18  ;;  %1729 = vtanh.f32 %v945_v46 }
  0x2c   : > { %v472_v26 = vsel %vm435_vm1, %v428_v21, 0.0  ;;  %1731 = vtanh.f32 %v949_v47 }
  0x2d   : > { %v478_v29 = vsel %vm435_vm1, %v430_v28, 0.0  ;;  %1733 = vtanh.f32 %v951_v51  ;;  %v1249_v28 = vadd.f32 %v2078_v6, %v1909_v9 }
  0x2e   : > { %1735 = vtanh.f32 %v953_v52 }
  0x2f   : > { %452 = vadd.xlane.f32.xlu0 %v451_v58  ;;  %v1726_v55 = vpop.eup %1725  ;;  %v2068_v58 = vld [vmem:[%s1891_s9 + $0x8] sm:$0x3] }
  0x30   : > { %v1728_v56 = vpop.eup %1727  ;;  %v634_v5 = vadd.f32 %v2068_v58, %v1902_v4  ;;  %v636_v42 = vadd.f32 %v2068_v58, %v1911_v10 }
  0x31   : > { %458 = vadd.xlane.f32.xlu2 %v457_v61  ;;  %v1730_v59 = vpop.eup %1729 }
  0x32   : > { %455 = vadd.xlane.f32.xlu1 %v454_v0  ;;  %v1732_v61 = vpop.eup %1731  ;;  %1737 = vtanh.f32 %v634_v5 }
  0x33   : > { %v1734_v0 = vpop.eup %1733 }
  0x34   : > { %v1736_v2 = vpop.eup %1735 }
  0x37   : > { %461 = vadd.xlane.f32.xlu0 %v460_v8 }
  0x39   : > { %467 = vadd.xlane.f32.xlu2 %v466_v12  ;;  %v1245_v12 = vadd.f32 %v2078_v6, %v1902_v4  ;;  %v1247_v4 = vadd.f32 %v2078_v6, %v1911_v10 }
  0x3a   : > { %464 = vadd.xlane.f32.xlu1 %v463_v14 }
  0x3b   : > { %1739 = vtanh.f32 %v1245_v12 }
  0x3c   : > { %1741 = vtanh.f32 %v1247_v4 }
  0x3d   : > { %1743 = vtanh.f32 %v1249_v28 }
  0x3e   : > { %1745 = vtanh.f32 %v636_v42 }
  0x3f   : > { %470 = vadd.xlane.f32.xlu0 %v469_v22 }
  0x41   : > { %476 = vadd.xlane.f32.xlu2 %v475_v25  ;;  %v520_v25 = vlaneseq }
  0x42   : > { %473 = vadd.xlane.f32.xlu1 %v472_v26  ;;  %v1738_v26 = vpop.eup %1737 }
  0x43   : > { %v2111_v45 = vand.u32 127, %v520_v25 }
  0x47   : > { %479 = vadd.xlane.f32.xlu0 %v478_v29  ;;  %v1740_v29 = vpop.eup %1739 }
  0x59   : > { %970 = vrot.lane.b32.xlu2 %v1929_v18, %s1814_s12 }
  0x5b   : > { %484 = vperm.xlu1 %1689, %v1692_v30   ;;  %1276 = vrot.lane.b32.xlu0 %v1929_v18, %s1815_s13 }
  0x61   : > { %665 = vrot.lane.b32.xlu2 %v1929_v18, %s1816_s14 }
  0x92   : > { %v2024_v31 = vpop.xlane.xlu0 %433 }
  0x94   : > { %v2026_v32 = vpop.xlane.xlu2 %446 }
  0x95   : > { %v2028_v33 = vpop.xlane.xlu1 %440 }
  0x9a   : > { %v2032_v35 = vpop.xlane.xlu0 %437 }
  0x9c   : > { %v2030_v34 = vpop.xlane.xlu2 %449 }
  0x9d   : > { %v2036_v38 = vpop.xlane.xlu1 %443 }
  0xa2   : > { %v2038_v39 = vpop.xlane.xlu0 %452 }
  0xa4   : > { %v2034_v36 = vpop.xlane.xlu2 %458 }
  0xa5   : > { %v2045_v18 = vpop.xlane.xlu1 %455 }
  0xaa   : > { %v2049_v44 = vpop.xlane.xlu0 %461 }
  0xac   : > { %v2040_v40 = vpop.xlane.xlu2 %467 }
  0xad   : > { %v2063_v53 = vpop.xlane.xlu1 %464 }
  0xb2   : > { %v2065_v57 = vpop.xlane.xlu0 %470 }
  0xb4   : > { %v2057_v49 = vpop.xlane.xlu2 %476 }
  0xb5   : > { %v474_v3 = vpop.xlane.xlu1 %473 }
  0xba   : > { %v480_v22 = vpop.xlane.xlu0 %479 }
  0xbc   : > { %v2070_v60 = vpop.permute.xlu2 %970 }
  0xbd   : > { %v975_v62 = vmul.f32 %v1944_v27, %v2070_v60  ;;  %v974_v63 = vmul.f32 %v1726_v55, %v2070_v60  ;;  %v2083_v7 = vmul.f32 %v1728_v56, %v2070_v60  ;;  %v2086_v8 = vmul.f32 %v1730_v59, %v2070_v60  ;;  %v1742_v55 = vpop.eup %1741 }
  0xbe   : > { %v2091_v14 = vmul.f32 %v1732_v61, %v2070_v60  ;;  %v2094_v15 = vmul.f32 %v1734_v0, %v2070_v60  ;;  %v2097_v16 = vmul.f32 %v1736_v2, %v2070_v60  ;;  %v979_v56 = vmul.f32 %v1964_v43, %v2070_v60  ;;  %v1744_v25 = vpop.eup %1743 }
  0xbf   : > { %1009 = vrot.lane.b32.xlu0 %v975_v62, %s1817_s15  ;;  %1007 = vrot.lane.b32.xlu1 %v974_v63, %s1817_s15  ;;  %v2124_v59 = vadd.s32 4294967288, %v2111_v45  ;;  %v1746_v28 = vpop.eup %1745 }
  0xc4   : > { %v2099_v21 = vpop.permute.xlu2 %665 }
  0xc5   : > { %v668_v23 = vmul.f32 %v1933_v20, %v2099_v21  ;;  %v669_v30 = vmul.f32 %v1738_v26, %v2099_v21  ;;  %v670_v0 = vmul.f32 %v1944_v27, %v2099_v21 }
  0xc7   : > { %700 = vrot.lane.b32.xlu2 %v668_v23, %s1818_s16 }
  0xcd   : > { %v2113_v46 = vpop.permute.xlu1 %484  ;;  %v2115_v47 = vpop.permute.xlu0 %1276 }
  0xce   : > { %v1279_v51 = vmul.f32 %v1933_v20, %v2115_v47  ;;  %v1280_v52 = vmul.f32 %v1740_v29, %v2115_v47  ;;  %v487_v61 = vadd.f32 %v2113_v46, %v2024_v31  ;;  %v488_v62 = vadd.f32 %v2113_v46, %v2032_v35 }
  0xcf   : > { %702 = vrot.lane.b32.xlu2 %v669_v30, %s1818_s16  ;;  %v489_v63 = vadd.f32 %v2113_v46, %v2028_v33  ;;  %v490_v5 = vadd.f32 %v2113_v46, %v2036_v38  ;;  %v491_v2 = vadd.f32 %v2113_v46, %v2026_v32  ;;  %v492_v12 = vadd.f32 %v2113_v46, %v2030_v34 }
  0xd0   : > { %1311 = vrot.lane.b32.xlu0 %v1279_v51, %s1819_s17  ;;  %1313 = vrot.lane.b32.xlu1 %v1280_v52, %s1819_s17  ;;  %v1282_v31 = vmul.f32 %v1742_v55, %v2115_v47  ;;  %v493_v35 = vadd.f32 %v2113_v46, %v2038_v39  ;;  %v495_v33 = vadd.f32 %v2113_v46, %v2034_v36 }
  0xd1   : > { %v496_v23 = vadd.f32 %v2113_v46, %v2049_v44  ;;  %v494_v38 = vadd.f32 %v2113_v46, %v2045_v18  ;;  %v497_v32 = vadd.f32 %v2113_v46, %v2063_v53  ;;  %v498_v34 = vadd.f32 %v2113_v46, %v2040_v40 }
  0xd2   : > { %v499_v4 = vadd.f32 %v2113_v46, %v2065_v57  ;;  %v500_v39 = vadd.f32 %v2113_v46, %v474_v3  ;;  %v522_v36 = vperm.slane %v487_v61, %v2111_v45  ;;  %v524_v26 = vperm.slane %v488_v62, %v2124_v59 }
  0xd3   : > { %v527_v44 = vperm.slane %v489_v63, %v2111_v45  ;;  %v501_v18 = vadd.f32 %v2113_v46, %v2057_v49  ;;  %v528_v53 = vperm.slane %v490_v5, %v2124_v59  ;;  %v530_v40 = vperm.slane %v491_v2, %v2111_v45 }
  0xd4   : > { %v531_v29 = vperm.slane %v492_v12, %v2124_v59  ;;  %v502_v57 = vadd.f32 %v2113_v46, %v480_v22  ;;  %v526_v3 = vsel %vm525_vm2, %v524_v26, %v522_v36  ;;  %v536_v30 = vperm.slane %v495_v33, %v2111_v45 }
  0xd5   : > { %v537_v42 = vperm.slane %v496_v23, %v2124_v59  ;;  %v529_v51 = vsel %vm525_vm2, %v528_v53, %v527_v44  ;;  %v533_v52 = vperm.slane %v493_v35, %v2111_v45  ;;  %v534_v55 = vperm.slane %v494_v38, %v2124_v59 }
  0xd6   : > { %v532_v49 = vsel %vm525_vm2, %v531_v29, %v530_v40  ;;  %v947_v22 = vadd.f32 %v2043_v41, %v1931_v19  ;;  %v539_v62 = vperm.slane %v497_v32, %v2111_v45  ;;  %v540_v63 = vperm.slane %v498_v34, %v2124_v59 }
  0xd7   : > { %704 = vrot.lane.b32.xlu2 %v670_v0, %s1818_s16  ;;  %v538_v61 = vsel %vm525_vm2, %v537_v42, %v536_v30  ;;  %v542_v0 = vperm.slane %v499_v4, %v2111_v45  ;;  %v543_v5 = vperm.slane %v500_v39, %v2124_v59  ;;  %v549_v2 = vsel %vm548_vm3, %v529_v51, %v526_v3 }
  0xd8   : > { %1317 = vrot.lane.b32.xlu0 %v1282_v31, %s1819_s17  ;;  %1017 = vrot.lane.b32.xlu1 %v979_v56, %s1817_s15  ;;  %v535_v56 = vsel %vm525_vm2, %v534_v55, %v533_v52  ;;  %v545_v12 = vperm.slane %v501_v18, %v2111_v45  ;;  %v546_v31 = vperm.slane %v502_v57, %v2124_v59  ;;  %1747 = vtanh.f32 %v947_v22 }
  0xd9   : > { %v551_v35 = vsel %vm550_vm4, %v532_v49, %v549_v2  ;;  %v671_v23 = vmul.f32 %v1746_v28, %v2099_v21  ;;  %v541_v38 = vsel %vm525_vm2, %v540_v63, %v539_v62  ;;  %v1283_v34 = vmul.f32 %v1939_v24, %v2115_v47  ;;  %v2234_v49 = vld [vmem:[%s340_s20] sm:$0xff] }
  0xda   : > { %v553_v33 = vsel %vm552_vm5, %v535_v56, %v551_v35  ;;  %v1284_v4 = vmul.f32 %v1744_v25, %v2115_v47  ;;  %v544_v39 = vsel %vm525_vm2, %v543_v5, %v542_v0  ;;  %v547_v26 = vsel %vm525_vm2, %v546_v31, %v545_v12 }
  0xdb   : > { %v555_v32 = vsel %vm554_vm6, %v538_v61, %v553_v33  ;;  %v941_v28 = vadd.f32 %v2043_v41, %v1911_v10  ;;  %v973_v53 = vmul.f32 %v1933_v20, %v2070_v60  ;;  %v1253_v29 = vadd.f32 %v2078_v6, %v1931_v19 }
  0xdc   : > { %v557_v36 = vsel %vm556_vm7, %v541_v38, %v555_v32  ;;  %v983_v41 = vmul.f32 %v1993_v1, %v2070_v60  ;;  %v977_v3 = vmul.f32 %v1939_v24, %v2070_v60  ;;  %v638_v42 = vadd.f32 %v2068_v58, %v1909_v9 }
  0xdd   : > { %v559_v44 = vsel %vm558_vm8, %v544_v39, %v557_v36  ;;  %1749 = vtanh.f32 %v941_v28  ;;  %v1289_v51 = vmul.f32 %v1993_v1, %v2115_v47  ;;  %vm503_vm10 = vcmp.eq.f32.partialorder %v2234_v49, 0.0 }
  0xde   : > { %v561_v18 = vsel %vm560_vm9, %v547_v26, %v559_v44  ;;  %v1748_v25 = vpop.eup %1747  ;;  %1751 = vtanh.f32 %v1253_v29  ;;  %v1281_v9 = vmul.f32 %v1944_v27, %v2115_v47  ;;  %v640_v61 = vadd.f32 %v2068_v58, %v1924_v17 }
  0xdf   : > { %706 = vrot.lane.b32.xlu2 %v671_v23, %s1818_s16  ;;  %v982_v40 = vmul.f32 %v1748_v25, %v2070_v60  ;;  %1753 = vtanh.f32 %v638_v42  ;;  %v2242_v22 = vsel %vm503_vm10, -1e+10, %v561_v18  ;;  %v1291_v27 = vmul.f32 %v2002_v11, %v2115_v47 }
  0xe0   : > { %1319 = vrot.lane.b32.xlu0 %v1283_v34, %s1819_s17  ;;  %1321 = vrot.lane.b32.xlu1 %v1284_v4, %s1819_s17  ;;  %1755 = vtanh.f32 %v640_v61  ;;  %v1251_v62 = vadd.f32 %v2078_v6, %v1924_v17  ;;  %v981_v0 = vmul.f32 %v1972_v48, %v2070_v60  ;;  %v644_v2 = vadd.f32 %v2068_v58, %v1956_v37 }
  0xe1   : > { %v676_v17 = vmul.f32 %v1972_v48, %v2099_v21  ;;  %v1285_v12 = vmul.f32 %v1964_v43, %v2115_v47  ;;  %v1287_v33 = vmul.f32 %v1972_v48, %v2115_v47  ;;  %v1255_v32 = vadd.f32 %v2078_v6, %v1956_v37 }
  0xe2   : > { %1757 = vtanh.f32 %v1251_v62  ;;  %v682_v34 = vmul.f32 %v2005_v13, %v2099_v21  ;;  %v985_v48 = vmul.f32 %v2002_v11, %v2070_v60  ;;  %v987_v26 = vmul.f32 %v2005_v13, %v2070_v60 }
  0xe3   : > { %v1750_v57 = vpop.eup %1749  ;;  %1759 = vtanh.f32 %v644_v2  ;;  %v674_v44 = vmul.f32 %v1964_v43, %v2099_v21  ;;  %v646_v43 = vadd.f32 %v2068_v58, %v1975_v50  ;;  %v678_v29 = vmul.f32 %v1993_v1, %v2099_v21 }
  0xe4   : > { %v976_v10 = vmul.f32 %v1750_v57, %v2070_v60  ;;  %v1752_v20 = vpop.eup %1751  ;;  %1761 = vtanh.f32 %v1255_v32  ;;  %v680_v42 = vmul.f32 %v2002_v11, %v2099_v21 }
  0xe5   : > { %v1288_v30 = vmul.f32 %v1752_v20, %v2115_v47  ;;  %v1754_v52 = vpop.eup %1753 }
  0xe6   : > { %v673_v55 = vmul.f32 %v1754_v52, %v2099_v21  ;;  %v1756_v63 = vpop.eup %1755 }
  0xe7   : > { %1005 = vrot.lane.b32.xlu2 %v973_v53, %s1817_s15  ;;  %v675_v5 = vmul.f32 %v1756_v63, %v2099_v21  ;;  %v1293_v53 = vmul.f32 %v2005_v13, %v2115_v47 }
  0xe8   : > { %1023 = vrot.lane.b32.xlu0 %v982_v40, %s1817_s15 }
  0xef   : > { %1011 = vrot.lane.b32.xlu2 %v976_v10, %s1817_s15 }
  0xf0   : > { %1025 = vrot.lane.b32.xlu0 %v983_v41, %s1817_s15 }
  0xf7   : > { %1013 = vrot.lane.b32.xlu2 %v977_v3, %s1817_s15 }
  0xf8   : > { %1329 = vrot.lane.b32.xlu0 %v1288_v30, %s1819_s17 }
  0xff   : > { %1015 = vrot.lane.b32.xlu2 %v2083_v7, %s1817_s15  ;;  %v565_v7 = vsel %vm564_vm11, %v2242_v22, -inf }
 0x100   : > { %1331 = vrot.lane.b32.xlu0 %v1289_v51, %s1819_s17 }
 0x107   : > { %1315 = vrot.lane.b32.xlu2 %v1281_v9, %s1819_s17 }
 0x108   : > { %710 = vrot.lane.b32.xlu0 %v673_v55, %s1818_s16 }
 0x10a   : > { %566 = vmax.xlane.f32.xlu1 %v565_v7 }
 0x10f   : > { %1019 = vrot.lane.b32.xlu2 %v2086_v8, %s1817_s15  ;;  %v1758_v8 = vpop.eup %1757 }
 0x110   : > { %1335 = vrot.lane.b32.xlu0 %v1291_v27, %s1819_s17  ;;  %v1286_v56 = vmul.f32 %v1758_v8, %v2115_v47  ;;  %v1760_v35 = vpop.eup %1759 }
 0x111   : > { %v679_v23 = vmul.f32 %v1760_v35, %v2099_v21  ;;  %v1762_v4 = vpop.eup %1761 }
 0x112   : > { %v1290_v37 = vmul.f32 %v1762_v4, %v2115_v47 }
 0x117   : > { %1021 = vrot.lane.b32.xlu2 %v981_v0, %s1817_s15 }
 0x118   : > { %714 = vrot.lane.b32.xlu0 %v675_v5, %s1818_s16 }
 0x11f   : > { %1325 = vrot.lane.b32.xlu2 %v1286_v56, %s1819_s17 }
 0x120   : > { %716 = vrot.lane.b32.xlu0 %v676_v17, %s1818_s16 }
 0x121   : > { %v2271_v31 = vpop.permute.xlu2 %700 }
 0x123   : > { %1323 = vrot.lane.b32.xlu1 %v1285_v12, %s1819_s17 }
 0x127   : > { %1327 = vrot.lane.b32.xlu2 %v1287_v33, %s1819_s17 }
 0x128   : > { %722 = vrot.lane.b32.xlu0 %v679_v23, %s1818_s16 }
 0x129   : > { %v2281_v38 = vpop.permute.xlu2 %702 }
 0x12b   : > { %1027 = vrot.lane.b32.xlu1 %v2091_v14, %s1817_s15  ;;  %v672_v14 = vmul.f32 %v1939_v24, %v2099_v21  ;;  %v1259_v24 = vadd.f32 %v2078_v6, %v1979_v54 }
 0x12f   : > { %1031 = vrot.lane.b32.xlu2 %v2094_v15, %s1817_s15  ;;  %v1257_v15 = vadd.f32 %v2078_v6, %v1975_v50  ;;  %v642_v6 = vadd.f32 %v2068_v58, %v1931_v19  ;;  %v648_v50 = vadd.f32 %v2068_v58, %v1979_v54 }
 0x130   : > { %728 = vrot.lane.b32.xlu0 %v682_v34, %s1818_s16 }
 0x131   : > { %v2295_v39 = vpop.permute.xlu2 %704  ;;  %1763 = vtanh.f32 %v1257_v15  ;;  %v1008_v19 = vpop.permute.xlu1 %1007 }
 0x132   : > { %1765 = vtanh.f32 %v1259_v24  ;;  %v1056_v10 = vsel %vm435_vm1, %v1008_v19, 0.0  ;;  %v1010_v1 = vpop.permute.xlu0 %1009 }
 0x133   : > { %1029 = vrot.lane.b32.xlu1 %v985_v48, %s1817_s15  ;;  %1767 = vtanh.f32 %v642_v6  ;;  %v1059_v12 = vsel %vm431_vm0, %v1010_v1, 0.0 }
 0x134   : > { %1769 = vtanh.f32 %v646_v43 }
 0x135   : > { %1771 = vtanh.f32 %v648_v50 }
 0x137   : > { %708 = vrot.lane.b32.xlu2 %v672_v14, %s1818_s16  ;;  %v1764_v28 = vpop.eup %1763 }
 0x138   : > { %v1766_v18 = vpop.eup %1765 }
 0x139   : > { %v2304_v36 = vpop.permute.xlu2 %706  ;;  %v1294_v60 = vmul.f32 %v1766_v18, %v2115_v47  ;;  %v1768_v57 = vpop.eup %1767 }
 0x13a   : > { %v677_v41 = vmul.f32 %v1768_v57, %v2099_v21  ;;  %v1770_v20 = vpop.eup %1769  ;;  %v757_v50 = vsel %vm435_vm1, %v2304_v36, 0.0 }
 0x13b   : > { %1333 = vrot.lane.b32.xlu1 %v1290_v37, %s1819_s17  ;;  %v681_v13 = vmul.f32 %v1770_v20, %v2099_v21  ;;  %v1772_v51 = vpop.eup %1771 }
 0x13c   : > { %v683_v52 = vmul.f32 %v1772_v51, %v2099_v21 }
 0x13f   : > { %1035 = vrot.lane.b32.xlu2 %v2097_v16, %s1817_s15  ;;  %v1292_v16 = vmul.f32 %v1764_v28, %v2115_v47 }
 0x141   : > { %v1006_v25 = vpop.permute.xlu2 %1005 }
 0x142   : > { %v1314_v3 = vpop.permute.xlu1 %1313  ;;  %v1312_v54 = vpop.permute.xlu0 %1311  ;;  %v1053_v0 = vsel %vm431_vm0, %v1006_v25, 0.0 }
 0x143   : > { %1033 = vrot.lane.b32.xlu1 %v987_v26, %s1817_s15  ;;  %v1359_v35 = vsel %vm431_vm0, %v1312_v54, 0.0 }
 0x147   : > { %712 = vrot.lane.b32.xlu2 %v674_v44, %s1818_s16 }
 0x149   : > { %v1012_v40 = vpop.permute.xlu2 %1011 }
 0x14a   : > { %v1018_v58 = vpop.permute.xlu1 %1017  ;;  %v1318_v9 = vpop.permute.xlu0 %1317  ;;  %v1062_v56 = vsel %vm435_vm1, %v1012_v40, 0.0 }
 0x14b   : > { %1337 = vrot.lane.b32.xlu1 %v1292_v16, %s1819_s17  ;;  %v1071_v23 = vsel %vm431_vm0, %v1018_v58, 0.0  ;;  %v1368_v48 = vsel %vm435_vm1, %v1318_v9, 0.0 }
 0x14f   : > { %1341 = vrot.lane.b32.xlu2 %v1294_v60, %s1819_s17 }
 0x151   : > { %v1014_v47 = vpop.permute.xlu2 %1013 }
 0x152   : > { %v1065_v30 = vsel %vm431_vm0, %v1014_v47, 0.0  ;;  %v1322_v55 = vpop.permute.xlu1 %1321  ;;  %v1320_v62 = vpop.permute.xlu0 %1319 }
 0x153   : > { %1339 = vrot.lane.b32.xlu1 %v1293_v53, %s1819_s17  ;;  %v1374_v14 = vsel %vm435_vm1, %v1322_v55, 0.0  ;;  %v1371_v26 = vsel %vm431_vm0, %v1320_v62, 0.0 }
 0x157   : > { %720 = vrot.lane.b32.xlu2 %v678_v29, %s1818_s16  ;;  %v748_v29 = vsel %vm431_vm0, %v2271_v31, 0.0  ;;  %v754_v31 = vsel %vm431_vm0, %v2295_v39, 0.0 }
 0x159   : > { %v1016_v7 = vpop.permute.xlu2 %1015 }
 0x15a   : > { %1057 = vadd.xlane.f32.xlu0 %v1056_v10  ;;  %v1024_v21 = vpop.permute.xlu0 %1023  ;;  %v1068_v32 = vsel %vm435_vm1, %v1016_v7, 0.0 }
 0x15b   : > { %718 = vrot.lane.b32.xlu1 %v677_v41, %s1818_s16  ;;  %v1080_v25 = vsel %vm435_vm1, %v1024_v21, 0.0 }
 0x15f   : > { %726 = vrot.lane.b32.xlu2 %v681_v13, %s1818_s16 }
 0x161   : > { %v1316_v11 = vpop.permute.xlu2 %1315 }
 0x162   : > { %1066 = vadd.xlane.f32.xlu0 %v1065_v30  ;;  %v1026_v17 = vpop.permute.xlu0 %1025  ;;  %v1365_v15 = vsel %vm431_vm0, %v1316_v11, 0.0 }
 0x163   : > { %724 = vrot.lane.b32.xlu1 %v680_v42, %s1818_s16  ;;  %v1083_v40 = vsel %vm431_vm0, %v1026_v17, 0.0  ;;  %v751_v42 = vsel %vm435_vm1, %v2281_v38, 0.0 }
 0x169   : > { %v1020_v8 = vpop.permute.xlu2 %1019 }
 0x16a   : > { %v1330_v34 = vpop.permute.xlu0 %1329  ;;  %v1074_v28 = vsel %vm435_vm1, %v1020_v8, 0.0 }
 0x16b   : > { %730 = vrot.lane.b32.xlu1 %v683_v52, %s1818_s16  ;;  %v1386_v41 = vsel %vm435_vm1, %v1330_v34, 0.0 }
 0x171   : > { %v1022_v33 = vpop.permute.xlu2 %1021 }
 0x172   : > { %v1332_v24 = vpop.permute.xlu0 %1331  ;;  %v1077_v43 = vsel %vm431_vm0, %v1022_v33, 0.0 }
 0x179   : > { %v1326_v4 = vpop.permute.xlu2 %1325 }
 0x17a   : > { %v711_v6 = vpop.permute.xlu0 %710  ;;  %v1380_v10 = vsel %vm435_vm1, %v1326_v4, 0.0 }
 0x17b   : > { %v763_v54 = vsel %vm435_vm1, %v711_v6, 0.0 }
 0x17d   : > { %v567_v61 = vpop.xlane.xlu1 %566 }
 0x17e   : > { %v568_v27 = vsub.f32 %v2242_v22, %v567_v61  ;;  %v1362_v22 = vsel %vm435_vm1, %v1314_v3, 0.0  ;;  %v1389_v3 = vsel %vm431_vm0, %v1332_v24, 0.0 }
 0x180   : > { %v569_v63 = vmul.f32 1.442695, %v568_v27 }
 0x181   : > { %v1328_v16 = vpop.permute.xlu2 %1327 }
 0x182   : > { %1773 = vpow2.f32 %v569_v63  ;;  %v1336_v19 = vpop.permute.xlu0 %1335  ;;  %v1383_v47 = vsel %vm431_vm0, %v1328_v16, 0.0 }
 0x183   : > { %v1395_v38 = vsel %vm431_vm0, %v1336_v19, 0.0 }
 0x188   : > { %v2343_v5 = vpop.eup %1773  ;;  %1054 = vadd.xlane.f32.xlu2 %v1053_v0 }
 0x189   : > { %v571_v2 = vsel %vm564_vm11, %v2343_v5, 0.0  ;;  %v1032_v53 = vpop.permute.xlu2 %1031 }
 0x18a   : > { %572 = vadd.xlane.f32.xlu0 %v571_v2  ;;  %v715_v1 = vpop.permute.xlu0 %714  ;;  %v1092_v52 = vsel %vm435_vm1, %v1032_v53, 0.0  ;;  %v353_v2 = vld [vmem:[%s2388_s28 + $0x8] sm:$0x3] }
 0x18b   : > { %v769_v63 = vsel %vm435_vm1, %v715_v1, 0.0  ;;  %1646 = vmatpush.msk.msra.mxu0 %vm579_vm12, %v353_v2 }
 0x190   : > { %1063 = vadd.xlane.f32.xlu2 %v1062_v56  ;;  %v2395_v56 = vld [vmem:[%s2388_s28] sm:$0xff] }
 0x191   : > { %v709_v20 = vpop.permute.xlu2 %708  ;;  %598 = vmatpush.msra.mxu0 %v2395_v56 }
 0x192   : > { %1363 = vadd.xlane.f32.xlu0 %v1362_v22  ;;  %v717_v36 = vpop.permute.xlu0 %716  ;;  %v760_v9 = vsel %vm431_vm0, %v709_v20, 0.0 }
 0x193   : > { %v772_v17 = vsel %vm431_vm0, %v717_v36, 0.0 }
 0x195   : > { %1060 = vadd.xlane.f32.xlu1 %v1059_v12  ;;  %v1324_v37 = vpop.permute.xlu1 %1323 }
 0x196   : > { %v1377_v44 = vsel %vm431_vm0, %v1324_v37, 0.0 }
 0x198   : > { %1360 = vadd.xlane.f32.xlu2 %v1359_v35 }
 0x199   : > { %v1036_v30 = vpop.permute.xlu2 %1035 }
 0x19a   : > { %1072 = vadd.xlane.f32.xlu0 %v1071_v23  ;;  %v723_v7 = vpop.permute.xlu0 %722  ;;  %v1098_v62 = vsel %vm435_vm1, %v1036_v30, 0.0 }
 0x19d   : > { %1069 = vadd.xlane.f32.xlu1 %v1068_v32  ;;  %v1028_v18 = vpop.permute.xlu1 %1027  ;;  %v781_v32 = vsel %vm435_vm1, %v723_v7, 0.0 }
 0x19e   : > { %v1086_v60 = vsel %vm435_vm1, %v1028_v18, 0.0 }
 0x1a0   : > { %1369 = vadd.xlane.f32.xlu2 %v1368_v48 }
 0x1a1   : > { %v713_v39 = vpop.permute.xlu2 %712 }
 0x1a2   : > { %1375 = vadd.xlane.f32.xlu0 %v1374_v14  ;;  %v729_v0 = vpop.permute.xlu0 %728  ;;  %v766_v8 = vsel %vm431_vm0, %v713_v39, 0.0 }
 0x1a5   : > { %1366 = vadd.xlane.f32.xlu1 %v1365_v15  ;;  %v1030_v57 = vpop.permute.xlu1 %1029  ;;  %v790_v15 = vsel %vm431_vm0, %v729_v0, 0.0 }
 0x1a6   : > { %v1089_v58 = vsel %vm431_vm0, %v1030_v57, 0.0 }
 0x1a8   : > { %1372 = vadd.xlane.f32.xlu2 %v1371_v26 }
 0x1a9   : > { %v1342_v27 = vpop.permute.xlu2 %1341 }
 0x1aa   : > { %1378 = vadd.xlane.f32.xlu0 %v1377_v44  ;;  %v1404_v23 = vsel %vm435_vm1, %v1342_v27, 0.0 }
 0x1ad   : > { %1075 = vadd.xlane.f32.xlu1 %v1074_v28  ;;  %v1334_v13 = vpop.permute.xlu1 %1333 }
 0x1ae   : > { %v1392_v61 = vsel %vm435_vm1, %v1334_v13, 0.0 }
 0x1b0   : > { %1081 = vadd.xlane.f32.xlu2 %v1080_v25 }
 0x1b1   : > { %v721_v22 = vpop.permute.xlu2 %720 }
 0x1b2   : > { %1087 = vadd.xlane.f32.xlu0 %v1086_v60  ;;  %v778_v37 = vsel %vm431_vm0, %v721_v22, 0.0 }
 0x1b5   : > { %1078 = vadd.xlane.f32.xlu1 %v1077_v43  ;;  %v1034_v51 = vpop.permute.xlu1 %1033 }
 0x1b6   : > { %v1095_v21 = vsel %vm431_vm0, %v1034_v51, 0.0 }
 0x1b8   : > { %1084 = vadd.xlane.f32.xlu2 %v1083_v40 }
 0x1b9   : > { %v727_v34 = vpop.permute.xlu2 %726 }
 0x1ba   : > { %749 = vadd.xlane.f32.xlu0 %v748_v29  ;;  %v787_v6 = vsel %vm435_vm1, %v727_v34, 0.0 }
 0x1bd   : > { %1381 = vadd.xlane.f32.xlu1 %v1380_v10  ;;  %v1338_v55 = vpop.permute.xlu1 %1337 }
 0x1be   : > { %v1398_v33 = vsel %vm435_vm1, %v1338_v55, 0.0 }
 0x1c0   : > { %1387 = vadd.xlane.f32.xlu2 %v1386_v41 }
 0x1c2   : > { %758 = vadd.xlane.f32.xlu0 %v757_v50 }
 0x1c5   : > { %1384 = vadd.xlane.f32.xlu1 %v1383_v47  ;;  %v1340_v11 = vpop.permute.xlu1 %1339 }
 0x1c6   : > { %v1401_v48 = vsel %vm431_vm0, %v1340_v11, 0.0 }
 0x1c8   : > { %755 = vadd.xlane.f32.xlu2 %v754_v31 }
 0x1ca   : > { %1390 = vadd.xlane.f32.xlu0 %v1389_v3 }
 0x1cd   : > { %752 = vadd.xlane.f32.xlu1 %v751_v42  ;;  %v1058_v12 = vpop.xlane.xlu0 %1057  ;;  %v719_v35 = vpop.permute.xlu1 %718 }
 0x1ce   : > { %v1102_v24 = vadd.f32 %v1058_v12, %v2113_v46  ;;  %v775_v28 = vsel %vm435_vm1, %v719_v35, 0.0 }
 0x1d0   : > { %1093 = vadd.xlane.f32.xlu2 %v1092_v52  ;;  %v1134_v18 = vperm.slane %v1102_v24, %v2124_v59 }
 0x1d2   : > { %764 = vadd.xlane.f32.xlu0 %v763_v54 }
 0x1d5   : > { %1090 = vadd.xlane.f32.xlu1 %v1089_v58  ;;  %v1067_v14 = vpop.xlane.xlu0 %1066  ;;  %v725_v4 = vpop.permute.xlu1 %724 }
 0x1d6   : > { %v784_v29 = vsel %vm431_vm0, %v725_v4, 0.0  ;;  %v1105_v52 = vadd.f32 %v1067_v14, %v2113_v46 }
 0x1d8   : > { %761 = vadd.xlane.f32.xlu2 %v760_v9  ;;  %v1139_v9 = vperm.slane %v1105_v52, %v2111_v45 }
 0x1da   : > { %1396 = vadd.xlane.f32.xlu0 %v1395_v38 }
 0x1dd   : > { %1393 = vadd.xlane.f32.xlu1 %v1392_v61  ;;  %v731_v60 = vpop.permute.xlu1 %730 }
 0x1de   : > { %v793_v3 = vsel %vm435_vm1, %v731_v60, 0.0 }
 0x1e0   : > { %1099 = vadd.xlane.f32.xlu2 %v1098_v62 }
 0x1e2   : > { %770 = vadd.xlane.f32.xlu0 %v769_v63 }
 0x1e5   : > { %1096 = vadd.xlane.f32.xlu1 %v1095_v21 }
 0x1e8   : > { %767 = vadd.xlane.f32.xlu2 %v766_v8 }
 0x1ea   : > { %773 = vadd.xlane.f32.xlu0 %v772_v17 }
 0x1ed   : > { %1399 = vadd.xlane.f32.xlu1 %v1398_v33 }
 0x1f0   : > { %1405 = vadd.xlane.f32.xlu2 %v1404_v23 }
 0x1f2   : > { %782 = vadd.xlane.f32.xlu0 %v781_v32 }
 0x1f5   : > { %1402 = vadd.xlane.f32.xlu1 %v1401_v48 }
 0x1f8   : > { %779 = vadd.xlane.f32.xlu2 %v778_v37 }
 0x1fa   : > { %791 = vadd.xlane.f32.xlu0 %v790_v15 }
 0x1fb   : > { %v1055_v26 = vpop.xlane.xlu2 %1054 }
 0x1fc   : > { %v1101_v44 = vadd.f32 %v1055_v26, %v2113_v46 }
 0x1fd   : > { %v573_v16 = vpop.xlane.xlu0 %572  ;;  %776 = vadd.xlane.f32.xlu1 %v775_v28 }
 0x1fe   : > { %v1133_v25 = vperm.slane %v1101_v44, %v2111_v45  ;;  %1775 = vrcp.f32 %v573_v16 }
 0x200   : > { %v1135_v43 = vsel %vm525_vm2, %v1134_v18, %v1133_v25  ;;  %788 = vadd.xlane.f32.xlu2 %v787_v6 }
 0x203   : > { %v1064_v53 = vpop.xlane.xlu2 %1063 }
 0x204   : > { %v1776_v40 = vpop.eup %1775  ;;  %v1104_v10 = vadd.f32 %v1064_v53, %v2113_v46 }
 0x205   : > { %v1364_v57 = vpop.xlane.xlu0 %1363  ;;  %785 = vadd.xlane.f32.xlu1 %v784_v29  ;;  %v575_v19 = vmul.f32 %v1776_v40, %v2343_v5 }
 0x206   : > { %v1408_v50 = vadd.f32 %v1364_v57, %v2113_v46  ;;  %v1137_v13 = vperm.slane %v1104_v10, %v2124_v59 }
 0x207   : > { %1647 = vmatmul.msk.f32.vlgmr.msra.gmra.mxu0 %vm564_vm11, %v575_v19 }
 0x208   : > { %v1061_v41 = vpop.xlane.xlu1 %1060  ;;  %v1440_v42 = vperm.slane %v1408_v50, %v2124_v59 }
 0x209   : > { %v1103_v20 = vadd.f32 %v1061_v41, %v2113_v46 }
 0x20b   : > { %v1136_v47 = vperm.slane %v1103_v20, %v2111_v45  ;;  %v1361_v1 = vpop.xlane.xlu2 %1360 }
 0x20c   : > { %v1407_v31 = vadd.f32 %v1361_v1, %v2113_v46 }
 0x20d   : > { %v1138_v5 = vsel %vm525_vm2, %v1137_v13, %v1136_v47  ;;  %v1073_v30 = vpop.xlane.xlu0 %1072  ;;  %794 = vadd.xlane.f32.xlu1 %v793_v3 }
 0x20e   : > { %v1157_v51 = vsel %vm548_vm3, %v1138_v5, %v1135_v43  ;;  %v1439_v36 = vperm.slane %v1407_v31, %v2111_v45  ;;  %v1107_v10 = vadd.f32 %v1073_v30, %v2113_v46 }
 0x210   : > { %v1441_v54 = vsel %vm525_vm2, %v1440_v42, %v1439_v36  ;;  %v1070_v58 = vpop.xlane.xlu1 %1069  ;;  %v1142_v42 = vperm.slane %v1107_v10, %v2111_v45 }
 0x211   : > { %v1106_v39 = vadd.f32 %v1070_v58, %v2113_v46 }
 0x213   : > { %v1140_v55 = vperm.slane %v1106_v39, %v2124_v59  ;;  %v1370_v7 = vpop.xlane.xlu2 %1369 }
 0x214   : > { %v1410_v62 = vadd.f32 %v1370_v7, %v2113_v46 }
 0x215   : > { %v1141_v38 = vsel %vm525_vm2, %v1140_v55, %v1139_v9  ;;  %v1376_v61 = vpop.xlane.xlu0 %1375 }
 0x216   : > { %v1158_v27 = vsel %vm550_vm4, %v1141_v38, %v1157_v51  ;;  %v1412_v0 = vadd.f32 %v1376_v61, %v2113_v46  ;;  %v1443_v21 = vperm.slane %v1410_v62, %v2124_v59 }
 0x218   : > { %v1367_v63 = vpop.xlane.xlu1 %1366  ;;  %v1446_v35 = vperm.slane %v1412_v0, %v2124_v59 }
 0x219   : > { %v1409_v11 = vadd.f32 %v1367_v63, %v2113_v46 }
 0x21b   : > { %v1442_v2 = vperm.slane %v1409_v11, %v2111_v45  ;;  %v1373_v8 = vpop.xlane.xlu2 %1372 }
 0x21c   : > { %v1411_v22 = vadd.f32 %v1373_v8, %v2113_v46 }
 0x21d   : > { %v1444_v17 = vsel %vm525_vm2, %v1443_v21, %v1442_v2  ;;  %v2440_v12 = vpop.xlane.xlu0 %1378 }
 0x21e   : > { %v1463_v33 = vsel %vm548_vm3, %v1444_v17, %v1441_v54  ;;  %v1445_v23 = vperm.slane %v1411_v22, %v2111_v45 }
 0x220   : > { %v1447_v32 = vsel %vm525_vm2, %v1446_v35, %v1445_v23  ;;  %v1076_v34 = vpop.xlane.xlu1 %1075 }
 0x221   : > { %v2447_v48 = vsel %vm550_vm4, %v1447_v32, %v1463_v33  ;;  %v1108_v29 = vadd.f32 %v1076_v34, %v2113_v46 }
 0x223   : > { %v1082_v14 = vpop.xlane.xlu2 %1081  ;;  %v1143_v13 = vperm.slane %v1108_v29, %v2124_v59 }
 0x224   : > { %v1110_v20 = vadd.f32 %v1082_v14, %v2113_v46  ;;  %v1413_v14 = vadd.f32 %v2440_v12, %v2113_v46 }
 0x225   : > { %v1088_v4 = vpop.xlane.xlu0 %1087  ;;  %v1144_v52 = vsel %vm525_vm2, %v1143_v13, %v1142_v42 }
 0x226   : > { %v1112_v47 = vadd.f32 %v1088_v4, %v2113_v46  ;;  %v1146_v51 = vperm.slane %v1110_v20, %v2124_v59  ;;  %v1159_v61 = vsel %vm552_vm5, %v1144_v52, %v1158_v27 }
 0x228   : > { %v1079_v37 = vpop.xlane.xlu1 %1078  ;;  %v1149_v54 = vperm.slane %v1112_v47, %v2124_v59 }
 0x229   : > { %v1109_v57 = vadd.f32 %v1079_v37, %v2113_v46 }
 0x22b   : > { %v1085_v15 = vpop.xlane.xlu2 %1084  ;;  %v1145_v31 = vperm.slane %v1109_v57, %v2111_v45  ;;  %v1448_v57 = vperm.slane %v1413_v14, %v2111_v45 }
 0x22c   : > { %v1111_v41 = vadd.f32 %v1085_v15, %v2113_v46 }
 0x22d   : > { %v2449_v24 = vpop.xlane.xlu0 %749  ;;  %v1147_v39 = vsel %vm525_vm2, %v1146_v51, %v1145_v31 }
 0x22e   : > { %v1148_v30 = vperm.slane %v1111_v41, %v2111_v45  ;;  %v1160_v21 = vsel %vm554_vm6, %v1147_v39, %v1159_v61 }
 0x230   : > { %v1382_v26 = vpop.xlane.xlu1 %1381  ;;  %v1150_v7 = vsel %vm525_vm2, %v1149_v54, %v1148_v30 }
 0x231   : > { %v1161_v2 = vsel %vm556_vm7, %v1150_v7, %v1160_v21  ;;  %v1414_v27 = vadd.f32 %v1382_v26, %v2113_v46 }
 0x233   : > { %v1388_v44 = vpop.xlane.xlu2 %1387  ;;  %v1449_v26 = vperm.slane %v1414_v27, %v2124_v59 }
 0x234   : > { %v1416_v37 = vadd.f32 %v1388_v44, %v2113_v46 }
 0x235   : > { %v2451_v28 = vpop.xlane.xlu0 %758  ;;  %v1450_v44 = vsel %vm525_vm2, %v1449_v26, %v1448_v57 }
 0x238   : > { %v1385_v16 = vpop.xlane.xlu1 %1384 }
 0x239   : > { %v1415_v23 = vadd.f32 %v1385_v16, %v2113_v46 }
 0x23b   : > { %v2453_v18 = vpop.xlane.xlu2 %755  ;;  %v1451_v16 = vperm.slane %v1415_v23, %v2111_v45 }
 0x23d   : > { %v1391_v25 = vpop.xlane.xlu0 %1390 }
 0x240   : > { %v2455_v6 = vpop.xlane.xlu1 %752 }
 0x243   : > { %v1094_v60 = vpop.xlane.xlu2 %1093 }
 0x244   : > { %v1114_v3 = vadd.f32 %v1094_v60, %v2113_v46  ;;  %v1417_v60 = vadd.f32 %v1391_v25, %v2113_v46 }
 0x245   : > { %v2457_v53 = vpop.xlane.xlu0 %764 }
 0x246   : > { %v1152_v9 = vperm.slane %v1114_v3, %v2124_v59  ;;  %v1454_v41 = vperm.slane %v1417_v60, %v2111_v45  ;;  %v1465_v3 = vsel %vm552_vm5, %v1450_v44, %v2447_v48  ;;  %v801_v21 = vadd.f32 %v2457_v53, %v2113_v46 }
 0x248   : > { %v1091_v43 = vpop.xlane.xlu1 %1090 }
 0x249   : > { %v1113_v50 = vadd.f32 %v1091_v43, %v2113_v46 }
 0x24b   : > { %v2459_v40 = vpop.xlane.xlu2 %761  ;;  %v1151_v36 = vperm.slane %v1113_v50, %v2111_v45 }
 0x24c   : > { %v800_v61 = vadd.f32 %v2459_v40, %v2113_v46 }
 0x24d   : > { %v1397_v5 = vpop.xlane.xlu0 %1396  ;;  %v1153_v62 = vsel %vm525_vm2, %v1152_v9, %v1151_v36 }
 0x24e   : > { %v1162_v22 = vsel %vm558_vm8, %v1153_v62, %v1161_v2  ;;  %v1419_v43 = vadd.f32 %v1397_v5, %v2113_v46  ;;  %v796_v62 = vadd.f32 %v2449_v24, %v2113_v46  ;;  %v834_v24 = vperm.slane %v800_v61, %v2111_v45 }
 0x250   : > { %v1394_v19 = vpop.xlane.xlu1 %1393  ;;  %v1457_v50 = vperm.slane %v1419_v43, %v2111_v45 }
 0x251   : > { %v1418_v4 = vadd.f32 %v1394_v19, %v2113_v46  ;;  %v1452_v19 = vperm.slane %v1416_v37, %v2124_v59 }
 0x253   : > { %v1100_v1 = vpop.xlane.xlu2 %1099  ;;  %v1455_v12 = vperm.slane %v1418_v4, %v2124_v59  ;;  %v1453_v25 = vsel %vm525_vm2, %v1452_v19, %v1451_v16 }
 0x254   : > { %v1116_v58 = vadd.f32 %v1100_v1, %v2113_v46  ;;  %v1466_v51 = vsel %vm554_vm6, %v1453_v25, %v1465_v3 }
 0x255   : > { %v771_v17 = vpop.xlane.xlu0 %770  ;;  %v1456_v1 = vsel %vm525_vm2, %v1455_v12, %v1454_v41 }
 0x256   : > { %v1155_v63 = vperm.slane %v1116_v58, %v2124_v59  ;;  %v1467_v36 = vsel %vm556_vm7, %v1456_v1, %v1466_v51  ;;  %v803_v40 = vadd.f32 %v771_v17, %v2113_v46 }
 0x258   : > { %v1097_v55 = vpop.xlane.xlu1 %1096  ;;  %v838_v4 = vperm.slane %v803_v40, %v2124_v59 }
 0x259   : > { %v1115_v38 = vadd.f32 %v1097_v55, %v2113_v46 }
 0x25b   : > { %v1154_v11 = vperm.slane %v1115_v38, %v2111_v45  ;;  %v768_v0 = vpop.xlane.xlu2 %767  ;;  %v797_v38 = vadd.f32 %v2455_v6, %v2113_v46  ;;  %v799_v6 = vadd.f32 %v2451_v28, %v2113_v46  ;;  %v835_v28 = vperm.slane %v801_v21, %v2124_v59 }
 0x25d   : > { %v1156_v8 = vsel %vm525_vm2, %v1155_v63, %v1154_v11  ;;  %v774_v13 = vpop.xlane.xlu0 %773  ;;  %v798_v63 = vadd.f32 %v2453_v18, %v2113_v46  ;;  %v802_v11 = vadd.f32 %v768_v0, %v2113_v46  ;;  %v828_v0 = vperm.slane %v796_v62, %v2111_v45 }
 0x25e   : > { %v1163_v35 = vsel %vm560_vm9, %v1156_v8, %v1162_v22  ;;  %v911_v8 = vld [vmem:[%s2388_s28 + $0x8] sm:$0x3]  ;;  %v829_v22 = vperm.slane %v797_v38, %v2124_v59 }
 0x25f   : > { %v2494_v33 = vsel %vm503_vm10, -1e+10, %v1163_v35  ;;  %v804_v35 = vadd.f32 %v774_v13, %v2113_v46  ;;  %v831_v27 = vperm.slane %v798_v63, %v2111_v45  ;;  %v837_v53 = vperm.slane %v802_v11, %v2111_v45 }
 0x260   : > { %v1400_v32 = vpop.xlane.xlu1 %1399  ;;  %v1166_v34 = vsel %vm564_vm11, %v2494_v33, -inf  ;;  %v830_v14 = vsel %vm525_vm2, %v829_v22, %v828_v0 }
 0x261   : > { %1167 = vmax.xlane.f32.xlu2 %v1166_v34  ;;  %v1420_v15 = vadd.f32 %v1400_v32, %v2113_v46  ;;  %v832_v34 = vperm.slane %v799_v6, %v2124_v59  ;;  %v840_v26 = vperm.slane %v804_v35, %v2111_v45 }
 0x263   : > { %v1406_v29 = vpop.xlane.xlu2 %1405  ;;  %v1458_v10 = vperm.slane %v1420_v15, %v2124_v59  ;;  %v836_v15 = vsel %vm525_vm2, %v835_v28, %v834_v24  ;;  %v833_v43 = vsel %vm525_vm2, %v832_v34, %v831_v27 }
 0x264   : > { %v1422_v20 = vadd.f32 %v1406_v29, %v2113_v46  ;;  %v839_v29 = vsel %vm525_vm2, %v838_v4, %v837_v53  ;;  %v852_v12 = vsel %vm548_vm3, %v833_v43, %v830_v14 }
 0x265   : > { %v1459_v5 = vsel %vm525_vm2, %v1458_v10, %v1457_v50  ;;  %v783_v7 = vpop.xlane.xlu0 %782  ;;  %v853_v44 = vsel %vm550_vm4, %v836_v15, %v852_v12 }
 0x266   : > { %v1461_v42 = vperm.slane %v1422_v20, %v2124_v59  ;;  %v1468_v54 = vsel %vm558_vm8, %v1459_v5, %v1467_v36  ;;  %v807_v57 = vadd.f32 %v783_v7, %v2113_v46  ;;  %v854_v25 = vsel %vm552_vm5, %v839_v29, %v853_v44  ;;  %v1217_v5 = vld [vmem:[%s2388_s28 + $0x8] sm:$0x3] }
 0x268   : > { %v1403_v47 = vpop.xlane.xlu1 %1402 }
 0x269   : > { %v1421_v31 = vadd.f32 %v1403_v47, %v2113_v46  ;;  %v844_v47 = vperm.slane %v807_v57, %v2124_v59 }
 0x26b   : > { %v1460_v30 = vperm.slane %v1421_v31, %v2111_v45  ;;  %v780_v39 = vpop.xlane.xlu2 %779 }
 0x26c   : > { %v806_v37 = vadd.f32 %v780_v39, %v2113_v46 }
 0x26d   : > { %v1462_v52 = vsel %vm525_vm2, %v1461_v42, %v1460_v30  ;;  %v792_v60 = vpop.xlane.xlu0 %791 }
 0x26e   : > { %v1469_v58 = vsel %vm560_vm9, %v1462_v52, %v1468_v54  ;;  %v843_v41 = vperm.slane %v806_v37, %v2111_v45  ;;  %v810_v20 = vadd.f32 %v792_v60, %v2113_v46 }
 0x26f   : > { %v2531_v48 = vsel %vm503_vm10, -1e+10, %v1469_v58 }
 0x270   : > { %v777_v9 = vpop.xlane.xlu1 %776  ;;  %v1472_v55 = vsel %vm564_vm11, %v2531_v48, -inf  ;;  %v845_v42 = vsel %vm525_vm2, %v844_v47, %v843_v41  ;;  %v849_v30 = vperm.slane %v810_v20, %v2111_v45 }
 0x271   : > { %1473 = vmax.xlane.f32.xlu0 %v1472_v55  ;;  %v805_v2 = vadd.f32 %v777_v9, %v2113_v46 }
 0x273   : > { %v789_v23 = vpop.xlane.xlu2 %788  ;;  %v841_v32 = vperm.slane %v805_v2, %v2124_v59 }
 0x274   : > { %v809_v16 = vadd.f32 %v789_v23, %v2113_v46 }
 0x275   : > { %v842_v19 = vsel %vm525_vm2, %v841_v32, %v840_v26 }
 0x276   : > { %v847_v50 = vperm.slane %v809_v16, %v2124_v59  ;;  %v855_v31 = vsel %vm554_vm6, %v842_v19, %v854_v25 }
 0x278   : > { %v786_v18 = vpop.xlane.xlu1 %785 }
 0x279   : > { %1181 = vrot.lane.b32.xlu2 %v911_v8, %s1817_s15  ;;  %v808_v17 = vadd.f32 %v786_v18, %v2113_v46 }
 0x27b   : > { %v846_v10 = vperm.slane %v808_v17, %v2111_v45 }
 0x27d   : > { %v848_v3 = vsel %vm525_vm2, %v847_v50, %v846_v10 }
 0x280   : > { %v795_v13 = vpop.xlane.xlu1 %794 }
 0x281   : > { %v811_v1 = vadd.f32 %v795_v13, %v2113_v46  ;;  %v856_v46 = vsel %vm556_vm7, %v845_v42, %v855_v31 }
 0x282   : > { %v857_v54 = vsel %vm558_vm8, %v848_v3, %v856_v46 }
 0x283   : > { %v850_v51 = vperm.slane %v811_v1, %v2124_v59 }
 0x284   : > { %v600_v36 = vpop.f32.mrf.mxu0 }
 0x285   : > { %603 = vst.msk [vmem:[%s2586_s29] sm:$0xff] %vm431_vm0, %v600_v36  ;;  %v851_v52 = vsel %vm525_vm2, %v850_v51, %v849_v30  ;;  %1487 = vrot.lane.b32.xlu0 %v1217_v5, %s1819_s17 }
 0x286   : > { %v858_v58 = vsel %vm560_vm9, %v851_v52, %v857_v54 }
 0x287   : > { %v860_v39 = vsel %vm503_vm10, -1e+10, %v858_v58 }
 0x288   : > { %v861_v45 = vsel %vm564_vm11, %v860_v39, -inf }
 0x289   : > { %862 = vmax.xlane.f32.xlu1 %v861_v45 }
 0x2a2   : > { %1179 = vrot.lane.b32.xlu1 %v2395_v56, %s1817_s15 }
 0x2d4   : > { %v1168_v59 = vpop.xlane.xlu2 %1167 }
 0x2d5   : > { %v1169_v9 = vsub.f32 %v2494_v33, %v1168_v59  ;;  %v606_v33 = vld [vmem:[%s2388_s28 + $0x8] sm:$0x3] }
 0x2d7   : > { %v1170_v55 = vmul.f32 1.442695, %v1169_v9 }
 0x2d9   : > { %1777 = vpow2.f32 %v1170_v55 }
 0x2dc   : > { %v1182_v6 = vpop.permute.xlu2 %1181 }
 0x2dd   : > { %1650 = vmatpush.msk.msra.mxu2 %vm579_vm12, %v1182_v6 }
 0x2df   : > { %v1778_v7 = vpop.eup %1777 }
 0x2e0   : > { %v1172_v38 = vsel %vm564_vm11, %v1778_v7, 0.0 }
 0x2e1   : > { %1173 = vadd.xlane.f32.xlu2 %v1172_v38 }
 0x2e4   : > { %v1474_v61 = vpop.xlane.xlu0 %1473 }
 0x2e5   : > { %v1475_v49 = vsub.f32 %v2531_v48, %v1474_v61 }
 0x2e7   : > { %v1476_v62 = vmul.f32 1.442695, %v1475_v49 }
 0x2e9   : > { %1779 = vpow2.f32 %v1476_v62 }
 0x2ef   : > { %v1780_v63 = vpop.eup %1779 }
 0x2f0   : > { %v1478_v11 = vsel %vm564_vm11, %v1780_v63, 0.0 }
 0x2f1   : > { %1479 = vadd.xlane.f32.xlu0 %v1478_v11 }
 0x2f7   : > { %v1488_v22 = vpop.permute.xlu0 %1487 }
 0x2f8   : > { %1652 = vmatpush.msk.msra.mxu3 %vm579_vm12, %v1488_v22 }
 0x2f9   : > { %876 = vrot.lane.b32.xlu2 %v606_v33, %s1818_s16 }
 0x2fc   : > { %v863_v21 = vpop.xlane.xlu1 %862 }
 0x2fd   : > { %v864_v2 = vsub.f32 %v860_v39, %v863_v21 }
 0x2ff   : > { %v865_v8 = vmul.f32 1.442695, %v864_v2 }
 0x301   : > { %1781 = vpow2.f32 %v865_v8 }
 0x305   : > { %1485 = vrot.lane.b32.xlu0 %v2395_v56, %s1819_s17 }
 0x307   : > { %v1782_v48 = vpop.eup %1781 }
 0x308   : > { %v867_v40 = vsel %vm564_vm11, %v1782_v48, 0.0 }
 0x309   : > { %868 = vadd.xlane.f32.xlu1 %v867_v40 }
 0x314   : > { %v1180_v24 = vpop.permute.xlu1 %1179 }
 0x315   : > { %1204 = vmatpush.msra.mxu2 %v1180_v24 }
 0x322   : > { %874 = vrot.lane.b32.xlu1 %v2395_v56, %s1818_s16 }
 0x354   : > { %v1174_v35 = vpop.xlane.xlu2 %1173 }
 0x355   : > { %1783 = vrcp.f32 %v1174_v35 }
 0x35b   : > { %v1784_v18 = vpop.eup %1783 }
 0x35c   : > { %v1176_v0 = vmul.f32 %v1784_v18, %v1778_v7  ;;  %v877_v27 = vpop.permute.xlu2 %876 }
 0x35d   : > { %1648 = vmatpush.msk.msra.mxu1 %vm579_vm12, %v877_v27 }
 0x35e   : > { %1651 = vmatmul.msk.f32.vlgmr.msra.gmra.mxu2 %vm564_vm11, %v1176_v0 }
 0x364   : > { %v1480_v53 = vpop.xlane.xlu0 %1479 }
 0x365   : > { %1785 = vrcp.f32 %v1480_v53 }
 0x36b   : > { %v1786_v23 = vpop.eup %1785 }
 0x36c   : > { %v1482_v32 = vmul.f32 %v1786_v23, %v1780_v63 }
 0x377   : > { %v1486_v28 = vpop.permute.xlu0 %1485 }
 0x378   : > { %1510 = vmatpush.msra.mxu3 %v1486_v28 }
 0x379   : > { %1653 = vmatmul.msk.f32.vlgmr.msra.gmra.mxu3 %vm564_vm11, %v1482_v32 }
 0x37c   : > { %v869_v17 = vpop.xlane.xlu1 %868 }
 0x37d   : > { %1787 = vrcp.f32 %v869_v17 }
 0x383   : > { %v1788_v56 = vpop.eup %1787 }
 0x384   : > { %v871_v14 = vmul.f32 %v1788_v56, %v1782_v48 }
 0x394   : > { %v875_v34 = vpop.permute.xlu1 %874 }
 0x395   : > { %899 = vmatpush.msra.mxu1 %v875_v34 }
 0x396   : > { %1649 = vmatmul.msk.f32.vlgmr.msra.gmra.mxu1 %vm564_vm11, %v871_v14 }
 0x3e1   : > { %v1206_v4 = vpop.f32.mrf.mxu2 }
 0x3e2   : > { %1210 = vrot.lane.b32.xlu2 %v1206_v4, %s1814_s12 }
 0x3fc   : > { %v1512_v37 = vpop.f32.mrf.mxu3 }
 0x3fd   : > { %1516 = vrot.lane.b32.xlu1 %v1512_v37, %s1815_s13 }
 0x413   : > { %v901_v15 = vpop.f32.mrf.mxu1 }
 0x414   : > { %905 = vrot.lane.b32.xlu0 %v901_v15, %s1816_s14 }
 0x43c   : > { %v1211_v60 = vpop.permute.xlu2 %1210 }
 0x46f   : > { %v1517_v16 = vpop.permute.xlu1 %1516 }
 0x486   : > { %v906_v26 = vpop.permute.xlu0 %905 }
 0x487   : > { %908 = vst.msk [vmem:[%s2586_s29] sm:$0xff] %vm525_vm2, %v906_v26 }
 0x488   : > { %1214 = vst.msk [vmem:[%s2586_s29] sm:$0xff] %vm1213_vm13, %v1211_v60 }
 0x489   : > { %1520 = vst.msk [vmem:[%s2586_s29] sm:$0xff] %vm1519_vm14, %v1517_v16 }
 0x48a PF: > { %s18_s25 = sadd.s32 1, %s1811_s25   ;;  %s2645_s23 = smov %s1807_s24 }
 0x48b   : > { %p15_p5 = scmp.ge.s32.totalorder %s18_s25, 4   ;;  %s2646_s24 = smov %s2648_s5 }
 0x48d   :  { %17 = sbr.rel (!%p15_p5) target bundleno = 3 (0x3), region = 83 }

// kernel: decoder_forward.37
= control target key start
LH: loop header
LB: loop body
LE: loop exit
PB: predicated region body
PF: predicated region fallthrough
CT: control target
= control target key end

     0   :  { %vm19_vm0 = vcmask 408576   ;;  %v133_v2 = vmov 0.0   ;;  %s187_s0 = inlined_call_operand.vmem [shape: f32[16,32], index: 0, kind: input, shape index: {}]   ;;  %s188_s1 = inlined_call_operand.vmem [shape: f32[32,50], index: 1, kind: input, shape index: {}]   ;;  %s189_s2 = inlined_call_operand.vmem [shape: f32[1,50], index: 2, kind: input, shape index: {}]   ;;  %s190_s3 = inlined_call_operand.hbm [shape: f32[16,50], index: 3, kind: output, shape index: {}]  }
   0x1   :  { %v29_v0 = vld [vmem:[%s188_s1 + $0x18] sm:$0xff]  ;;  %v28_v1 = vld [vmem:[%s188_s1 + $0x10] sm:$0xff]  ;;  %20 = vst.msk [vmem:[#allocation2] sm:$0xff] %vm19_vm0, %v133_v2  ;;  %v27_v3 = vld [vmem:[%s188_s1 + $0x8] sm:$0xff] }
   0x2   :  { %49 = vmatpush.msra.mxu0 %v29_v0  ;;  %98 = vmatpush.msra.mxu1 %v29_v0  ;;  %21 = vst.msk [vmem:[#allocation2 + $0x8] sm:$0xff] %vm19_vm0, %v133_v2 }
   0x3   :  { %8 = vsyncpa [#allocation4], 0  ;;  %v26_v4 = vld [vmem:[%s188_s1] sm:$0xff]  ;;  %vm30_vm1 = vcmask 261120   ;;  %v25_v6 = vld [vmem:[%s187_s0 + $0x8] sm:$0xff]  ;;  %s134_s25 = smov [#allocation3]  }
   0x4   :  { %50 = vmatpush.msra.mxu0 %v28_v1  ;;  %99 = vmatpush.msra.mxu1 %v28_v1  ;;  %v24_v5 = vld [vmem:[%s187_s0] sm:$0xff]  ;;  %s82_s0 = sshll.u32 %s134_s25, 4  ;;  %s84_s28 = sshll.u32 %s190_s3, 4  ;;  %s83_s0 = int_to_ptr.vmem [resolvable:$true] %s82_s0  ;;  %s85_s28 = int_to_ptr.hbm [resolvable:$true] %s84_s28 }
   0x5   :  { %v106_v13 = vld [vmem:[%s189_s2] ss:$0 sm:$0xff]  ;;  %s135_s29 = smov 128   ;;  %s136_s30 = smov 8  }
   0x6   :  { %51 = vmatpush.msra.mxu0 %v27_v3  ;;  %100 = vmatpush.msra.mxu1 %v27_v3 }
   0x8   :  { %52 = vmatpush.msra.mxu0 %v26_v4  ;;  %101 = vmatpush.msra.mxu1 %v26_v4  ;;  %v22_v7 = vld [vmem:[#allocation2] sm:$0xff] }
   0x9   :  { %96 = vmatmul.msk.f32.vlgmr.msra.gmra.mxu0 %vm30_vm1, %v24_v5  ;;  %97 = vmatmul.msk.f32.vlgmr.msra.gmra.mxu1 %vm30_vm1, %v25_v6  ;;  %v23_v8 = vld [vmem:[#allocation2 + $0x8] sm:$0xff] }
  0x86   :  { %v54_v9 = vpop.f32.mrf.mxu0  ;;  %v57_v10 = vpop.f32.mrf.mxu1 }
  0x87   :  { %v60_v11 = vadd.f32 %v54_v9, %v22_v7  ;;  %v61_v12 = vadd.f32 %v57_v10, %v23_v8 }
  0x89   :  { %63 = vst.msk [vmem:[#allocation2] sm:$0xff] %vm19_vm0, %v60_v11 }
  0x8a   :  { %64 = vst.msk [vmem:[#allocation2 + $0x8] sm:$0xff] %vm19_vm0, %v61_v12 }
  0x90   :  { %v68_v14 = vld [vmem:[#allocation2] sm:$0xff] }
  0x91   :  { %v69_v15 = vld [vmem:[#allocation2 + $0x8] sm:$0xff]  ;;  %v74_v16 = vadd.f32 %v106_v13, %v68_v14 }
  0x92   :  { %v75_v17 = vadd.f32 %v106_v13, %v69_v15 }
  0x93   :  { %76 = vst.msk [vmem:[#allocation3] sm:$0xff] %vm19_vm0, %v74_v16 }
  0x94   :  { %77 = vst.msk [vmem:[#allocation3 + $0x8] sm:$0xff] %vm19_vm0, %v75_v17 }
  0x95   :  { %90 = dma.vmem_to_hbm [thread:$0]  %s83_s0, 256, %s85_s28, [#allocation4], %s135_s29, %s135_s29, %s136_s30  }
  0x96   :  { %131 = dma.done.wait [#allocation4], 256  }
  0x97   :  { %132 = vsyncadd [#allocation4], 4294967040 }
  0x98   :  { %95 = vsyncpa [#allocation4], 1 }

// kernel: decoder_forward.33
= control target key start
LH: loop header
LB: loop body
LE: loop exit
PB: predicated region body
PF: predicated region fallthrough
CT: control target
= control target key end

     0   :  { %s2929_s0 = inlined_call_operand.vmem [shape: f32[2,8,32], index: 0, kind: input, shape index: {}]   ;;  %s2930_s1 = inlined_call_operand.vmem [shape: f32[2,10,32], index: 1, kind: input, shape index: {}]   ;;  %s2931_s2 = inlined_call_operand.vmem [shape: f32[2,10,32], index: 2, kind: input, shape index: {}]   ;;  %s2932_s3 = inlined_call_operand.vmem [shape: f32[2,1,8,10], index: 3, kind: input, shape index: {}]   ;;  %s2933_s4 = inlined_call_operand.vmem [shape: f32[1,8], index: 4, kind: input, shape index: {}]   ;;  %s2934_s5 = inlined_call_operand.<no memory space> [shape: f32[1,1], index: 5, kind: input, shape index: {}]   ;;  %s2935_s6 = inlined_call_operand.vmem [shape: f32[2,8,32], index: 6, kind: output, shape index: {0}]   ;;  %s2936_s7 = inlined_call_operand.hbm [shape: f32[2,4,8,10], index: 7, kind: output, shape index: {1}]  }
   0x1   :  { %2939 = sst [smem:[#allocation6_spill]] %s2929_s0  ;;  %v13_v0 = vstv %s2934_s5 }
   0x2   :  { %14 = vst [vmem:[#allocation2] sm:$0x1] %v13_v0 }
   0x3   :  { %15 = vsyncpa [#allocation4], 0 }
   0x4   :  { %17 = vsyncpa [#allocation4 + $0x1], 0  ;;  %s2066_s26 = smov 0   ;;  %s2068_s27 = smov 0  }
   0x5   :  { %s2070_s28 = smov 0   ;;  %s2072_s29 = smov 0  }
   0x6   :  { %s2074_s30 = smov 0   ;;  %s2076_s8 = smov 0  }
   0x7 LB: > { %s1740_s5 = sadd.s32 4294967295, %s2013_s8   ;;  %s1741_s9 = sadd.s32 4294967294, %s2013_s8   ;;  %s2013_s8 = sphi %s2076_s8, %s23_s8   ;;  %s2009_s30 = sphi %s2074_s30, %s2948_s30   ;;  %s2005_s29 = sphi %s2072_s29, %s2947_s29   ;;  %s2001_s28 = sphi %s2070_s28, %s2946_s28   ;;  %s1997_s27 = sphi %s2068_s27, %s2945_s27   ;;  %s1993_s26 = sphi %s2066_s26, %s2944_s26  }
   0x8   : > { %s35_s10 = sadd.s32 1, %s2009_s30  ;;  %s222_s11 = sadd.s32 1, %s2001_s28 }
   0x9   : > { %p37_p0 = scmp.ge.s32.totalorder %s35_s10, 2  ;;  %p232_p1 = scmp.ne.s32.totalorder %s2001_s28, %s1997_s27 }
   0xa   : > { %p233_p2 = scmp.eq.s32.totalorder %s1740_s5, 1  ;;  %p238_p3 = scmp.ne.s32.totalorder %s1997_s27, %s1993_s26 }
   0xb   : > { %s2950_s10 = smov (%p37_p0, %s35_s10), 0  ;;  %p239_p5 = scmp.eq.s32.totalorder %s1741_s9, 1 }
   0xc   : > { %p2106_p4 = por %p233_p2, %p232_p1  ;;  %s217_s13 = ssub.s32 %s2009_s30, %s2950_s10 }
   0xd   : > { %p1744_p6 = scmp.ge.s32.totalorder %s2013_s8, 1  ;;  %p220_p7 = scmp.eq.s32.totalorder %s217_s13, 0 }
   0xe   : > { %p2113_p8 = por %p239_p5, %p238_p3  ;;  %p299_p9 = scmp.lt.s32.totalorder %s2013_s8, 3 }
   0xf   : > { %s2119_s15 = scalar_select %p220_p7, %s2001_s28, %s222_s11  }
  0x10   : > { %p300_p10 = pnand %p1744_p6, %p299_p9 }
  0x11   : > { %p357_p11 = scmp.lt.s32.totalorder (!%p300_p10), %s2005_s29, 1  ;;  %s2942_s0 = sld [smem:[#allocation6_spill]] (!%p300_p10) }
  0x12   : > { %303 = sbr.rel (%p300_p10) target bundleno = 1173 (0x495), region = 44  ;;  %s2016_s9 = smov (!%p300_p10), 16  }
  0x13   : > { %s2017_s11 = smov (!%p300_p10), 24   ;;  %s2937_s13 = smov (!%p300_p10), 8  }
  0x14   : > { %s2019_s19 = smov (!%p300_p10), 112   ;;  %s2020_s20 = smov (!%p300_p10), 120  }
  0x17   : > { %s2123_s16 = scalar_select %p357_p11, %s2005_s29, 1  ;;  %v2176_v18 = vld [vmem:[%s2933_s4] ss:$0 sm:$0xff]  ;;  %vm471_vm0 = vcmask 64512   ;;  %vm475_vm1 = vcmask 58368   ;;  %v2015_v53 = vmov 0  }
  0x18   : > { %1835 = vset.pattern.permute.xlu1 %v2015_v53  ;;  %1836 = vset.pattern.permute.xlu0 %v2015_v53  ;;  %vm565_vm2 = vcmask 130112   ;;  %vm588_vm3 = vcmask 1041409   ;;  %vm590_vm4 = vcmask 1042434   ;;  %vm592_vm5 = vcmask 1043459  }
  0x19   : > { %s2126_s17 = sshll.u32 %s2123_s16, 3  ;;  %s1769_s18 = sshll.u32 %s2123_s16, 4  ;;  %vm594_vm6 = vcmask 1044484   ;;  %vm596_vm7 = vcmask 1045509   ;;  %vm598_vm8 = vcmask 1046534   ;;  %vm600_vm9 = vcmask 1047559  }
  0x1a   : > { %s363_s21 = scalar_lea.vmem %s2942_s0, %s2126_s17  ;;  %s2138_s24 = scalar_lea.vmem %s2930_s1, %s1769_s18  ;;  %vm604_vm11 = vcmask 80896   ;;  %vm619_vm12 = vcmask 1041408  }
  0x1b   : > { %v2140_v1 = vld [vmem:[%s363_s21] sm:$0xff]  ;;  %v2146_v3 = vld [vmem:[%s2138_s24 + $0x8] sm:$0x3]  ;;  %s2021_s21 = smov 104   ;;  %s2635_s22 = scalar_lea.vmem %s2931_s2, %s1769_s18 }
  0x1c   : > { %v2143_v2 = vld [vmem:[%s2138_s24] sm:$0xff]  ;;  %v2149_v4 = vperm.slane %v2140_v1, 0  ;;  %v398_v5 = vrot.slane %v2140_v1, 2  ;;  %v397_v6 = vrot.slane %v2140_v1, 1  ;;  %v399_v7 = vrot.slane %v2140_v1, 3  ;;  %s354_s16 = sand.u32 1, %s1997_s27   ;;  %s2840_s5 = scalar_lea.vmem %s2935_s6, %s2126_s17 }
  0x1d   : > { %v400_v12 = vrot.slane %v2140_v1, 4  ;;  %v401_v26 = vrot.slane %v2140_v1, 5  ;;  %v402_v41 = vrot.slane %v2140_v1, 6  ;;  %v403_v45 = vrot.slane %v2140_v1, 7  ;;  %s1745_s18 = sshll.u32 %s354_s16, 5 }
  0x1e   : > { %v420_v8 = vadd.f32 %v2149_v4, %v2143_v2  ;;  %v2156_v9 = vperm.slane %v398_v5, 0  ;;  %v2158_v10 = vperm.slane %v397_v6, 0  ;;  %v421_v11 = vadd.f32 %v2149_v4, %v2146_v3  ;;  %s2666_s23 = scalar_lea.vmem [#allocation3], %s1745_s18 }
  0x1f   : > { %v2171_v17 = vperm.slane %v399_v7, 0  ;;  %v2178_v19 = vperm.slane %v400_v12, 0  ;;  %v2203_v37 = vperm.slane %v401_v26, 0  ;;  %v2222_v50 = vperm.slane %v402_v41, 0  ;;  %v2290_v41 = vld [vmem:[%s2138_s24 + $0x8] sm:$0x3] }
  0x20   : > { %1839 = vtanh.f32 %v420_v8  ;;  %v424_v13 = vadd.f32 %v2156_v9, %v2143_v2  ;;  %v422_v14 = vadd.f32 %v2158_v10, %v2143_v2  ;;  %v425_v15 = vadd.f32 %v2156_v9, %v2146_v3 }
  0x21   : > { %1841 = vtanh.f32 %v421_v11  ;;  %v423_v16 = vadd.f32 %v2158_v10, %v2146_v3  ;;  %v426_v21 = vadd.f32 %v2171_v17, %v2143_v2  ;;  %v428_v25 = vadd.f32 %v2178_v19, %v2143_v2 }
  0x22   : > { %1843 = vtanh.f32 %v424_v13  ;;  %v427_v30 = vadd.f32 %v2171_v17, %v2146_v3  ;;  %v429_v40 = vadd.f32 %v2178_v19, %v2146_v3  ;;  %v431_v44 = vadd.f32 %v2203_v37, %v2146_v3 }
  0x23   : > { %1845 = vtanh.f32 %v422_v14  ;;  %v430_v47 = vadd.f32 %v2203_v37, %v2143_v2  ;;  %v2226_v54 = vperm.slane %v403_v45, 0  ;;  %v432_v57 = vadd.f32 %v2222_v50, %v2143_v2 }
  0x24   : > { %1847 = vtanh.f32 %v425_v15  ;;  %v433_v62 = vadd.f32 %v2222_v50, %v2146_v3  ;;  %v986_v45 = vadd.f32 %v2290_v41, %v2156_v9 }
  0x25   : > { %1849 = vtanh.f32 %v423_v16  ;;  %v434_v60 = vadd.f32 %v2226_v54, %v2143_v2  ;;  %v435_v7 = vadd.f32 %v2226_v54, %v2146_v3 }
  0x26   : > { %v2180_v20 = vpop.eup %1839  ;;  %1851 = vtanh.f32 %v426_v21 }
  0x27   : > { %v1842_v22 = vpop.eup %1841  ;;  %v455_v23 = vmul.f32 %v2180_v20, %v2176_v18  ;;  %1853 = vtanh.f32 %v428_v25 }
  0x28   : > { %v2186_v24 = vpop.eup %1843  ;;  %v456_v35 = vmul.f32 %v1842_v22, %v2176_v18  ;;  %1855 = vtanh.f32 %v427_v30  ;;  %v1838_v30 = vld [vmem:[#allocation2] ss:$0 sm:$0xff] }
  0x29   : > { %v2191_v27 = vpop.eup %1845  ;;  %v472_v28 = vsel %vm471_vm0, %v455_v23, 0.0  ;;  %v459_v29 = vmul.f32 %v2186_v24, %v2176_v18  ;;  %1857 = vtanh.f32 %v429_v40 }
  0x2a   : > { %v1848_v31 = vpop.eup %1847  ;;  %473 = vadd.xlane.f32.xlu0 %v472_v28  ;;  %v457_v32 = vmul.f32 %v2191_v27, %v2176_v18  ;;  %v476_v42 = vsel %vm475_vm1, %v456_v35, 0.0  ;;  %1859 = vtanh.f32 %v431_v44 }
  0x2b   : > { %v1850_v33 = vpop.eup %1849  ;;  %v485_v34 = vsel %vm471_vm0, %v459_v29, 0.0  ;;  %v460_v38 = vmul.f32 %v1848_v31, %v2176_v18  ;;  %1861 = vtanh.f32 %v430_v47  ;;  %v992_v47 = vadd.f32 %v2290_v41, %v2203_v37 }
  0x2c   : > { %486 = vadd.xlane.f32.xlu2 %v485_v34  ;;  %v479_v36 = vsel %vm471_vm0, %v457_v32, 0.0  ;;  %v458_v39 = vmul.f32 %v1850_v33, %v2176_v18  ;;  %v2211_v43 = vpop.eup %1851  ;;  %1863 = vtanh.f32 %v432_v57 }
  0x2d   : > { %480 = vadd.xlane.f32.xlu1 %v479_v36  ;;  %v488_v46 = vsel %vm475_vm1, %v460_v38, 0.0  ;;  %v2219_v48 = vpop.eup %1853  ;;  %v461_v52 = vmul.f32 %v2211_v43, %v2176_v18  ;;  %1865 = vtanh.f32 %v434_v60 }
  0x2e   : > { %v482_v49 = vsel %vm475_vm1, %v458_v39, 0.0  ;;  %v1856_v51 = vpop.eup %1855  ;;  %v463_v55 = vmul.f32 %v2219_v48, %v2176_v18  ;;  %1867 = vtanh.f32 %v433_v62 }
  0x2f   : > { %v462_v56 = vmul.f32 %v1856_v51, %v2176_v18  ;;  %v491_v58 = vsel %vm471_vm0, %v461_v52, 0.0  ;;  %v1858_v59 = vpop.eup %1857  ;;  %1869 = vtanh.f32 %v435_v7  ;;  %v994_v51 = vadd.f32 %v2290_v41, %v2222_v50 }
  0x30   : > { %v497_v61 = vsel %vm471_vm0, %v463_v55, 0.0  ;;  %v1860_v63 = vpop.eup %1859  ;;  %v464_v5 = vmul.f32 %v1858_v59, %v2176_v18  ;;  %v996_v52 = vadd.f32 %v2290_v41, %v2226_v54 }
  0x31   : > { %v494_v0 = vsel %vm475_vm1, %v462_v56, 0.0  ;;  %v2240_v1 = vpop.eup %1861  ;;  %v466_v6 = vmul.f32 %v1860_v63, %v2176_v18 }
  0x32   : > { %477 = vadd.xlane.f32.xlu0 %v476_v42  ;;  %v465_v2 = vmul.f32 %v2240_v1, %v2176_v18  ;;  %v500_v8 = vsel %vm475_vm1, %v464_v5, 0.0  ;;  %v2249_v11 = vpop.eup %1863  ;;  %v982_v42 = vadd.f32 %v2290_v41, %v2149_v4 }
  0x33   : > { %v506_v12 = vsel %vm475_vm1, %v466_v6, 0.0  ;;  %v2252_v13 = vpop.eup %1865  ;;  %v467_v16 = vmul.f32 %v2249_v11, %v2176_v18  ;;  %v2325_v6 = vld [vmem:[%s2138_s24 + $0x8] sm:$0x3] }
  0x34   : > { %489 = vadd.xlane.f32.xlu2 %v488_v46  ;;  %v503_v14 = vsel %vm471_vm0, %v465_v2, 0.0  ;;  %v1868_v15 = vpop.eup %1867  ;;  %v469_v3 = vmul.f32 %v2252_v13, %v2176_v18  ;;  %v988_v46 = vadd.f32 %v2290_v41, %v2171_v17  ;;  %1871 = vtanh.f32 %v982_v42 }
  0x35   : > { %483 = vadd.xlane.f32.xlu1 %v482_v49  ;;  %v468_v21 = vmul.f32 %v1868_v15, %v2176_v18  ;;  %v509_v22 = vsel %vm471_vm0, %v467_v16, 0.0  ;;  %v1870_v23 = vpop.eup %1869  ;;  %1873 = vtanh.f32 %v986_v45 }
  0x36   : > { %v515_v25 = vsel %vm471_vm0, %v469_v3, 0.0  ;;  %v470_v28 = vmul.f32 %v1870_v23, %v2176_v18  ;;  %1875 = vtanh.f32 %v988_v46 }
  0x37   : > { %v512_v26 = vsel %vm475_vm1, %v468_v21, 0.0  ;;  %1877 = vtanh.f32 %v992_v47 }
  0x38   : > { %v518_v29 = vsel %vm475_vm1, %v470_v28, 0.0  ;;  %1879 = vtanh.f32 %v994_v51  ;;  %v1294_v28 = vadd.f32 %v2325_v6, %v2156_v9 }
  0x39   : > { %1881 = vtanh.f32 %v996_v52 }
  0x3a   : > { %492 = vadd.xlane.f32.xlu0 %v491_v58  ;;  %v1872_v55 = vpop.eup %1871  ;;  %v2315_v58 = vld [vmem:[%s2138_s24 + $0x8] sm:$0x3]  ;;  %s380_s24 = scalar_lea.vmem %s2932_s3, %s2126_s17  ;;  %s1771_s17 = sshll.u32 %s2005_s29, 5 }
  0x3b   : > { %v1874_v56 = vpop.eup %1873  ;;  %v675_v5 = vadd.f32 %v2315_v58, %v2149_v4  ;;  %v677_v42 = vadd.f32 %v2315_v58, %v2158_v10  ;;  %s1955_s29 = scalar_lea.hbm %s2936_s7, 64 }
  0x3c   : > { %498 = vadd.xlane.f32.xlu2 %v497_v61  ;;  %v1876_v59 = vpop.eup %1875 }
  0x3d   : > { %495 = vadd.xlane.f32.xlu1 %v494_v0  ;;  %v1878_v61 = vpop.eup %1877  ;;  %1883 = vtanh.f32 %v675_v5 }
  0x3e   : > { %v1880_v0 = vpop.eup %1879 }
  0x3f   : > { %v1882_v2 = vpop.eup %1881 }
  0x42   : > { %501 = vadd.xlane.f32.xlu0 %v500_v8 }
  0x44   : > { %507 = vadd.xlane.f32.xlu2 %v506_v12  ;;  %v1290_v12 = vadd.f32 %v2325_v6, %v2149_v4  ;;  %v1292_v4 = vadd.f32 %v2325_v6, %v2158_v10 }
  0x45   : > { %504 = vadd.xlane.f32.xlu1 %v503_v14 }
  0x46   : > { %1885 = vtanh.f32 %v1290_v12 }
  0x47   : > { %1887 = vtanh.f32 %v1292_v4 }
  0x48   : > { %1889 = vtanh.f32 %v1294_v28 }
  0x49   : > { %1891 = vtanh.f32 %v677_v42 }
  0x4a   : > { %510 = vadd.xlane.f32.xlu0 %v509_v22 }
  0x4c   : > { %516 = vadd.xlane.f32.xlu2 %v515_v25  ;;  %v560_v25 = vlaneseq }
  0x4d   : > { %513 = vadd.xlane.f32.xlu1 %v512_v26  ;;  %v1884_v26 = vpop.eup %1883 }
  0x4e   : > { %v2358_v45 = vand.u32 127, %v560_v25 }
  0x52   : > { %519 = vadd.xlane.f32.xlu0 %v518_v29  ;;  %v1886_v29 = vpop.eup %1885 }
  0x64   : > { %1013 = vrot.lane.b32.xlu2 %v2176_v18, %s2016_s9 }
  0x66   : > { %524 = vperm.xlu1 %1835, %v1838_v30   ;;  %1321 = vrot.lane.b32.xlu0 %v2176_v18, %s2017_s11 }
  0x6c   : > { %706 = vrot.lane.b32.xlu2 %v2176_v18, %s2937_s13 }
  0x9d   : > { %v2271_v31 = vpop.xlane.xlu0 %473 }
  0x9f   : > { %v2273_v32 = vpop.xlane.xlu2 %486 }
  0xa0   : > { %v2275_v33 = vpop.xlane.xlu1 %480 }
  0xa5   : > { %v2279_v35 = vpop.xlane.xlu0 %477 }
  0xa7   : > { %v2277_v34 = vpop.xlane.xlu2 %489 }
  0xa8   : > { %v2283_v38 = vpop.xlane.xlu1 %483 }
  0xad   : > { %v2285_v39 = vpop.xlane.xlu0 %492 }
  0xaf   : > { %v2281_v36 = vpop.xlane.xlu2 %498 }
  0xb0   : > { %v2292_v18 = vpop.xlane.xlu1 %495 }
  0xb5   : > { %v2296_v44 = vpop.xlane.xlu0 %501 }
  0xb7   : > { %v2287_v40 = vpop.xlane.xlu2 %507 }
  0xb8   : > { %v2310_v53 = vpop.xlane.xlu1 %504 }
  0xbd   : > { %v2312_v57 = vpop.xlane.xlu0 %510 }
  0xbf   : > { %v2304_v49 = vpop.xlane.xlu2 %516 }
  0xc0   : > { %v514_v3 = vpop.xlane.xlu1 %513 }
  0xc5   : > { %v520_v22 = vpop.xlane.xlu0 %519 }
  0xc7   : > { %v2317_v60 = vpop.permute.xlu2 %1013 }
  0xc8   : > { %v1018_v62 = vmul.f32 %v2191_v27, %v2317_v60  ;;  %v1017_v63 = vmul.f32 %v1872_v55, %v2317_v60  ;;  %v2330_v7 = vmul.f32 %v1874_v56, %v2317_v60  ;;  %v2333_v8 = vmul.f32 %v1876_v59, %v2317_v60  ;;  %v1888_v55 = vpop.eup %1887 }
  0xc9   : > { %v2338_v14 = vmul.f32 %v1878_v61, %v2317_v60  ;;  %v2341_v15 = vmul.f32 %v1880_v0, %v2317_v60  ;;  %v2344_v16 = vmul.f32 %v1882_v2, %v2317_v60  ;;  %v1022_v56 = vmul.f32 %v2211_v43, %v2317_v60  ;;  %v1890_v25 = vpop.eup %1889 }
  0xca   : > { %1052 = vrot.lane.b32.xlu0 %v1018_v62, %s2019_s19  ;;  %1050 = vrot.lane.b32.xlu1 %v1017_v63, %s2019_s19  ;;  %v2371_v59 = vadd.s32 4294967288, %v2358_v45  ;;  %v1892_v28 = vpop.eup %1891 }
  0xcf   : > { %v2346_v21 = vpop.permute.xlu2 %706 }
  0xd0   : > { %v709_v23 = vmul.f32 %v2180_v20, %v2346_v21  ;;  %v710_v30 = vmul.f32 %v1884_v26, %v2346_v21  ;;  %v711_v0 = vmul.f32 %v2191_v27, %v2346_v21 }
  0xd2   : > { %741 = vrot.lane.b32.xlu2 %v709_v23, %s2020_s20 }
  0xd8   : > { %v2360_v46 = vpop.permute.xlu1 %524  ;;  %v2362_v47 = vpop.permute.xlu0 %1321 }
  0xd9   : > { %v1324_v51 = vmul.f32 %v2180_v20, %v2362_v47  ;;  %v1325_v52 = vmul.f32 %v1886_v29, %v2362_v47  ;;  %v527_v61 = vadd.f32 %v2360_v46, %v2271_v31  ;;  %v528_v62 = vadd.f32 %v2360_v46, %v2279_v35 }
  0xda   : > { %743 = vrot.lane.b32.xlu2 %v710_v30, %s2020_s20  ;;  %v529_v63 = vadd.f32 %v2360_v46, %v2275_v33  ;;  %v530_v5 = vadd.f32 %v2360_v46, %v2283_v38  ;;  %v531_v2 = vadd.f32 %v2360_v46, %v2273_v32  ;;  %v532_v12 = vadd.f32 %v2360_v46, %v2277_v34 }
  0xdb   : > { %1356 = vrot.lane.b32.xlu0 %v1324_v51, %s2021_s21  ;;  %1358 = vrot.lane.b32.xlu1 %v1325_v52, %s2021_s21  ;;  %v1327_v31 = vmul.f32 %v1888_v55, %v2362_v47  ;;  %v533_v35 = vadd.f32 %v2360_v46, %v2285_v39  ;;  %v535_v33 = vadd.f32 %v2360_v46, %v2281_v36 }
  0xdc   : > { %v536_v23 = vadd.f32 %v2360_v46, %v2296_v44  ;;  %v534_v38 = vadd.f32 %v2360_v46, %v2292_v18  ;;  %v537_v32 = vadd.f32 %v2360_v46, %v2310_v53  ;;  %v538_v34 = vadd.f32 %v2360_v46, %v2287_v40 }
  0xdd   : > { %v539_v4 = vadd.f32 %v2360_v46, %v2312_v57  ;;  %v540_v39 = vadd.f32 %v2360_v46, %v514_v3  ;;  %v562_v36 = vperm.slane %v527_v61, %v2358_v45  ;;  %v564_v26 = vperm.slane %v528_v62, %v2371_v59 }
  0xde   : > { %v567_v44 = vperm.slane %v529_v63, %v2358_v45  ;;  %v541_v18 = vadd.f32 %v2360_v46, %v2304_v49  ;;  %v568_v53 = vperm.slane %v530_v5, %v2371_v59  ;;  %v570_v40 = vperm.slane %v531_v2, %v2358_v45 }
  0xdf   : > { %v571_v29 = vperm.slane %v532_v12, %v2371_v59  ;;  %v542_v57 = vadd.f32 %v2360_v46, %v520_v22  ;;  %v566_v3 = vsel %vm565_vm2, %v564_v26, %v562_v36  ;;  %v576_v30 = vperm.slane %v535_v33, %v2358_v45 }
  0xe0   : > { %v577_v42 = vperm.slane %v536_v23, %v2371_v59  ;;  %v569_v51 = vsel %vm565_vm2, %v568_v53, %v567_v44  ;;  %v573_v52 = vperm.slane %v533_v35, %v2358_v45  ;;  %v574_v55 = vperm.slane %v534_v38, %v2371_v59 }
  0xe1   : > { %v572_v49 = vsel %vm565_vm2, %v571_v29, %v570_v40  ;;  %v990_v22 = vadd.f32 %v2290_v41, %v2178_v19  ;;  %v579_v62 = vperm.slane %v537_v32, %v2358_v45  ;;  %v580_v63 = vperm.slane %v538_v34, %v2371_v59 }
  0xe2   : > { %745 = vrot.lane.b32.xlu2 %v711_v0, %s2020_s20  ;;  %v578_v61 = vsel %vm565_vm2, %v577_v42, %v576_v30  ;;  %v582_v0 = vperm.slane %v539_v4, %v2358_v45  ;;  %v583_v5 = vperm.slane %v540_v39, %v2371_v59  ;;  %v589_v2 = vsel %vm588_vm3, %v569_v51, %v566_v3 }
  0xe3   : > { %1362 = vrot.lane.b32.xlu0 %v1327_v31, %s2021_s21  ;;  %1060 = vrot.lane.b32.xlu1 %v1022_v56, %s2019_s19  ;;  %v575_v56 = vsel %vm565_vm2, %v574_v55, %v573_v52  ;;  %v585_v12 = vperm.slane %v541_v18, %v2358_v45  ;;  %v586_v31 = vperm.slane %v542_v57, %v2371_v59  ;;  %1893 = vtanh.f32 %v990_v22 }
  0xe4   : > { %v591_v35 = vsel %vm590_vm4, %v572_v49, %v589_v2  ;;  %v712_v23 = vmul.f32 %v1892_v28, %v2346_v21  ;;  %v581_v38 = vsel %vm565_vm2, %v580_v63, %v579_v62  ;;  %v1328_v34 = vmul.f32 %v2186_v24, %v2362_v47  ;;  %v2481_v49 = vld [vmem:[%s380_s24] sm:$0xff]  ;;  %s1576_s24 = scalar_lea.sflag [#allocation4], %s354_s16 }
  0xe5   : > { %v593_v33 = vsel %vm592_vm5, %v575_v56, %v591_v35  ;;  %v1329_v4 = vmul.f32 %v1890_v25, %v2362_v47  ;;  %v584_v39 = vsel %vm565_vm2, %v583_v5, %v582_v0  ;;  %v587_v26 = vsel %vm565_vm2, %v586_v31, %v585_v12 }
  0xe6   : > { %v595_v32 = vsel %vm594_vm6, %v578_v61, %v593_v33  ;;  %v984_v28 = vadd.f32 %v2290_v41, %v2158_v10  ;;  %v1016_v53 = vmul.f32 %v2180_v20, %v2317_v60  ;;  %v1298_v29 = vadd.f32 %v2325_v6, %v2178_v19 }
  0xe7   : > { %v597_v36 = vsel %vm596_vm7, %v581_v38, %v595_v32  ;;  %v1026_v41 = vmul.f32 %v2240_v1, %v2317_v60  ;;  %v1020_v3 = vmul.f32 %v2186_v24, %v2317_v60  ;;  %v679_v42 = vadd.f32 %v2315_v58, %v2156_v9 }
  0xe8   : > { %v599_v44 = vsel %vm598_vm8, %v584_v39, %v597_v36  ;;  %1895 = vtanh.f32 %v984_v28  ;;  %v1334_v51 = vmul.f32 %v2240_v1, %v2362_v47  ;;  %vm543_vm10 = vcmp.eq.f32.partialorder %v2481_v49, 0.0 }
  0xe9   : > { %v601_v18 = vsel %vm600_vm9, %v587_v26, %v599_v44  ;;  %v1894_v25 = vpop.eup %1893  ;;  %1897 = vtanh.f32 %v1298_v29  ;;  %v1326_v9 = vmul.f32 %v2191_v27, %v2362_v47  ;;  %v681_v61 = vadd.f32 %v2315_v58, %v2171_v17 }
  0xea   : > { %747 = vrot.lane.b32.xlu2 %v712_v23, %s2020_s20  ;;  %v1025_v40 = vmul.f32 %v1894_v25, %v2317_v60  ;;  %1899 = vtanh.f32 %v679_v42  ;;  %v2489_v22 = vsel %vm543_vm10, -1e+10, %v601_v18  ;;  %v1336_v27 = vmul.f32 %v2249_v11, %v2362_v47 }
  0xeb   : > { %1364 = vrot.lane.b32.xlu0 %v1328_v34, %s2021_s21  ;;  %1366 = vrot.lane.b32.xlu1 %v1329_v4, %s2021_s21  ;;  %1901 = vtanh.f32 %v681_v61  ;;  %v1296_v62 = vadd.f32 %v2325_v6, %v2171_v17  ;;  %v1024_v0 = vmul.f32 %v2219_v48, %v2317_v60  ;;  %v685_v2 = vadd.f32 %v2315_v58, %v2203_v37 }
  0xec   : > { %v717_v17 = vmul.f32 %v2219_v48, %v2346_v21  ;;  %v1330_v12 = vmul.f32 %v2211_v43, %v2362_v47  ;;  %v1332_v33 = vmul.f32 %v2219_v48, %v2362_v47  ;;  %v1300_v32 = vadd.f32 %v2325_v6, %v2203_v37 }
  0xed   : > { %1903 = vtanh.f32 %v1296_v62  ;;  %v723_v34 = vmul.f32 %v2252_v13, %v2346_v21  ;;  %v1028_v48 = vmul.f32 %v2249_v11, %v2317_v60  ;;  %v1030_v26 = vmul.f32 %v2252_v13, %v2317_v60 }
  0xee   : > { %v1896_v57 = vpop.eup %1895  ;;  %1905 = vtanh.f32 %v685_v2  ;;  %v715_v44 = vmul.f32 %v2211_v43, %v2346_v21  ;;  %v687_v43 = vadd.f32 %v2315_v58, %v2222_v50  ;;  %v719_v29 = vmul.f32 %v2240_v1, %v2346_v21 }
  0xef   : > { %v1019_v10 = vmul.f32 %v1896_v57, %v2317_v60  ;;  %v1898_v20 = vpop.eup %1897  ;;  %1907 = vtanh.f32 %v1300_v32  ;;  %v721_v42 = vmul.f32 %v2249_v11, %v2346_v21 }
  0xf0   : > { %v1333_v30 = vmul.f32 %v1898_v20, %v2362_v47  ;;  %v1900_v52 = vpop.eup %1899 }
  0xf1   : > { %v714_v55 = vmul.f32 %v1900_v52, %v2346_v21  ;;  %v1902_v63 = vpop.eup %1901 }
  0xf2   : > { %1048 = vrot.lane.b32.xlu2 %v1016_v53, %s2019_s19  ;;  %v716_v5 = vmul.f32 %v1902_v63, %v2346_v21  ;;  %v1338_v53 = vmul.f32 %v2252_v13, %v2362_v47 }
  0xf3   : > { %1066 = vrot.lane.b32.xlu0 %v1025_v40, %s2019_s19 }
  0xfa   : > { %1054 = vrot.lane.b32.xlu2 %v1019_v10, %s2019_s19 }
  0xfb   : > { %1068 = vrot.lane.b32.xlu0 %v1026_v41, %s2019_s19 }
 0x102   : > { %1056 = vrot.lane.b32.xlu2 %v1020_v3, %s2019_s19 }
 0x103   : > { %1374 = vrot.lane.b32.xlu0 %v1333_v30, %s2021_s21 }
 0x10a   : > { %1058 = vrot.lane.b32.xlu2 %v2330_v7, %s2019_s19  ;;  %v605_v7 = vsel %vm604_vm11, %v2489_v22, -inf }
 0x10b   : > { %1376 = vrot.lane.b32.xlu0 %v1334_v51, %s2021_s21 }
 0x112   : > { %1360 = vrot.lane.b32.xlu2 %v1326_v9, %s2021_s21 }
 0x113   : > { %751 = vrot.lane.b32.xlu0 %v714_v55, %s2020_s20 }
 0x115   : > { %606 = vmax.xlane.f32.xlu1 %v605_v7 }
 0x11a   : > { %1062 = vrot.lane.b32.xlu2 %v2333_v8, %s2019_s19  ;;  %v1904_v8 = vpop.eup %1903 }
 0x11b   : > { %1380 = vrot.lane.b32.xlu0 %v1336_v27, %s2021_s21  ;;  %v1331_v56 = vmul.f32 %v1904_v8, %v2362_v47  ;;  %v1906_v35 = vpop.eup %1905 }
 0x11c   : > { %v720_v23 = vmul.f32 %v1906_v35, %v2346_v21  ;;  %v1908_v4 = vpop.eup %1907 }
 0x11d   : > { %v1335_v37 = vmul.f32 %v1908_v4, %v2362_v47 }
 0x122   : > { %1064 = vrot.lane.b32.xlu2 %v1024_v0, %s2019_s19 }
 0x123   : > { %755 = vrot.lane.b32.xlu0 %v716_v5, %s2020_s20 }
 0x12a   : > { %1370 = vrot.lane.b32.xlu2 %v1331_v56, %s2021_s21 }
 0x12b   : > { %757 = vrot.lane.b32.xlu0 %v717_v17, %s2020_s20 }
 0x12c   : > { %v2518_v31 = vpop.permute.xlu2 %741 }
 0x12e   : > { %1368 = vrot.lane.b32.xlu1 %v1330_v12, %s2021_s21 }
 0x132   : > { %1372 = vrot.lane.b32.xlu2 %v1332_v33, %s2021_s21 }
 0x133   : > { %763 = vrot.lane.b32.xlu0 %v720_v23, %s2020_s20 }
 0x134   : > { %v2528_v38 = vpop.permute.xlu2 %743 }
 0x136   : > { %1070 = vrot.lane.b32.xlu1 %v2338_v14, %s2019_s19  ;;  %v713_v14 = vmul.f32 %v2186_v24, %v2346_v21  ;;  %v1304_v24 = vadd.f32 %v2325_v6, %v2226_v54 }
 0x13a   : > { %1074 = vrot.lane.b32.xlu2 %v2341_v15, %s2019_s19  ;;  %v1302_v15 = vadd.f32 %v2325_v6, %v2222_v50  ;;  %v683_v6 = vadd.f32 %v2315_v58, %v2178_v19  ;;  %v689_v50 = vadd.f32 %v2315_v58, %v2226_v54 }
 0x13b   : > { %769 = vrot.lane.b32.xlu0 %v723_v34, %s2020_s20 }
 0x13c   : > { %v2542_v39 = vpop.permute.xlu2 %745  ;;  %1909 = vtanh.f32 %v1302_v15  ;;  %v1051_v19 = vpop.permute.xlu1 %1050 }
 0x13d   : > { %1911 = vtanh.f32 %v1304_v24  ;;  %v1099_v10 = vsel %vm475_vm1, %v1051_v19, 0.0  ;;  %v1053_v1 = vpop.permute.xlu0 %1052 }
 0x13e   : > { %1072 = vrot.lane.b32.xlu1 %v1028_v48, %s2019_s19  ;;  %1913 = vtanh.f32 %v683_v6  ;;  %v1102_v12 = vsel %vm471_vm0, %v1053_v1, 0.0 }
 0x13f   : > { %1915 = vtanh.f32 %v687_v43 }
 0x140   : > { %1917 = vtanh.f32 %v689_v50 }
 0x142   : > { %749 = vrot.lane.b32.xlu2 %v713_v14, %s2020_s20  ;;  %v1910_v28 = vpop.eup %1909 }
 0x143   : > { %v1912_v18 = vpop.eup %1911 }
 0x144   : > { %v2551_v36 = vpop.permute.xlu2 %747  ;;  %v1339_v60 = vmul.f32 %v1912_v18, %v2362_v47  ;;  %v1914_v57 = vpop.eup %1913 }
 0x145   : > { %v718_v41 = vmul.f32 %v1914_v57, %v2346_v21  ;;  %v1916_v20 = vpop.eup %1915  ;;  %v798_v50 = vsel %vm475_vm1, %v2551_v36, 0.0 }
 0x146   : > { %1378 = vrot.lane.b32.xlu1 %v1335_v37, %s2021_s21  ;;  %v722_v13 = vmul.f32 %v1916_v20, %v2346_v21  ;;  %v1918_v51 = vpop.eup %1917 }
 0x147   : > { %v724_v52 = vmul.f32 %v1918_v51, %v2346_v21 }
 0x14a   : > { %1078 = vrot.lane.b32.xlu2 %v2344_v16, %s2019_s19  ;;  %v1337_v16 = vmul.f32 %v1910_v28, %v2362_v47 }
 0x14c   : > { %v1049_v25 = vpop.permute.xlu2 %1048 }
 0x14d   : > { %v1359_v3 = vpop.permute.xlu1 %1358  ;;  %v1357_v54 = vpop.permute.xlu0 %1356  ;;  %v1096_v0 = vsel %vm471_vm0, %v1049_v25, 0.0 }
 0x14e   : > { %1076 = vrot.lane.b32.xlu1 %v1030_v26, %s2019_s19  ;;  %v1404_v35 = vsel %vm471_vm0, %v1357_v54, 0.0 }
 0x152   : > { %753 = vrot.lane.b32.xlu2 %v715_v44, %s2020_s20 }
 0x154   : > { %v1055_v40 = vpop.permute.xlu2 %1054 }
 0x155   : > { %v1061_v58 = vpop.permute.xlu1 %1060  ;;  %v1363_v9 = vpop.permute.xlu0 %1362  ;;  %v1105_v56 = vsel %vm475_vm1, %v1055_v40, 0.0 }
 0x156   : > { %1382 = vrot.lane.b32.xlu1 %v1337_v16, %s2021_s21  ;;  %v1114_v23 = vsel %vm471_vm0, %v1061_v58, 0.0  ;;  %v1413_v48 = vsel %vm475_vm1, %v1363_v9, 0.0 }
 0x15a   : > { %1386 = vrot.lane.b32.xlu2 %v1339_v60, %s2021_s21 }
 0x15c   : > { %v1057_v47 = vpop.permute.xlu2 %1056 }
 0x15d   : > { %v1108_v30 = vsel %vm471_vm0, %v1057_v47, 0.0  ;;  %v1367_v55 = vpop.permute.xlu1 %1366  ;;  %v1365_v62 = vpop.permute.xlu0 %1364 }
 0x15e   : > { %1384 = vrot.lane.b32.xlu1 %v1338_v53, %s2021_s21  ;;  %v1419_v14 = vsel %vm475_vm1, %v1367_v55, 0.0  ;;  %v1416_v26 = vsel %vm471_vm0, %v1365_v62, 0.0 }
 0x162   : > { %761 = vrot.lane.b32.xlu2 %v719_v29, %s2020_s20  ;;  %v789_v29 = vsel %vm471_vm0, %v2518_v31, 0.0  ;;  %v795_v31 = vsel %vm471_vm0, %v2542_v39, 0.0 }
 0x164   : > { %v1059_v7 = vpop.permute.xlu2 %1058 }
 0x165   : > { %1100 = vadd.xlane.f32.xlu0 %v1099_v10  ;;  %v1067_v21 = vpop.permute.xlu0 %1066  ;;  %v1111_v32 = vsel %vm475_vm1, %v1059_v7, 0.0 }
 0x166   : > { %759 = vrot.lane.b32.xlu1 %v718_v41, %s2020_s20  ;;  %v1123_v25 = vsel %vm475_vm1, %v1067_v21, 0.0 }
 0x16a   : > { %767 = vrot.lane.b32.xlu2 %v722_v13, %s2020_s20 }
 0x16c   : > { %v1361_v11 = vpop.permute.xlu2 %1360 }
 0x16d   : > { %1109 = vadd.xlane.f32.xlu0 %v1108_v30  ;;  %v1069_v17 = vpop.permute.xlu0 %1068  ;;  %v1410_v15 = vsel %vm471_vm0, %v1361_v11, 0.0 }
 0x16e   : > { %765 = vrot.lane.b32.xlu1 %v721_v42, %s2020_s20  ;;  %v1126_v40 = vsel %vm471_vm0, %v1069_v17, 0.0  ;;  %v792_v42 = vsel %vm475_vm1, %v2528_v38, 0.0 }
 0x174   : > { %v1063_v8 = vpop.permute.xlu2 %1062 }
 0x175   : > { %v1375_v34 = vpop.permute.xlu0 %1374  ;;  %v1117_v28 = vsel %vm475_vm1, %v1063_v8, 0.0 }
 0x176   : > { %771 = vrot.lane.b32.xlu1 %v724_v52, %s2020_s20  ;;  %v1431_v41 = vsel %vm475_vm1, %v1375_v34, 0.0 }
 0x17c   : > { %v1065_v33 = vpop.permute.xlu2 %1064 }
 0x17d   : > { %v1377_v24 = vpop.permute.xlu0 %1376  ;;  %v1120_v43 = vsel %vm471_vm0, %v1065_v33, 0.0 }
 0x184   : > { %v1371_v4 = vpop.permute.xlu2 %1370 }
 0x185   : > { %v752_v6 = vpop.permute.xlu0 %751  ;;  %v1425_v10 = vsel %vm475_vm1, %v1371_v4, 0.0 }
 0x186   : > { %v804_v54 = vsel %vm475_vm1, %v752_v6, 0.0 }
 0x188   : > { %v607_v61 = vpop.xlane.xlu1 %606 }
 0x189   : > { %v608_v27 = vsub.f32 %v2489_v22, %v607_v61  ;;  %v1407_v22 = vsel %vm475_vm1, %v1359_v3, 0.0  ;;  %v1434_v3 = vsel %vm471_vm0, %v1377_v24, 0.0 }
 0x18b   : > { %v609_v63 = vmul.f32 1.442695, %v608_v27 }
 0x18c   : > { %v1373_v16 = vpop.permute.xlu2 %1372 }
 0x18d   : > { %1919 = vpow2.f32 %v609_v63  ;;  %v1381_v19 = vpop.permute.xlu0 %1380  ;;  %v1428_v47 = vsel %vm471_vm0, %v1373_v16, 0.0 }
 0x18e   : > { %v1440_v38 = vsel %vm471_vm0, %v1381_v19, 0.0 }
 0x193   : > { %v2590_v5 = vpop.eup %1919  ;;  %1097 = vadd.xlane.f32.xlu2 %v1096_v0 }
 0x194   : > { %v611_v2 = vsel %vm604_vm11, %v2590_v5, 0.0  ;;  %v1075_v53 = vpop.permute.xlu2 %1074 }
 0x195   : > { %612 = vadd.xlane.f32.xlu0 %v611_v2  ;;  %v756_v1 = vpop.permute.xlu0 %755  ;;  %v1135_v52 = vsel %vm475_vm1, %v1075_v53, 0.0  ;;  %v393_v2 = vld [vmem:[%s2635_s22 + $0x8] sm:$0x3] }
 0x196   : > { %v810_v63 = vsel %vm475_vm1, %v756_v1, 0.0  ;;  %1753 = vmatpush.msk.msra.mxu0 %vm619_vm12, %v393_v2 }
 0x19b   : > { %1106 = vadd.xlane.f32.xlu2 %v1105_v56  ;;  %v2642_v56 = vld [vmem:[%s2635_s22] sm:$0xff] }
 0x19c   : > { %v750_v20 = vpop.permute.xlu2 %749  ;;  %638 = vmatpush.msra.mxu0 %v2642_v56 }
 0x19d   : > { %1408 = vadd.xlane.f32.xlu0 %v1407_v22  ;;  %v758_v36 = vpop.permute.xlu0 %757  ;;  %v801_v9 = vsel %vm471_vm0, %v750_v20, 0.0 }
 0x19e   : > { %v813_v17 = vsel %vm471_vm0, %v758_v36, 0.0 }
 0x1a0   : > { %1103 = vadd.xlane.f32.xlu1 %v1102_v12  ;;  %v1369_v37 = vpop.permute.xlu1 %1368 }
 0x1a1   : > { %v1422_v44 = vsel %vm471_vm0, %v1369_v37, 0.0 }
 0x1a3   : > { %1405 = vadd.xlane.f32.xlu2 %v1404_v35 }
 0x1a4   : > { %v1079_v30 = vpop.permute.xlu2 %1078 }
 0x1a5   : > { %1115 = vadd.xlane.f32.xlu0 %v1114_v23  ;;  %v764_v7 = vpop.permute.xlu0 %763  ;;  %v1141_v62 = vsel %vm475_vm1, %v1079_v30, 0.0 }
 0x1a8   : > { %1112 = vadd.xlane.f32.xlu1 %v1111_v32  ;;  %v1071_v18 = vpop.permute.xlu1 %1070  ;;  %v822_v32 = vsel %vm475_vm1, %v764_v7, 0.0 }
 0x1a9   : > { %v1129_v60 = vsel %vm475_vm1, %v1071_v18, 0.0 }
 0x1ab   : > { %1414 = vadd.xlane.f32.xlu2 %v1413_v48 }
 0x1ac   : > { %v754_v39 = vpop.permute.xlu2 %753 }
 0x1ad   : > { %1420 = vadd.xlane.f32.xlu0 %v1419_v14  ;;  %v770_v0 = vpop.permute.xlu0 %769  ;;  %v807_v8 = vsel %vm471_vm0, %v754_v39, 0.0 }
 0x1b0   : > { %1411 = vadd.xlane.f32.xlu1 %v1410_v15  ;;  %v1073_v57 = vpop.permute.xlu1 %1072  ;;  %v831_v15 = vsel %vm471_vm0, %v770_v0, 0.0 }
 0x1b1   : > { %v1132_v58 = vsel %vm471_vm0, %v1073_v57, 0.0 }
 0x1b3   : > { %1417 = vadd.xlane.f32.xlu2 %v1416_v26 }
 0x1b4   : > { %v1387_v27 = vpop.permute.xlu2 %1386 }
 0x1b5   : > { %1423 = vadd.xlane.f32.xlu0 %v1422_v44  ;;  %v1449_v23 = vsel %vm475_vm1, %v1387_v27, 0.0 }
 0x1b8   : > { %1118 = vadd.xlane.f32.xlu1 %v1117_v28  ;;  %v1379_v13 = vpop.permute.xlu1 %1378 }
 0x1b9   : > { %v1437_v61 = vsel %vm475_vm1, %v1379_v13, 0.0 }
 0x1bb   : > { %1124 = vadd.xlane.f32.xlu2 %v1123_v25 }
 0x1bc   : > { %v762_v22 = vpop.permute.xlu2 %761 }
 0x1bd   : > { %1130 = vadd.xlane.f32.xlu0 %v1129_v60  ;;  %v819_v37 = vsel %vm471_vm0, %v762_v22, 0.0 }
 0x1c0   : > { %1121 = vadd.xlane.f32.xlu1 %v1120_v43  ;;  %v1077_v51 = vpop.permute.xlu1 %1076 }
 0x1c1   : > { %v1138_v21 = vsel %vm471_vm0, %v1077_v51, 0.0 }
 0x1c3   : > { %1127 = vadd.xlane.f32.xlu2 %v1126_v40 }
 0x1c4   : > { %v768_v34 = vpop.permute.xlu2 %767 }
 0x1c5   : > { %790 = vadd.xlane.f32.xlu0 %v789_v29  ;;  %v828_v6 = vsel %vm475_vm1, %v768_v34, 0.0 }
 0x1c8   : > { %1426 = vadd.xlane.f32.xlu1 %v1425_v10  ;;  %v1383_v55 = vpop.permute.xlu1 %1382 }
 0x1c9   : > { %v1443_v33 = vsel %vm475_vm1, %v1383_v55, 0.0 }
 0x1cb   : > { %1432 = vadd.xlane.f32.xlu2 %v1431_v41 }
 0x1cd   : > { %799 = vadd.xlane.f32.xlu0 %v798_v50 }
 0x1d0   : > { %1429 = vadd.xlane.f32.xlu1 %v1428_v47  ;;  %v1385_v11 = vpop.permute.xlu1 %1384 }
 0x1d1   : > { %v1446_v48 = vsel %vm471_vm0, %v1385_v11, 0.0 }
 0x1d3   : > { %796 = vadd.xlane.f32.xlu2 %v795_v31 }
 0x1d5   : > { %1435 = vadd.xlane.f32.xlu0 %v1434_v3 }
 0x1d8   : > { %793 = vadd.xlane.f32.xlu1 %v792_v42  ;;  %v1101_v12 = vpop.xlane.xlu0 %1100  ;;  %v760_v35 = vpop.permute.xlu1 %759 }
 0x1d9   : > { %v1145_v24 = vadd.f32 %v1101_v12, %v2360_v46  ;;  %v816_v28 = vsel %vm475_vm1, %v760_v35, 0.0 }
 0x1db   : > { %1136 = vadd.xlane.f32.xlu2 %v1135_v52  ;;  %v1177_v18 = vperm.slane %v1145_v24, %v2371_v59 }
 0x1dd   : > { %805 = vadd.xlane.f32.xlu0 %v804_v54 }
 0x1e0   : > { %1133 = vadd.xlane.f32.xlu1 %v1132_v58  ;;  %v1110_v14 = vpop.xlane.xlu0 %1109  ;;  %v766_v4 = vpop.permute.xlu1 %765 }
 0x1e1   : > { %v825_v29 = vsel %vm471_vm0, %v766_v4, 0.0  ;;  %v1148_v52 = vadd.f32 %v1110_v14, %v2360_v46 }
 0x1e3   : > { %802 = vadd.xlane.f32.xlu2 %v801_v9  ;;  %v1182_v9 = vperm.slane %v1148_v52, %v2358_v45 }
 0x1e5   : > { %1441 = vadd.xlane.f32.xlu0 %v1440_v38 }
 0x1e8   : > { %1438 = vadd.xlane.f32.xlu1 %v1437_v61  ;;  %v772_v60 = vpop.permute.xlu1 %771 }
 0x1e9   : > { %v834_v31 = vsel %vm475_vm1, %v772_v60, 0.0 }
 0x1eb   : > { %1142 = vadd.xlane.f32.xlu2 %v1141_v62 }
 0x1ed   : > { %811 = vadd.xlane.f32.xlu0 %v810_v63 }
 0x1f0   : > { %1139 = vadd.xlane.f32.xlu1 %v1138_v21 }
 0x1f3   : > { %808 = vadd.xlane.f32.xlu2 %v807_v8 }
 0x1f5   : > { %814 = vadd.xlane.f32.xlu0 %v813_v17 }
 0x1f8   : > { %1444 = vadd.xlane.f32.xlu1 %v1443_v33 }
 0x1fb   : > { %1450 = vadd.xlane.f32.xlu2 %v1449_v23 }
 0x1fd   : > { %823 = vadd.xlane.f32.xlu0 %v822_v32 }
 0x200   : > { %1447 = vadd.xlane.f32.xlu1 %v1446_v48 }
 0x203   : > { %820 = vadd.xlane.f32.xlu2 %v819_v37 }
 0x205   : > { %832 = vadd.xlane.f32.xlu0 %v831_v15 }
 0x206   : > { %v1098_v26 = vpop.xlane.xlu2 %1097 }
 0x207   : > { %v1144_v44 = vadd.f32 %v1098_v26, %v2360_v46 }
 0x208   : > { %v613_v16 = vpop.xlane.xlu0 %612  ;;  %817 = vadd.xlane.f32.xlu1 %v816_v28 }
 0x209   : > { %v1176_v25 = vperm.slane %v1144_v44, %v2358_v45  ;;  %1921 = vrcp.f32 %v613_v16 }
 0x20b   : > { %v1178_v43 = vsel %vm565_vm2, %v1177_v18, %v1176_v25  ;;  %829 = vadd.xlane.f32.xlu2 %v828_v6 }
 0x20e   : > { %v1107_v53 = vpop.xlane.xlu2 %1106 }
 0x20f   : > { %v1922_v40 = vpop.eup %1921  ;;  %v1147_v10 = vadd.f32 %v1107_v53, %v2360_v46 }
 0x210   : > { %v1409_v57 = vpop.xlane.xlu0 %1408  ;;  %826 = vadd.xlane.f32.xlu1 %v825_v29  ;;  %v615_v19 = vmul.f32 %v1922_v40, %v2590_v5 }
 0x211   : > { %v1453_v50 = vadd.f32 %v1409_v57, %v2360_v46  ;;  %v1180_v13 = vperm.slane %v1147_v10, %v2371_v59 }
 0x212   : > { %1754 = vmatmul.msk.f32.vlgmr.msra.gmra.mxu0 %vm604_vm11, %v615_v19  ;;  %644 = vst.msk [vmem:[%s2666_s23] sm:$0xff] %vm604_vm11, %v615_v19 }
 0x213   : > { %v1104_v41 = vpop.xlane.xlu1 %1103  ;;  %v1485_v42 = vperm.slane %v1453_v50, %v2371_v59 }
 0x214   : > { %v1146_v20 = vadd.f32 %v1104_v41, %v2360_v46 }
 0x216   : > { %v1179_v47 = vperm.slane %v1146_v20, %v2358_v45  ;;  %v1406_v1 = vpop.xlane.xlu2 %1405 }
 0x217   : > { %v1452_v5 = vadd.f32 %v1406_v1, %v2360_v46 }
 0x218   : > { %v1181_v3 = vsel %vm565_vm2, %v1180_v13, %v1179_v47  ;;  %v1116_v30 = vpop.xlane.xlu0 %1115  ;;  %835 = vadd.xlane.f32.xlu1 %v834_v31 }
 0x219   : > { %v1200_v51 = vsel %vm588_vm3, %v1181_v3, %v1178_v43  ;;  %v1484_v36 = vperm.slane %v1452_v5, %v2358_v45  ;;  %v1150_v10 = vadd.f32 %v1116_v30, %v2360_v46 }
 0x21b   : > { %v1486_v54 = vsel %vm565_vm2, %v1485_v42, %v1484_v36  ;;  %v1113_v58 = vpop.xlane.xlu1 %1112  ;;  %v1185_v42 = vperm.slane %v1150_v10, %v2358_v45 }
 0x21c   : > { %v1149_v39 = vadd.f32 %v1113_v58, %v2360_v46 }
 0x21e   : > { %v1183_v55 = vperm.slane %v1149_v39, %v2371_v59  ;;  %v1415_v7 = vpop.xlane.xlu2 %1414 }
 0x21f   : > { %v1455_v62 = vadd.f32 %v1415_v7, %v2360_v46 }
 0x220   : > { %v1184_v38 = vsel %vm565_vm2, %v1183_v55, %v1182_v9  ;;  %v1421_v61 = vpop.xlane.xlu0 %1420 }
 0x221   : > { %v1201_v27 = vsel %vm590_vm4, %v1184_v38, %v1200_v51  ;;  %v1457_v0 = vadd.f32 %v1421_v61, %v2360_v46  ;;  %v1488_v21 = vperm.slane %v1455_v62, %v2371_v59 }
 0x223   : > { %v1412_v63 = vpop.xlane.xlu1 %1411  ;;  %v1491_v35 = vperm.slane %v1457_v0, %v2371_v59 }
 0x224   : > { %v1454_v11 = vadd.f32 %v1412_v63, %v2360_v46 }
 0x226   : > { %v1487_v2 = vperm.slane %v1454_v11, %v2358_v45  ;;  %v1418_v8 = vpop.xlane.xlu2 %1417 }
 0x227   : > { %v1456_v22 = vadd.f32 %v1418_v8, %v2360_v46 }
 0x228   : > { %v1489_v17 = vsel %vm565_vm2, %v1488_v21, %v1487_v2  ;;  %v2694_v12 = vpop.xlane.xlu0 %1423 }
 0x229   : > { %v1508_v33 = vsel %vm588_vm3, %v1489_v17, %v1486_v54  ;;  %v1490_v23 = vperm.slane %v1456_v22, %v2358_v45 }
 0x22b   : > { %v1492_v32 = vsel %vm565_vm2, %v1491_v35, %v1490_v23  ;;  %v1119_v34 = vpop.xlane.xlu1 %1118 }
 0x22c   : > { %v2701_v48 = vsel %vm590_vm4, %v1492_v32, %v1508_v33  ;;  %v1151_v29 = vadd.f32 %v1119_v34, %v2360_v46 }
 0x22e   : > { %v1125_v14 = vpop.xlane.xlu2 %1124  ;;  %v1186_v13 = vperm.slane %v1151_v29, %v2371_v59 }
 0x22f   : > { %v1153_v20 = vadd.f32 %v1125_v14, %v2360_v46  ;;  %v1458_v14 = vadd.f32 %v2694_v12, %v2360_v46 }
 0x230   : > { %v1131_v4 = vpop.xlane.xlu0 %1130  ;;  %v1187_v52 = vsel %vm565_vm2, %v1186_v13, %v1185_v42 }
 0x231   : > { %v1155_v47 = vadd.f32 %v1131_v4, %v2360_v46  ;;  %v1189_v51 = vperm.slane %v1153_v20, %v2371_v59  ;;  %v1202_v61 = vsel %vm592_vm5, %v1187_v52, %v1201_v27 }
 0x233   : > { %v1122_v37 = vpop.xlane.xlu1 %1121  ;;  %v1192_v54 = vperm.slane %v1155_v47, %v2371_v59 }
 0x234   : > { %v1152_v57 = vadd.f32 %v1122_v37, %v2360_v46 }
 0x236   : > { %v1128_v15 = vpop.xlane.xlu2 %1127  ;;  %v1188_v5 = vperm.slane %v1152_v57, %v2358_v45  ;;  %v1493_v57 = vperm.slane %v1458_v14, %v2358_v45 }
 0x237   : > { %v1154_v41 = vadd.f32 %v1128_v15, %v2360_v46 }
 0x238   : > { %v2703_v24 = vpop.xlane.xlu0 %790  ;;  %v1190_v39 = vsel %vm565_vm2, %v1189_v51, %v1188_v5 }
 0x239   : > { %v1191_v30 = vperm.slane %v1154_v41, %v2358_v45  ;;  %v1203_v21 = vsel %vm594_vm6, %v1190_v39, %v1202_v61 }
 0x23b   : > { %v1427_v26 = vpop.xlane.xlu1 %1426  ;;  %v1193_v7 = vsel %vm565_vm2, %v1192_v54, %v1191_v30 }
 0x23c   : > { %v1204_v2 = vsel %vm596_vm7, %v1193_v7, %v1203_v21  ;;  %v1459_v27 = vadd.f32 %v1427_v26, %v2360_v46 }
 0x23e   : > { %v1433_v44 = vpop.xlane.xlu2 %1432  ;;  %v1494_v26 = vperm.slane %v1459_v27, %v2371_v59 }
 0x23f   : > { %v1461_v37 = vadd.f32 %v1433_v44, %v2360_v46 }
 0x240   : > { %v2705_v28 = vpop.xlane.xlu0 %799  ;;  %v1495_v44 = vsel %vm565_vm2, %v1494_v26, %v1493_v57 }
 0x243   : > { %v1430_v16 = vpop.xlane.xlu1 %1429 }
 0x244   : > { %v1460_v23 = vadd.f32 %v1430_v16, %v2360_v46 }
 0x246   : > { %v2707_v18 = vpop.xlane.xlu2 %796  ;;  %v1496_v16 = vperm.slane %v1460_v23, %v2358_v45 }
 0x248   : > { %v1436_v25 = vpop.xlane.xlu0 %1435 }
 0x24b   : > { %v2709_v6 = vpop.xlane.xlu1 %793 }
 0x24e   : > { %v1137_v60 = vpop.xlane.xlu2 %1136 }
 0x24f   : > { %v1157_v31 = vadd.f32 %v1137_v60, %v2360_v46  ;;  %v1462_v60 = vadd.f32 %v1436_v25, %v2360_v46 }
 0x250   : > { %v2711_v53 = vpop.xlane.xlu0 %805 }
 0x251   : > { %v1195_v9 = vperm.slane %v1157_v31, %v2371_v59  ;;  %v1499_v41 = vperm.slane %v1462_v60, %v2358_v45  ;;  %v1510_v31 = vsel %vm592_vm5, %v1495_v44, %v2701_v48  ;;  %v842_v21 = vadd.f32 %v2711_v53, %v2360_v46 }
 0x253   : > { %v1134_v43 = vpop.xlane.xlu1 %1133 }
 0x254   : > { %v1156_v50 = vadd.f32 %v1134_v43, %v2360_v46 }
 0x256   : > { %v2713_v40 = vpop.xlane.xlu2 %802  ;;  %v1194_v36 = vperm.slane %v1156_v50, %v2358_v45 }
 0x257   : > { %v841_v61 = vadd.f32 %v2713_v40, %v2360_v46 }
 0x258   : > { %v1442_v3 = vpop.xlane.xlu0 %1441  ;;  %v1196_v62 = vsel %vm565_vm2, %v1195_v9, %v1194_v36 }
 0x259   : > { %v1205_v22 = vsel %vm598_vm8, %v1196_v62, %v1204_v2  ;;  %v1464_v43 = vadd.f32 %v1442_v3, %v2360_v46  ;;  %v837_v62 = vadd.f32 %v2703_v24, %v2360_v46  ;;  %v875_v24 = vperm.slane %v841_v61, %v2358_v45 }
 0x25b   : > { %v1439_v19 = vpop.xlane.xlu1 %1438  ;;  %v1502_v50 = vperm.slane %v1464_v43, %v2358_v45 }
 0x25c   : > { %v1463_v4 = vadd.f32 %v1439_v19, %v2360_v46  ;;  %v1497_v19 = vperm.slane %v1461_v37, %v2371_v59 }
 0x25e   : > { %v1143_v1 = vpop.xlane.xlu2 %1142  ;;  %v1500_v12 = vperm.slane %v1463_v4, %v2371_v59  ;;  %v1498_v25 = vsel %vm565_vm2, %v1497_v19, %v1496_v16 }
 0x25f   : > { %v1159_v58 = vadd.f32 %v1143_v1, %v2360_v46  ;;  %v1511_v51 = vsel %vm594_vm6, %v1498_v25, %v1510_v31 }
 0x260   : > { %v812_v17 = vpop.xlane.xlu0 %811  ;;  %v1501_v1 = vsel %vm565_vm2, %v1500_v12, %v1499_v41 }
 0x261   : > { %v1198_v63 = vperm.slane %v1159_v58, %v2371_v59  ;;  %v1512_v36 = vsel %vm596_vm7, %v1501_v1, %v1511_v51  ;;  %v844_v40 = vadd.f32 %v812_v17, %v2360_v46 }
 0x263   : > { %v1140_v55 = vpop.xlane.xlu1 %1139  ;;  %v879_v4 = vperm.slane %v844_v40, %v2371_v59 }
 0x264   : > { %v1158_v38 = vadd.f32 %v1140_v55, %v2360_v46 }
 0x266   : > { %v1197_v11 = vperm.slane %v1158_v38, %v2358_v45  ;;  %v809_v0 = vpop.xlane.xlu2 %808  ;;  %v838_v38 = vadd.f32 %v2709_v6, %v2360_v46  ;;  %v840_v6 = vadd.f32 %v2705_v28, %v2360_v46  ;;  %v876_v28 = vperm.slane %v842_v21, %v2371_v59 }
 0x268   : > { %v1199_v8 = vsel %vm565_vm2, %v1198_v63, %v1197_v11  ;;  %v815_v13 = vpop.xlane.xlu0 %814  ;;  %v839_v63 = vadd.f32 %v2707_v18, %v2360_v46  ;;  %v843_v11 = vadd.f32 %v809_v0, %v2360_v46  ;;  %v869_v0 = vperm.slane %v837_v62, %v2358_v45 }
 0x269   : > { %v1206_v35 = vsel %vm600_vm9, %v1199_v8, %v1205_v22  ;;  %v954_v8 = vld [vmem:[%s2635_s22 + $0x8] sm:$0x3]  ;;  %v870_v22 = vperm.slane %v838_v38, %v2371_v59 }
 0x26a   : > { %v2748_v33 = vsel %vm543_vm10, -1e+10, %v1206_v35  ;;  %v845_v35 = vadd.f32 %v815_v13, %v2360_v46  ;;  %v872_v27 = vperm.slane %v839_v63, %v2358_v45  ;;  %v878_v53 = vperm.slane %v843_v11, %v2358_v45 }
 0x26b   : > { %v1445_v32 = vpop.xlane.xlu1 %1444  ;;  %v1209_v34 = vsel %vm604_vm11, %v2748_v33, -inf  ;;  %v871_v14 = vsel %vm565_vm2, %v870_v22, %v869_v0 }
 0x26c   : > { %1210 = vmax.xlane.f32.xlu2 %v1209_v34  ;;  %v1465_v15 = vadd.f32 %v1445_v32, %v2360_v46  ;;  %v873_v34 = vperm.slane %v840_v6, %v2371_v59  ;;  %v881_v26 = vperm.slane %v845_v35, %v2358_v45 }
 0x26e   : > { %v1451_v29 = vpop.xlane.xlu2 %1450  ;;  %v1503_v10 = vperm.slane %v1465_v15, %v2371_v59  ;;  %v877_v15 = vsel %vm565_vm2, %v876_v28, %v875_v24  ;;  %v874_v43 = vsel %vm565_vm2, %v873_v34, %v872_v27 }
 0x26f   : > { %v1467_v20 = vadd.f32 %v1451_v29, %v2360_v46  ;;  %v880_v29 = vsel %vm565_vm2, %v879_v4, %v878_v53  ;;  %v893_v12 = vsel %vm588_vm3, %v874_v43, %v871_v14 }
 0x270   : > { %v1504_v3 = vsel %vm565_vm2, %v1503_v10, %v1502_v50  ;;  %v824_v7 = vpop.xlane.xlu0 %823  ;;  %v894_v44 = vsel %vm590_vm4, %v877_v15, %v893_v12 }
 0x271   : > { %v1506_v42 = vperm.slane %v1467_v20, %v2371_v59  ;;  %v1513_v54 = vsel %vm598_vm8, %v1504_v3, %v1512_v36  ;;  %v848_v57 = vadd.f32 %v824_v7, %v2360_v46  ;;  %v895_v25 = vsel %vm592_vm5, %v880_v29, %v894_v44  ;;  %v1262_v3 = vld [vmem:[%s2635_s22 + $0x8] sm:$0x3] }
 0x273   : > { %v1448_v47 = vpop.xlane.xlu1 %1447 }
 0x274   : > { %v1466_v5 = vadd.f32 %v1448_v47, %v2360_v46  ;;  %v885_v47 = vperm.slane %v848_v57, %v2371_v59 }
 0x276   : > { %v1505_v30 = vperm.slane %v1466_v5, %v2358_v45  ;;  %v821_v39 = vpop.xlane.xlu2 %820 }
 0x277   : > { %v847_v37 = vadd.f32 %v821_v39, %v2360_v46 }
 0x278   : > { %v1507_v52 = vsel %vm565_vm2, %v1506_v42, %v1505_v30  ;;  %v833_v60 = vpop.xlane.xlu0 %832 }
 0x279   : > { %v1514_v58 = vsel %vm600_vm9, %v1507_v52, %v1513_v54  ;;  %v884_v41 = vperm.slane %v847_v37, %v2358_v45  ;;  %v851_v20 = vadd.f32 %v833_v60, %v2360_v46 }
 0x27a   : > { %v2785_v48 = vsel %vm543_vm10, -1e+10, %v1514_v58 }
 0x27b   : > { %v818_v9 = vpop.xlane.xlu1 %817  ;;  %v1517_v55 = vsel %vm604_vm11, %v2785_v48, -inf  ;;  %v886_v42 = vsel %vm565_vm2, %v885_v47, %v884_v41  ;;  %v890_v30 = vperm.slane %v851_v20, %v2358_v45 }
 0x27c   : > { %1518 = vmax.xlane.f32.xlu0 %v1517_v55  ;;  %v846_v2 = vadd.f32 %v818_v9, %v2360_v46 }
 0x27e   : > { %v830_v23 = vpop.xlane.xlu2 %829  ;;  %v882_v32 = vperm.slane %v846_v2, %v2371_v59 }
 0x27f   : > { %v850_v16 = vadd.f32 %v830_v23, %v2360_v46 }
 0x280   : > { %v883_v19 = vsel %vm565_vm2, %v882_v32, %v881_v26 }
 0x281   : > { %v888_v50 = vperm.slane %v850_v16, %v2371_v59  ;;  %v896_v5 = vsel %vm594_vm6, %v883_v19, %v895_v25 }
 0x283   : > { %v827_v18 = vpop.xlane.xlu1 %826 }
 0x284   : > { %1224 = vrot.lane.b32.xlu2 %v954_v8, %s2019_s19  ;;  %v849_v17 = vadd.f32 %v827_v18, %v2360_v46 }
 0x286   : > { %v887_v10 = vperm.slane %v849_v17, %v2358_v45 }
 0x288   : > { %v889_v31 = vsel %vm565_vm2, %v888_v50, %v887_v10 }
 0x28b   : > { %v836_v13 = vpop.xlane.xlu1 %835 }
 0x28c   : > { %v852_v1 = vadd.f32 %v836_v13, %v2360_v46  ;;  %v897_v46 = vsel %vm596_vm7, %v886_v42, %v896_v5 }
 0x28d   : > { %v898_v54 = vsel %vm598_vm8, %v889_v31, %v897_v46 }
 0x28e   : > { %v891_v51 = vperm.slane %v852_v1, %v2371_v59 }
 0x28f   : > { %v640_v36 = vpop.f32.mrf.mxu0 }
 0x290   : > { %643 = vst.msk [vmem:[%s2840_s5] sm:$0xff] %vm471_vm0, %v640_v36  ;;  %v892_v52 = vsel %vm565_vm2, %v891_v51, %v890_v30  ;;  %1532 = vrot.lane.b32.xlu0 %v1262_v3, %s2021_s21 }
 0x291   : > { %v899_v58 = vsel %vm600_vm9, %v892_v52, %v898_v54 }
 0x292   : > { %v901_v39 = vsel %vm543_vm10, -1e+10, %v899_v58 }
 0x293   : > { %v902_v45 = vsel %vm604_vm11, %v901_v39, -inf }
 0x294   : > { %903 = vmax.xlane.f32.xlu1 %v902_v45 }
 0x2ad   : > { %1222 = vrot.lane.b32.xlu1 %v2642_v56, %s2019_s19  ;;  %s1592_s19 = sshll.u32 %s2666_s23, 4  ;;  %s1593_s19 = int_to_ptr.vmem [resolvable:$true] %s1592_s19 }
 0x2df   : > { %v1211_v59 = vpop.xlane.xlu2 %1210 }
 0x2e0   : > { %v1212_v9 = vsub.f32 %v2748_v33, %v1211_v59  ;;  %v647_v33 = vld [vmem:[%s2635_s22 + $0x8] sm:$0x3]  ;;  %s1591_s22 = scalar_lea.hbm %s2936_s7, %s1771_s17 }
 0x2e1   : > { %s1594_s18 = sshll.u32 %s1591_s22, 4  ;;  %s1595_s18 = int_to_ptr.hbm [resolvable:$true] %s1594_s18 }
 0x2e2   : > { %v1213_v55 = vmul.f32 1.442695, %v1212_v9  ;;  %s1949_s25 = sshra.s32 %s1595_s18, 4  ;;  %s1950_s25 = int_to_ptr.hbm [resolvable:$true] %s1949_s25 }
 0x2e3   : > { %s1951_s13 = scalar_lea.hbm %s1950_s25, 32  ;;  %p1956_p1 = scmp.lt.s32.totalorder %s1950_s25, %s2936_s7 }
 0x2e4   : > { %1923 = vpow2.f32 %v1213_v55  ;;  %p1952_p12 = scmp.ne.s32.totalorder %s1950_s25, %s1951_s13  ;;  %p1957_p2 = scmp.lt.s32.totalorder %s1955_s29, %s1951_s13 }
 0x2e6   : > { %p1953_p13 = pnand %p1952_p12, %p2106_p4  ;;  %p1958_p3 = por %p1957_p2, %p1956_p1 }
 0x2e7   : > { %v1225_v6 = vpop.permute.xlu2 %1224 }
 0x2e8   : > { %1758 = vmatpush.msk.msra.mxu2 %vm619_vm12, %v1225_v6  ;;  %p1954_p0 = pneg %p1953_p13 }
 0x2ea   : > { %v1924_v7 = vpop.eup %1923  ;;  %p1959_p5 = pnand %p1958_p3, %p1954_p0 }
 0x2eb   : > { %v1215_v38 = vsel %vm604_vm11, %v1924_v7, 0.0 }
 0x2ec   : > { %1216 = vadd.xlane.f32.xlu2 %v1215_v38 }
 0x2ef   : > { %v1519_v61 = vpop.xlane.xlu0 %1518 }
 0x2f0   : > { %v1520_v49 = vsub.f32 %v2785_v48, %v1519_v61 }
 0x2f2   : > { %v1521_v62 = vmul.f32 1.442695, %v1520_v49 }
 0x2f4   : > { %1925 = vpow2.f32 %v1521_v62 }
 0x2fa   : > { %v1926_v63 = vpop.eup %1925 }
 0x2fb   : > { %v1523_v11 = vsel %vm604_vm11, %v1926_v63, 0.0 }
 0x2fc   : > { %1524 = vadd.xlane.f32.xlu0 %v1523_v11 }
 0x302   : > { %v1533_v22 = vpop.permute.xlu0 %1532 }
 0x303   : > { %1761 = vmatpush.msk.msra.mxu3 %vm619_vm12, %v1533_v22 }
 0x304   : > { %917 = vrot.lane.b32.xlu2 %v647_v33, %s2020_s20 }
 0x307   : > { %v904_v21 = vpop.xlane.xlu1 %903 }
 0x308   : > { %v905_v2 = vsub.f32 %v901_v39, %v904_v21 }
 0x30a   : > { %v906_v8 = vmul.f32 1.442695, %v905_v2 }
 0x30c   : > { %1927 = vpow2.f32 %v906_v8 }
 0x310   : > { %1530 = vrot.lane.b32.xlu0 %v2642_v56, %s2021_s21 }
 0x312   : > { %v1928_v48 = vpop.eup %1927 }
 0x313   : > { %v908_v40 = vsel %vm604_vm11, %v1928_v48, 0.0 }
 0x314   : > { %909 = vadd.xlane.f32.xlu1 %v908_v40 }
 0x31f   : > { %v1223_v24 = vpop.permute.xlu1 %1222 }
 0x320   : > { %1247 = vmatpush.msra.mxu2 %v1223_v24 }
 0x32d   : > { %915 = vrot.lane.b32.xlu1 %v2642_v56, %s2020_s20 }
 0x35f   : > { %v1217_v35 = vpop.xlane.xlu2 %1216 }
 0x360   : > { %1929 = vrcp.f32 %v1217_v35 }
 0x366   : > { %v1930_v18 = vpop.eup %1929 }
 0x367   : > { %v1219_v0 = vmul.f32 %v1930_v18, %v1924_v7  ;;  %v918_v27 = vpop.permute.xlu2 %917 }
 0x368   : > { %1755 = vmatpush.msk.msra.mxu1 %vm619_vm12, %v918_v27 }
 0x369   : > { %1759 = vmatmul.msk.f32.vlgmr.msra.gmra.mxu2 %vm604_vm11, %v1219_v0  ;;  %1760 = vst.msk [vmem:[%s2666_s23 + $0x10] sm:$0xff] %vm604_vm11, %v1219_v0 }
 0x36f   : > { %v1525_v53 = vpop.xlane.xlu0 %1524 }
 0x370   : > { %1931 = vrcp.f32 %v1525_v53 }
 0x376   : > { %v1932_v23 = vpop.eup %1931 }
 0x377   : > { %v1527_v28 = vmul.f32 %v1932_v23, %v1926_v63 }
 0x379   : > { %1763 = vst.msk [vmem:[%s2666_s23 + $0x18] sm:$0xff] %vm604_vm11, %v1527_v28 }
 0x382   : > { %v1531_v56 = vpop.permute.xlu0 %1530 }
 0x383   : > { %1555 = vmatpush.msra.mxu3 %v1531_v56 }
 0x384   : > { %1762 = vmatmul.msk.f32.vlgmr.msra.gmra.mxu3 %vm604_vm11, %v1527_v28 }
 0x387   : > { %v910_v32 = vpop.xlane.xlu1 %909 }
 0x388   : > { %1933 = vrcp.f32 %v910_v32 }
 0x38e   : > { %v1934_v17 = vpop.eup %1933 }
 0x38f   : > { %v912_v34 = vmul.f32 %v1934_v17, %v1928_v48 }
 0x391   : > { %1757 = vst.msk [vmem:[%s2666_s23 + $0x8] sm:$0xff] %vm604_vm11, %v912_v34 }
 0x39f   : > { %v916_v14 = vpop.permute.xlu1 %915 }
 0x3a0   : > { %940 = vmatpush.msra.mxu1 %v916_v14 }
 0x3a1   : > { %1756 = vmatmul.msk.f32.vlgmr.msra.gmra.mxu1 %vm604_vm11, %v912_v34 }
 0x3ec   : > { %v1249_v4 = vpop.f32.mrf.mxu2 }
 0x3ed   : > { %1253 = vrot.lane.b32.xlu2 %v1249_v4, %s2016_s9 }
 0x407   : > { %v1557_v37 = vpop.f32.mrf.mxu3 }
 0x408   : > { %1561 = vrot.lane.b32.xlu1 %v1557_v37, %s2017_s11 }
 0x409   : > { %1962 = shalt.err (!%p1959_p5)
}
 0x40a   : > { %s2022_s16 = smov 128   ;;  %s2943_s17 = smov 8   ;;  %vm1256_vm13 = vcmask 195712   ;;  %vm1564_vm14 = vcmask 261312  }
 0x40b   : > { %1772 = dma.vmem_to_hbm [thread:$0]  (%p2106_p4), %s1593_s19, 512, %s1595_s18, %s1576_s24, %s2022_s16, %s2022_s16, %s2943_s17  }
 0x41e   : > { %v942_v15 = vpop.f32.mrf.mxu1 }
 0x41f   : > { %946 = vrot.lane.b32.xlu0 %v942_v15, %s2943_s17 }
 0x447   : > { %v1254_v60 = vpop.permute.xlu2 %1253 }
 0x47a   : > { %v1562_v16 = vpop.permute.xlu1 %1561 }
 0x491   : > { %v947_v26 = vpop.permute.xlu0 %946 }
 0x492   : > { %949 = vst.msk [vmem:[%s2840_s5] sm:$0xff] %vm565_vm2, %v947_v26 }
 0x493   : > { %1257 = vst.msk [vmem:[%s2840_s5] sm:$0xff] %vm1256_vm13, %v1254_v60 }
 0x494   : > { %1565 = vst.msk [vmem:[%s2840_s5] sm:$0xff] %vm1564_vm14, %v1562_v16 }
 0x495 PF: > { %p1778_p6 = scmp.ge.s32.totalorder %s2013_s8, 2  ;;  %s1619_s0 = sand.u32 1, %s1993_s26  }
 0x496   : > { %s1620_s12 = scalar_lea.sflag [#allocation4], %s1619_s0 }
 0x497   : > { %p1775_p4 = pnand %p1778_p6, %p2113_p8 }
 0x499   : > { %p1776_p7 = pneg %p1775_p4 }
 0x49b   : > { %1988 = dma.done.wait (%p1776_p7), %s1620_s12, 512  }
 0x49c   : > { %1990 = vsyncadd (%p1776_p7), %s1620_s12, 4294966784  ;;  %s23_s8 = sadd.s32 1, %s2013_s8   ;;  %s2944_s26 = smov %s1997_s27 }
 0x49d   : > { %p20_p9 = scmp.ge.s32.totalorder %s23_s8, 4   ;;  %s2945_s27 = smov %s2001_s28 }
 0x49e   : > { %s2946_s28 = smov %s2119_s15  ;;  %s2947_s29 = smov %s2009_s30 }
 0x49f   : > { %s2948_s30 = smov %s2950_s10  ;;  %22 = sbr.rel (!%p20_p9) target bundleno = 7 (0x7), region = 103 }
 0x4a4   :  { %1626 = vsyncpa [#allocation4], 1 }
 0x4a5   :  { %1628 = vsyncpa [#allocation4 + $0x1], 1 }

</bundles_post_ra>
